<compile_context>
chip_gen: v7x
topology: tpu7x:2x2x1
jax: 0.10.0
libtpu: 0.0.40
codegen_flags: <defaults>
</compile_context>

<pallas_src>
import functools

import numpy as np
import jax
import jax.numpy as jnp
from jax import lax
from jax.experimental import pallas as pl
from jax.experimental.pallas import tpu as pltpu

IMG_H = IMG_W = 64          # small synthetic image; stride-16 -> 4x4 feature map
FEAT_STRIDE = 16
ANCHOR_SCALES = (8, 16, 32)
N_ANCHORS = len(ANCHOR_SCALES) * 3
N_CLASSES = 21
POST_NMS_TOP_N = 8          # reference TEST config uses 300; reduced for the demo
POOLED = 7
SPATIAL_SCALE = 1.0 / 16.0

VGG_CFG = [(3, 64), (64, 64), 'M',
           (64, 128), (128, 128), 'M',
           (128, 256), (256, 256), (256, 256), 'M',
           (256, 512), (512, 512), (512, 512), 'M',
           (512, 512), (512, 512), (512, 512)]

_BUDGETS = None


def _budgets():
    """(weight_block_bytes, lhs_block_bytes, vmem_limit_bytes), generation-aware."""
    global _BUDGETS
    if _BUDGETS is None:
        cap = 64 * 2 ** 20
        try:
            cap = int(getattr(pltpu.get_tpu_info(), "vmem_capacity_bytes", cap))
        except Exception:
            pass
        if cap >= 96 * 2 ** 20:          # v5e / v6e: 128 MiB of physical VMEM
            _BUDGETS = (16 * 2 ** 20, 8 * 2 ** 20, 64 * 2 ** 20)
        else:                            # v7x: 64 MiB of physical VMEM
            _BUDGETS = (8 * 2 ** 20, 4 * 2 ** 20, 32 * 2 ** 20)
    return _BUDGETS


def _vmem_limit():
    return _budgets()[2]


def _pick_div(dim, cands):
    """Largest candidate that evenly divides `dim`; fall back to the full dim."""
    for c in cands:
        if c <= dim and dim % c == 0:
            return c
    return dim


# --------------------------------------------------------------------------
# Generic tiled matmul + bias (+ ReLU / fused epilogue) Pallas kernel
# --------------------------------------------------------------------------
def _tiles(M, K, N):
    wb, xb, _ = _budgets()
    # tn: multiple of 128 when possible; keep >= 2 N-tiles when M cannot split
    # (so both v7x TensorCores stream disjoint weight halves for fc6/fc7).
    tn_c = (8192, 4096, 2048, 1024, 512, 256, 128)
    if M < 256 and N >= 256:
        tn_c = tuple(c for c in tn_c if c <= N // 2)
    tn = _pick_div(N, tn_c)
    # tk: full K if the weight block fits the budget, else a 128-multiple divisor.
    if K * tn * 2 <= wb:
        tk = K
    else:
        max_tk = max(128, wb // (tn * 2))
        tk = _pick_div(K, tuple(c for c in (4096, 3584, 3072, 2560, 2048, 1792,
                                            1536, 1280, 1152, 1024, 896, 768,
                                            640, 512, 384, 256, 128)
                                if c <= max_tk))
    # tm: full M if it fits, capped at M//2 when M >= 256 (>= 2 parallel tiles).
    tm_cap = M // 2 if M >= 256 else M
    if tm_cap >= M and M * tk * 2 <= xb:
        tm = M
    else:
        max_tm = min(tm_cap, max(8, xb // max(tk * 2, 1)))
        tm = _pick_div(M, tuple(c for c in (4096, 2048, 1024, 512, 256, 128,
                                            64, 32, 16, 8) if c <= max_tm))
    return tm, tk, tn


def matmul_bias(x, w, b, *, relu=False, epilogue=None, out_dtype=jnp.float32):
    """y = epilogue(relu(x @ w + b)).  x:(M,K), w:(K,N) bf16; b:(1,N) f32.

    `epilogue` is an optional row-wise f32->f32 callable (softmax, the RPN
    pair-sigmoid, ...) fused into the K-loop finalize; it requires the whole
    N dimension to live in a single tile."""
    M, K = x.shape
    _, N = w.shape
    x = x.astype(jnp.bfloat16)
    w = w.astype(jnp.bfloat16)
    b = b.astype(jnp.float32)
    tm, tk, tn = _tiles(M, K, N)
    if epilogue is not None:
        assert tn == N, "fused epilogue needs the full N in one tile"
    grid = (M // tm, N // tn, K // tk)

    def kernel(x_ref, w_ref, b_ref, o_ref, acc_ref):
        @pl.when(pl.program_id(2) == 0)
        def _init():
            acc_ref[...] = jnp.zeros_like(acc_ref)

        acc_ref[...] += jnp.dot(x_ref[...], w_ref[...],
                                preferred_element_type=jnp.float32)

        @pl.when(pl.program_id(2) == pl.num_programs(2) - 1)
        def _finalize():
            y = acc_ref[...] + b_ref[...]          # f32 epilogue (v5e-safe)
            if relu:
                y = jnp.maximum(y, 0.0)
            if epilogue is not None:
                y = epilogue(y)
            o_ref[...] = y.astype(o_ref.dtype)

    return pl.pallas_call(
        kernel,
        out_shape=jax.ShapeDtypeStruct((M, N), out_dtype),
        grid_spec=pltpu.PrefetchScalarGridSpec(
            num_scalar_prefetch=0,
            grid=grid,
            in_specs=[pl.BlockSpec((tm, tk), lambda i, j, k: (i, k)),
                      pl.BlockSpec((tk, tn), lambda i, j, k: (k, j)),
                      pl.BlockSpec((1, tn), lambda i, j, k: (0, j))],
            out_specs=pl.BlockSpec((tm, tn), lambda i, j, k: (i, j)),
            scratch_shapes=[pltpu.VMEM((tm, tn), jnp.float32)],
        ),
        compiler_params=pltpu.CompilerParams(
            dimension_semantics=("parallel", "parallel", "arbitrary"),
            vmem_limit_bytes=_vmem_limit()),
    )(x, w, b)


# --------------------------------------------------------------------------
# Fused matmul epilogues
# --------------------------------------------------------------------------
def _rpn_pair_sigmoid(n_anchors, y):
    """reshape_layer(.,2) + softmax over (bg, fg) logit pairs == sigmoid(fg-bg),
    fused into the RPN-head matmul finalize.  Writes the fg probability into
    columns [0, A); columns [2A, 6A) keep the bbox deltas unchanged."""
    bg = y[:, :n_anchors]
    fg = y[:, n_anchors:2 * n_anchors]
    prob = 1.0 / (1.0 + jnp.exp(bg - fg))
    return jnp.concatenate([prob, y[:, n_anchors:]], axis=-1)


def _softmax_rows(y):
    m = jnp.max(y, axis=-1, keepdims=True)
    e = jnp.exp(y - m)
    return e / jnp.sum(e, axis=-1, keepdims=True)


# --------------------------------------------------------------------------
# 3x3 convs: in-kernel im2col (halo DMA + shifted MXU dots)
# --------------------------------------------------------------------------
def _conv2d_halo(x, w, b, *, relu=True):
    """3x3 same-padding conv.  x:(H,W,Cin) bf16; w:(3,3,Cin,Cout); b:(1,Cout) f32.

    A manual DMA brings the (tr+2, W+2, Cin) halo row slab into VMEM once per
    output-row tile; the 9 taps are accumulated as shifted MXU dots, so the
    activation is read ~1.25x from HBM instead of ~9x (old XLA im2col glue)."""
    H, W, Cin = x.shape
    KH, KW, _, Cout = w.shape
    assert KH == 3 and KW == 3
    xp = jnp.pad(x.astype(jnp.bfloat16), ((1, 1), (1, 1), (0, 0)))  # (H+2, W+2, Cin)
    tr = _pick_div(H, tuple(c for c in (8, 4, 2, 1) if c <= max(1, H // 2)))
    tn = _pick_div(Cout, (256, 128))
    grid = (H // tr, Cout // tn)

    def kernel(x_hbm, w_ref, b_ref, o_ref, slab, sem):
        i = pl.program_id(0)

        # Fetch the halo slab only when the Cout-tile index restarts at 0; the
        # j axis is 'arbitrary' so each core sweeps j in order for every i and
        # the slab stays valid across the inner Cout tiles.
        @pl.when(pl.program_id(1) == 0)
        def _fetch():
            cp = pltpu.make_async_copy(x_hbm.at[pl.ds(i * tr, tr + 2)],
                                       slab, sem.at[0])
            cp.start()
            cp.wait()

        bias = b_ref[...]                              # (1, tn) f32
        for r in range(tr):                            # static unroll, tr <= 8
            acc = jnp.zeros((W, tn), jnp.float32)
            for dy in range(3):
                row = slab[r + dy]                     # (W+2, Cin)
                for dx in range(3):
                    acc += jnp.dot(row[dx:dx + W, :], w_ref[dy, dx],
                                   preferred_element_type=jnp.float32)
            y = acc + bias
            if relu:
                y = jnp.maximum(y, 0.0)
            o_ref[r] = y.astype(o_ref.dtype)

    return pl.pallas_call(
        kernel,
        out_shape=jax.ShapeDtypeStruct((H, W, Cout), jnp.bfloat16),
        grid_spec=pltpu.PrefetchScalarGridSpec(
            num_scalar_prefetch=0,
            grid=grid,
            in_specs=[pl.BlockSpec(memory_space=pl.ANY),
                      pl.BlockSpec((3, 3, Cin, tn), lambda i, j: (0, 0, 0, j)),
                      pl.BlockSpec((1, tn), lambda i, j: (0, j))],
            out_specs=pl.BlockSpec((tr, W, tn), lambda i, j: (i, 0, j)),
            scratch_shapes=[pltpu.VMEM((tr + 2, W + 2, Cin), jnp.bfloat16),
                            pltpu.SemaphoreType.DMA((1,))],
        ),
        compiler_params=pltpu.CompilerParams(
            dimension_semantics=("parallel", "arbitrary"),
            vmem_limit_bytes=_vmem_limit()),
    )(xp, w.astype(jnp.bfloat16), b.astype(jnp.float32))


def _conv2d_im2col(x, w, b, *, relu=True):
    """Fallback for the Cin=3 stem conv: im2col in XLA glue (the activation is
    tiny there) and a single big-K (=27) MXU matmul."""
    H, W, Cin = x.shape
    KH, KW, _, Cout = w.shape
    ph, pw = KH // 2, KW // 2
    xp = jnp.pad(x.astype(jnp.bfloat16), ((ph, ph), (pw, pw), (0, 0)))
    cols = [xp[i:i + H, j:j + W, :] for i in range(KH) for j in range(KW)]
    patches = jnp.concatenate(cols, axis=-1).reshape(H * W, KH * KW * Cin)
    out = matmul_bias(patches, w.reshape(KH * KW * Cin, Cout), b,
                      relu=relu, out_dtype=jnp.bfloat16)
    return out.reshape(H, W, Cout)


def conv2d(x, w, b, *, relu=True):
    if w.shape[2] < 8:        # stem conv (Cin=3)
        return _conv2d_im2col(x, w, b, relu=relu)
    return _conv2d_halo(x, w, b, relu=relu)


# --------------------------------------------------------------------------
# 2x2 / stride-2 max pool (no XLA transpose glue)
# --------------------------------------------------------------------------
def max_pool_2x2(x):
    """x: (H, W, C).  The two H-phases come from a free leading-dim reshape;
    the stride-2 column selection uses two one-hot selection matmuls (the MXU
    is idle here and this avoids strided sublane loads)."""
    H, W, C = x.shape
    Ho, Wo = H // 2, W // 2
    xr = x.reshape(Ho, 2, W, C)        # splits the major dim only: no data movement
    th = _pick_div(Ho, tuple(c for c in (8, 4, 2, 1) if c <= max(1, Ho // 2)))

    def kernel(x_ref, o_ref):
        rows = lax.broadcasted_iota(jnp.int32, (Wo, W), 0)
        cols = lax.broadcasted_iota(jnp.int32, (Wo, W), 1)
        s_even = (cols == 2 * rows).astype(jnp.bfloat16)
        s_odd = (cols == 2 * rows + 1).astype(jnp.bfloat16)
        for r in range(th):
            a = jnp.maximum(x_ref[r, 0], x_ref[r, 1]).astype(jnp.bfloat16)  # (W, C)
            e = jnp.dot(s_even, a, preferred_element_type=jnp.float32)
            o = jnp.dot(s_odd, a, preferred_element_type=jnp.float32)
            o_ref[r] = jnp.maximum(e, o).astype(o_ref.dtype)

    return pl.pallas_call(
        kernel,
        out_shape=jax.ShapeDtypeStruct((Ho, Wo, C), x.dtype),
        grid_spec=pltpu.PrefetchScalarGridSpec(
            num_scalar_prefetch=0,
            grid=(Ho // th,),
            in_specs=[pl.BlockSpec((th, 2, W, C), lambda i: (i, 0, 0, 0))],
            out_specs=pl.BlockSpec((th, Wo, C), lambda i: (i, 0, 0)),
        ),
        compiler_params=pltpu.CompilerParams(
            dimension_semantics=("parallel",),
            vmem_limit_bytes=_vmem_limit()),
    )(xr)


# --------------------------------------------------------------------------
# RoI max pooling (vectorised over all 49 bins)
# --------------------------------------------------------------------------
def _roi_bins(rois_np, H, W):
    """Host-side per-ROI, per-bin boundaries (reference RoIPool rounding).
    Returns int32 (R, 49, 4) with columns [hstart, hend, wstart, wend]."""
    sw = np.round(rois_np[:, 1].astype(np.float64) * SPATIAL_SCALE).astype(np.int64)
    sh = np.round(rois_np[:, 2].astype(np.float64) * SPATIAL_SCALE).astype(np.int64)
    ew = np.round(rois_np[:, 3].astype(np.float64) * SPATIAL_SCALE).astype(np.int64)
    eh = np.round(rois_np[:, 4].astype(np.float64) * SPATIAL_SCALE).astype(np.int64)
    roi_h = np.maximum(eh - sh + 1, 1).astype(np.float64)
    roi_w = np.maximum(ew - sw + 1, 1).astype(np.float64)
    bh = roi_h / float(POOLED)
    bw = roi_w / float(POOLED)
    p = np.arange(POOLED, dtype=np.float64)
    hs = np.clip(np.floor(p[None, :] * bh[:, None]).astype(np.int64) + sh[:, None], 0, H)
    he = np.clip(np.ceil((p[None, :] + 1) * bh[:, None]).astype(np.int64) + sh[:, None], 0, H)
    ws = np.clip(np.floor(p[None, :] * bw[:, None]).astype(np.int64) + sw[:, None], 0, W)
    we = np.clip(np.ceil((p[None, :] + 1) * bw[:, None]).astype(np.int64) + sw[:, None], 0, W)
    # bin b = ph*POOLED + pw: h-bounds depend on ph only, w-bounds on pw only
    hs49 = np.repeat(hs, POOLED, axis=1)
    he49 = np.repeat(he, POOLED, axis=1)
    ws49 = np.tile(ws, (1, POOLED))
    we49 = np.tile(we, (1, POOLED))
    return np.stack([hs49, he49, ws49, we49], axis=-1).astype(np.int32)


def roi_pool(features, rois_np):
    """RoI max pooling (7x7, 1/16 scale).  features: (H, W, C); rois: numpy (R, 5).
    Returns (R, 49, C) f32, bins ordered (ph, pw)."""
    H, W, C = features.shape
    R = rois_np.shape[0]
    PP = POOLED * POOLED
    bins = jnp.asarray(_roi_bins(rois_np, H, W))         # (R, 49, 4) int32
    feat2d = features.reshape(H * W, C).astype(jnp.bfloat16)

    # TODO(synk): for real (38x63) feature maps DMA only the ROI window per bin
    # row instead of masking the whole (H*W, C) map.
    def kernel(b_ref, f_ref, o_ref):
        f = f_ref[...].astype(jnp.float32)               # (HW, C)
        bb = b_ref[0]                                    # (49, 4) int32
        hs, he = bb[:, 0:1], bb[:, 1:2]
        ws, we = bb[:, 2:3], bb[:, 3:4]
        pos = lax.broadcasted_iota(jnp.int32, (PP, H * W), 1)
        row = pos // W
        col = pos - row * W
        mask = (row >= hs) & (row < he) & (col >= ws) & (col < we)   # (49, HW)
        vals = jnp.where(mask[:, :, None], f[None, :, :], -jnp.inf)  # (49, HW, C)
        m = jnp.max(vals, axis=1)                                    # (49, C)
        empty = jnp.logical_or(he <= hs, we <= ws)                   # (49, 1)
        o_ref[0] = jnp.where(empty, 0.0, m)

    return pl.pallas_call(
        kernel,
        out_shape=jax.ShapeDtypeStruct((R, PP, C), jnp.float32),
        grid_spec=pltpu.PrefetchScalarGridSpec(
            num_scalar_prefetch=0,
            grid=(R,),
            in_specs=[pl.BlockSpec((1, PP, 4), lambda r: (r, 0, 0)),
                      pl.BlockSpec((H * W, C), lambda r: (0, 0))],
            out_specs=pl.BlockSpec((1, PP, C), lambda r: (r, 0, 0)),
        ),
        compiler_params=pltpu.CompilerParams(
            dimension_semantics=("parallel",),
            vmem_limit_bytes=_vmem_limit()),
    )(bins, feat2d)


# --------------------------------------------------------------------------
# Host-side proposal layer (numpy, like the reference proposal_layer_py)
# --------------------------------------------------------------------------
def generate_anchors(base_size=16, ratios=(0.5, 1, 2), scales=(8, 16, 32)):
    ratios = np.array(ratios, dtype=np.float64)
    scales = np.array(scales, dtype=np.float64)
    base_anchor = np.array([1, 1, base_size, base_size], dtype=np.float64) - 1

    def _whctrs(a):
        w = a[2] - a[0] + 1
        h = a[3] - a[1] + 1
        return w, h, a[0] + 0.5 * (w - 1), a[1] + 0.5 * (h - 1)

    def _mkanchors(ws, hs, xc, yc):
        ws = ws[:, None]
        hs = hs[:, None]
        return np.hstack((xc - 0.5 * (ws - 1), yc - 0.5 * (hs - 1),
                          xc + 0.5 * (ws - 1), yc + 0.5 * (hs - 1)))

    w, h, xc, yc = _whctrs(base_anchor)
    size = w * h
    ws = np.round(np.sqrt(size / ratios))
    hs = np.round(ws * ratios)
    ratio_anchors = _mkanchors(ws, hs, xc, yc)
    anchors = []
    for i in range(ratio_anchors.shape[0]):
        w, h, xc, yc = _whctrs(ratio_anchors[i])
        anchors.append(_mkanchors(w * scales, h * scales, xc, yc))
    return np.vstack(anchors)


def bbox_transform_inv(boxes, deltas):
    boxes = boxes.astype(np.float64)
    widths = boxes[:, 2] - boxes[:, 0] + 1.0
    heights = boxes[:, 3] - boxes[:, 1] + 1.0
    ctr_x = boxes[:, 0] + 0.5 * widths
    ctr_y = boxes[:, 1] + 0.5 * heights
    dx, dy, dw, dh = deltas[:, 0], deltas[:, 1], deltas[:, 2], deltas[:, 3]
    pred_ctr_x = dx * widths + ctr_x
    pred_ctr_y = dy * heights + ctr_y
    pred_w = np.exp(dw) * widths
    pred_h = np.exp(dh) * heights
    pred = np.zeros_like(deltas)
    pred[:, 0] = pred_ctr_x - 0.5 * pred_w
    pred[:, 1] = pred_ctr_y - 0.5 * pred_h
    pred[:, 2] = pred_ctr_x + 0.5 * pred_w
    pred[:, 3] = pred_ctr_y + 0.5 * pred_h
    return pred


def clip_boxes(boxes, im_shape):
    boxes[:, 0] = np.clip(boxes[:, 0], 0, im_shape[1] - 1)
    boxes[:, 1] = np.clip(boxes[:, 1], 0, im_shape[0] - 1)
    boxes[:, 2] = np.clip(boxes[:, 2], 0, im_shape[1] - 1)
    boxes[:, 3] = np.clip(boxes[:, 3], 0, im_shape[0] - 1)
    return boxes


def proposal_layer(fg_prob, bbox_deltas, im_info,
                   feat_stride=FEAT_STRIDE, scales=ANCHOR_SCALES,
                   post_nms_top_n=POST_NMS_TOP_N, min_size=16):
    anchors0 = generate_anchors(scales=scales)
    A = anchors0.shape[0]
    H, W = fg_prob.shape[:2]
    shift_x = np.arange(W) * feat_stride
    shift_y = np.arange(H) * feat_stride
    sx, sy = np.meshgrid(shift_x, shift_y)
    shifts = np.vstack((sx.ravel(), sy.ravel(), sx.ravel(), sy.ravel())).transpose()
    K = shifts.shape[0]
    anchors = (anchors0.reshape(1, A, 4) + shifts.reshape(K, 1, 4)).reshape(K * A, 4)

    scores = fg_prob.reshape(-1).astype(np.float64)
    deltas = bbox_deltas.reshape(-1, 4).astype(np.float64)
    proposals = bbox_transform_inv(anchors, deltas)
    proposals = clip_boxes(proposals, im_info[:2])

    ws = proposals[:, 2] - proposals[:, 0] + 1
    hs = proposals[:, 3] - proposals[:, 1] + 1
    keep = np.where((ws >= min_size * im_info[2]) & (hs >= min_size * im_info[2]))[0]
    if keep.size < post_nms_top_n:
        keep = np.arange(proposals.shape[0])
    proposals = proposals[keep]
    scores = scores[keep]
    order = scores.argsort()[::-1]
    # TODO(synk): greedy NMS (data-dependent host loop in the reference) is skipped;
    # the top post_nms_top_n proposals by score are taken directly.
    order = order[:post_nms_top_n]
    proposals = proposals[order]
    rois = np.hstack((np.zeros((proposals.shape[0], 1), dtype=np.float32),
                      proposals.astype(np.float32)))
    return rois


# --------------------------------------------------------------------------
# Parameters & forward pass
# --------------------------------------------------------------------------
def init_params(key):
    counter = [0]

    def normal(shape, std=0.01):
        counter[0] += 1
        k = jax.random.fold_in(key, counter[0])
        return (std * jax.random.normal(k, shape, dtype=jnp.float32)).astype(jnp.bfloat16)

    def conv_param(kh, kw, cin, cout):
        return (normal((kh, kw, cin, cout)), jnp.zeros((1, cout), jnp.float32))

    def fc_param(cin, cout):
        return (normal((cin, cout)), jnp.zeros((1, cout), jnp.float32))

    params = {}
    vgg = []
    for layer in VGG_CFG:
        if layer == 'M':
            vgg.append('M')
        else:
            cin, cout = layer
            vgg.append(conv_param(3, 3, cin, cout))
    params['vgg'] = vgg
    params['rpn_conv1'] = conv_param(3, 3, 512, 512)
    # fused 1x1 RPN heads: cols [0:9] bg logits, [9:18] fg logits, [18:54] bbox
    params['rpn_head'] = fc_param(512, N_ANCHORS * 2 + N_ANCHORS * 4)
    # fc6 weight rows are laid out in the roi_pool (bin, channel) flatten order,
    # so no runtime transpose is needed.  Loading a PyTorch checkpoint would
    # require a (C,7,7) -> (7*7,C) row permutation done once at load time.
    params['fc6'] = fc_param(POOLED * POOLED * 512, 4096)
    params['fc7'] = fc_param(4096, 4096)
    params['score_fc'] = fc_param(4096, N_CLASSES)
    params['bbox_fc'] = fc_param(4096, N_CLASSES * 4)
    return params


def faster_rcnn_forward(params, image):
    """image: (1, 3, H, W) float32 (NCHW, as in the PyTorch reference)."""
    x = jnp.transpose(image[0], (1, 2, 0)).astype(jnp.bfloat16)   # -> (H, W, 3)
    im_h, im_w = image.shape[2], image.shape[3]
    im_info = np.array([[float(im_h), float(im_w), 1.0]], dtype=np.float32)

    # VGG16 feature extractor (13 convs + 4 max pools, overall stride 16)
    for layer in params['vgg']:
        if isinstance(layer, str):
            x = max_pool_2x2(x)
        else:
            w, b = layer
            x = conv2d(x, w, b, relu=True)
    features = x                                   # (H/16, W/16, 512) bf16

    # RPN: 3x3 conv, then both 1x1 heads fused into one matmul whose epilogue
    # also computes the pair-softmax fg probability (sigmoid(fg - bg)).
    rpn_conv1 = conv2d(features, *params['rpn_conv1'], relu=True)
    fh, fw, _ = rpn_conv1.shape
    head = matmul_bias(rpn_conv1.reshape(fh * fw, 512), *params['rpn_head'],
                       relu=False, out_dtype=jnp.float32,
                       epilogue=functools.partial(_rpn_pair_sigmoid, N_ANCHORS))
    fg_prob = head[:, :N_ANCHORS]                        # (fh*fw, 9)
    rpn_bbox_pred = head[:, 2 * N_ANCHORS:]              # (fh*fw, 36)

    # one batched device->host transfer, then the host-side proposal layer
    fg_prob_np, bbox_np = jax.device_get((fg_prob, rpn_bbox_pred))
    rois_np = proposal_layer(fg_prob_np.reshape(fh, fw, N_ANCHORS),
                             bbox_np.reshape(fh, fw, N_ANCHORS * 4),
                             im_info[0])

    # RoI max pooling -> (R, 49, 512); fc6 rows already match this flatten order.
    pooled = roi_pool(features, rois_np)
    R = rois_np.shape[0]
    xfc = pooled.reshape(R, POOLED * POOLED * 512).astype(jnp.bfloat16)

    xfc = matmul_bias(xfc, *params['fc6'], relu=True, out_dtype=jnp.bfloat16)
    xfc = matmul_bias(xfc, *params['fc7'], relu=True, out_dtype=jnp.bfloat16)
    cls_prob = matmul_bias(xfc, *params['score_fc'], relu=False,
                           out_dtype=jnp.float32, epilogue=_softmax_rows)
    bbox_pred = matmul_bias(xfc, *params['bbox_fc'], relu=False,
                            out_dtype=jnp.float32)
    return cls_prob, bbox_pred, jnp.asarray(rois_np), im_info


if __name__ == "__main__":
    key = jax.random.PRNGKey(0)
    pkey, ikey = jax.random.split(key)
    params = init_params(pkey)
    image = jax.random.normal(ikey, (1, 3, IMG_H, IMG_W), dtype=jnp.float32)

    cls_prob, bbox_pred, rois, im_info = faster_rcnn_forward(params, image)
    jax.block_until_ready((cls_prob, bbox_pred, rois))

    assert cls_prob.shape == (POST_NMS_TOP_N, N_CLASSES)
    assert bbox_pred.shape == (POST_NMS_TOP_N, N_CLASSES * 4)
    assert rois.shape == (POST_NMS_TOP_N, 5)
    assert bool(jnp.all(jnp.isfinite(cls_prob))) and bool(jnp.all(jnp.isfinite(bbox_pred)))
    print("KERNEL_OK")
</pallas_src>

<mosaic_0001>
module attributes {stable_mosaic.version = 11 : i64} {
  func.func @kernel(%arg0: i32, %arg1: i32, %arg2: i32, %arg3: memref<2048x27xbf16, #tpu.memory_space<vmem>>, %arg4: memref<27x64xbf16, #tpu.memory_space<vmem>>, %arg5: memref<1x64xf32, #tpu.memory_space<vmem>>, %arg6: memref<2048x64xbf16, #tpu.memory_space<vmem>>, %arg7: memref<2048x64xf32, #tpu.memory_space<vmem>>) attributes {dimension_semantics = [#tpu.dimension_semantics<parallel>, #tpu.dimension_semantics<parallel>, #tpu.dimension_semantics<arbitrary>], iteration_bounds = array<i64: 2, 1, 1>, scalar_prefetch = 0 : i64, scratch_operands = 1 : i64, tpu.core_type = #tpu.core_type<tc>, window_params = [{transform_indices = @transform_0, window_bounds = array<i64: 2048, 27>}, {transform_indices = @transform_1, window_bounds = array<i64: 27, 64>}, {transform_indices = @transform_2, window_bounds = array<i64: 1, 64>}, {transform_indices = @transform_3, window_bounds = array<i64: 2048, 64>}]} {
    %c0_i32 = arith.constant 0 : i32
    %0 = arith.cmpi eq, %arg2, %c0_i32 : i32
    %1 = arith.extui %0 : i1 to i32
    %c0_i32_0 = arith.constant 0 : i32
    %2 = arith.cmpi ne, %1, %c0_i32_0 : i32
    scf.if %2 {
      %cst_10 = arith.constant 0.000000e+00 : f32
      %12 = vector.broadcast %cst_10 : f32 to vector<2048x64xf32>
      %c0_11 = arith.constant 0 : index
      %c0_12 = arith.constant 0 : index
      %13 = vector.load %arg7[%c0_11, %c0_12] : memref<2048x64xf32, #tpu.memory_space<vmem>>, vector<2048x64xf32>
      tpu.vector_store %arg7[%c0_11, %c0_12], %12 {strides = array<i32>} : memref<2048x64xf32, #tpu.memory_space<vmem>>, vector<2048x64xf32>,
    } else {
    }
    %c0 = arith.constant 0 : index
    %c0_1 = arith.constant 0 : index
    %3 = vector.load %arg7[%c0, %c0_1] : memref<2048x64xf32, #tpu.memory_space<vmem>>, vector<2048x64xf32>
    %c0_2 = arith.constant 0 : index
    %c0_3 = arith.constant 0 : index
    %4 = vector.load %arg3[%c0_2, %c0_3] : memref<2048x27xbf16, #tpu.memory_space<vmem>>, vector<2048x27xbf16>
    %c0_4 = arith.constant 0 : index
    %c0_5 = arith.constant 0 : index
    %5 = vector.load %arg4[%c0_4, %c0_5] : memref<27x64xbf16, #tpu.memory_space<vmem>>, vector<27x64xbf16>
    %cst = arith.constant dense<0.000000e+00> : vector<2048x64xf32>
    %6 = tpu.matmul %4, %5, %cst {dimension_numbers = #tpu.dot_dimension_numbers<[1], [0], [0], [1], [0, 0, 1, 1], [], []>} : vector<2048x27xbf16>, vector<27x64xbf16>, vector<2048x64xf32> -> vector<2048x64xf32>
    %7 = arith.addf %3, %6 : vector<2048x64xf32>
    %c0_6 = arith.constant 0 : index
    %c0_7 = arith.constant 0 : index
    %8 = vector.load %arg7[%c0_6, %c0_7] : memref<2048x64xf32, #tpu.memory_space<vmem>>, vector<2048x64xf32>
    tpu.vector_store %arg7[%c0_6, %c0_7], %7 {strides = array<i32>} : memref<2048x64xf32, #tpu.memory_space<vmem>>, vector<2048x64xf32>,
    %c0_i32_8 = arith.constant 0 : i32
    %9 = arith.cmpi eq, %arg2, %c0_i32_8 : i32
    %10 = arith.extui %9 : i1 to i32
    %c0_i32_9 = arith.constant 0 : i32
    %11 = arith.cmpi ne, %10, %c0_i32_9 : i32
    scf.if %11 {
      %c0_10 = arith.constant 0 : index
      %c0_11 = arith.constant 0 : index
      %12 = vector.load %arg7[%c0_10, %c0_11] : memref<2048x64xf32, #tpu.memory_space<vmem>>, vector<2048x64xf32>
      %c0_12 = arith.constant 0 : index
      %c0_13 = arith.constant 0 : index
      %13 = vector.load %arg5[%c0_12, %c0_13] : memref<1x64xf32, #tpu.memory_space<vmem>>, vector<1x64xf32>
      %14 = vector.broadcast %13 : vector<1x64xf32> to vector<2048x64xf32>
      %15 = arith.addf %12, %14 : vector<2048x64xf32>
      %cst_14 = arith.constant 0.000000e+00 : f32
      %16 = vector.broadcast %cst_14 : f32 to vector<2048x64xf32>
      %17 = arith.maximumf %15, %16 : vector<2048x64xf32>
      %18 = arith.truncf %17 : vector<2048x64xf32> to vector<2048x64xbf16>
      %c0_15 = arith.constant 0 : index
      %c0_16 = arith.constant 0 : index
      %19 = vector.load %arg6[%c0_15, %c0_16] : memref<2048x64xbf16, #tpu.memory_space<vmem>>, vector<2048x64xbf16>
      tpu.vector_store %arg6[%c0_15, %c0_16], %18 {strides = array<i32>} : memref<2048x64xbf16, #tpu.memory_space<vmem>>, vector<2048x64xbf16>,
    } else {
    }
    return
  }
  func.func @transform_0(%arg0: i32, %arg1: i32, %arg2: i32) -> (i32, i32) {
    %c0_i32 = arith.constant 0 : i32
    return %arg0, %arg2 : i32, i32
  }
  func.func @transform_1(%arg0: i32, %arg1: i32, %arg2: i32) -> (i32, i32) {
    %c0_i32 = arith.constant 0 : i32
    return %arg2, %arg1 : i32, i32
  }
  func.func @transform_2(%arg0: i32, %arg1: i32, %arg2: i32) -> (i32, i32) {
    %c0_i32 = arith.constant 0 : i32
    %c0_i32_0 = arith.constant 0 : i32
    return %c0_i32, %arg1 : i32, i32
  }
  func.func @transform_3(%arg0: i32, %arg1: i32, %arg2: i32) -> (i32, i32) {
    %c0_i32 = arith.constant 0 : i32
    return %arg0, %arg1 : i32, i32
  }
}

</mosaic_0001>

<bundles_post_ra>
// kernel: tpu_custom_call.1
= control target key start
LH: loop header
LB: loop body
LE: loop exit
PB: predicated region body
PF: predicated region fallthrough
CT: control target
= control target key end

     0   :  { %s7204_s12 = smov 0   ;;  %s7206_s13 = smov 0   ;;  %s9083_s0 = inlined_call_operand.vmem [shape: bf16[4096,27], index: 0, kind: input, shape index: {}]   ;;  %s9084_s1 = inlined_call_operand.vmem [shape: bf16[27,64], index: 1, kind: input, shape index: {}]   ;;  %s9085_s2 = inlined_call_operand.vmem [shape: f32[1,64], index: 2, kind: input, shape index: {}]   ;;  %s9086_s3 = inlined_call_operand.vmem [shape: bf16[4096,64], index: 3, kind: output, shape index: {}]  }
   0x1   :  { %s7208_s14 = smov 0  }
   0x2 LB: > { %s32_s15 = sadd.s32 1, %s7176_s13  ;;  %p5826_p0 = scmp.ge.s32.totalorder %s7180_s14, 1  ;;  %s7180_s14 = sphi %s7208_s14, %s13_s14   ;;  %s7176_s13 = sphi %s7206_s13, %s9088_s13   ;;  %s7172_s12 = sphi %s7204_s12, %s9087_s12  }
   0x3   : > { %p34_p1 = scmp.ge.s32.totalorder %s32_s15, 2  ;;  %p188_p2 = scmp.lt.s32.totalorder %s7180_s14, 3 }
   0x5   : > { %s9090_s15 = smov (%p34_p1, %s32_s15), 0  ;;  %p189_p3 = pnand %p5826_p0, %p188_p2 }
   0x6   : > { %v7024_v0 = vld [vmem:[%s9084_s1] sm:$0xff] (!%p189_p3)   ;;  %vm2073_vm0 = vcmask (!%p189_p3), 1044480   ;;  %v7025_v1 = vld [vmem:[%s9084_s1 + $0x8] sm:$0x3f] (!%p189_p3)   ;;  %vm2074_vm1 = vcmask (!%p189_p3), 1045504   ;;  %s5827_s20 = sshll.u32 (!%p189_p3), %s7172_s12, 8 }
   0x7   : > { %192 = sbr.rel (%p189_p3) target bundleno = 547 (0x223), region = 32  ;;  %6734 = vmatprep.subr.bf16.mxu0 (!%p189_p3), %v7024_v0  ;;  %6994 = vmatprep.subr.bf16.mxu1 (!%p189_p3), %v7024_v0  ;;  %v7182_v2 = vmov (!%p189_p3), 65535   ;;  %p230_p4 = scmp.lt.s32.totalorder (!%p189_p3), %s5827_s20, 511  ;;  %vm1688_vm2 = vcmask (!%p189_p3), 220160   ;;  %vm264_vm3 = vcmask (!%p189_p3), 523264   ;;  %v7183_v52 = vmov (!%p189_p3), 0.0  }
   0x8   : > { %6735 = vmatpush3.bf16.msra.mxu0 (!%p189_p3), %v7024_v0  ;;  %6996 = vmatpush3.bf16.msra.mxu1 (!%p189_p3), %v7024_v0  ;;  %v2075_v3 = vsel (!%p189_p3), %vm2073_vm0, 4294967295, %v7182_v2  ;;  %267 = vst.msk [vmem:[#allocation2 + $0x10] sm:$0xff] (!%p189_p3), %vm264_vm3, %v7183_v52  ;;  %265 = vst.msk [vmem:[#allocation2] sm:$0xff] (!%p189_p3), %vm264_vm3, %v7183_v52  ;;  %vm5452_vm4 = vcmask (!%p189_p3), 519168  }
   0x9   : > { %v2076_v4 = vsel (!%p189_p3), %vm2074_vm1, %v2075_v3, 0  ;;  %266 = vst.msk [vmem:[#allocation2 + $0x8] sm:$0xff] (!%p189_p3), %vm264_vm3, %v7183_v52  ;;  %268 = vst.msk [vmem:[#allocation2 + $0x18] sm:$0xff] (!%p189_p3), %vm264_vm3, %v7183_v52 }
   0xa   : > { %v2078_v5 = vand.u32 (!%p189_p3), %v7025_v1, %v2076_v4  ;;  %269 = vst.msk [vmem:[#allocation2 + $0x20] sm:$0xff] (!%p189_p3), %vm264_vm3, %v7183_v52  ;;  %270 = vst.msk [vmem:[#allocation2 + $0x28] sm:$0xff] (!%p189_p3), %vm264_vm3, %v7183_v52 }
   0xb   : > { %271 = vst.msk [vmem:[#allocation2 + $0x30] sm:$0xff] (!%p189_p3), %vm264_vm3, %v7183_v52  ;;  %272 = vst.msk [vmem:[#allocation2 + $0x38] sm:$0xff] (!%p189_p3), %vm264_vm3, %v7183_v52 }
   0xc   : > { %6736 = vmatprep.subr.bf16.mxu0 (!%p189_p3), %v2078_v5  ;;  %6995 = vmatprep.subr.bf16.mxu1 (!%p189_p3), %v2078_v5  ;;  %273 = vst.msk [vmem:[#allocation2 + $0x40] sm:$0xff] (!%p189_p3), %vm264_vm3, %v7183_v52  ;;  %274 = vst.msk [vmem:[#allocation2 + $0x48] sm:$0xff] (!%p189_p3), %vm264_vm3, %v7183_v52 }
   0xd   : > { %6737 = vmatpush3.bf16.msra.mxu0 (!%p189_p3), %v2078_v5  ;;  %6997 = vmatpush3.bf16.msra.mxu1 (!%p189_p3), %v2078_v5  ;;  %275 = vst.msk [vmem:[#allocation2 + $0x50] sm:$0xff] (!%p189_p3), %vm264_vm3, %v7183_v52  ;;  %276 = vst.msk [vmem:[#allocation2 + $0x58] sm:$0xff] (!%p189_p3), %vm264_vm3, %v7183_v52 }
   0xe   : > { %s9092_s20 = smov (!%p230_p4, %s5827_s20), 511  ;;  %277 = vst.msk [vmem:[#allocation2 + $0x60] sm:$0xff] %vm264_vm3, %v7183_v52  ;;  %278 = vst.msk [vmem:[#allocation2 + $0x68] sm:$0xff] %vm264_vm3, %v7183_v52 }
   0xf   : > { %s5828_s21 = sshll.u32 %s9092_s20, 2  ;;  %279 = vst.msk [vmem:[#allocation2 + $0x70] sm:$0xff] %vm264_vm3, %v7183_v52  ;;  %280 = vst.msk [vmem:[#allocation2 + $0x78] sm:$0xff] %vm264_vm3, %v7183_v52 }
  0x10   : > { %s7236_s24 = scalar_lea.vmem %s9083_s0, %s5828_s21  ;;  %281 = vst.msk [vmem:[#allocation2 + $0x80] sm:$0xff] %vm264_vm3, %v7183_v52  ;;  %282 = vst.msk [vmem:[#allocation2 + $0x88] sm:$0xff] %vm264_vm3, %v7183_v52  ;;  %s8023_s29 = scalar_lea.vmem %s9086_s3, %s5828_s21 }
  0x11   : > { %v7026_v6 = vld [vmem:[%s7236_s24] sm:$0xff]   ;;  %v7028_v8 = vld [vmem:[%s7236_s24 + $0x8] sm:$0xff]   ;;  %v7030_v10 = vld [vmem:[%s7236_s24 + $0x10] sm:$0xff]   ;;  %283 = vst.msk [vmem:[#allocation2 + $0x90] sm:$0xff] %vm264_vm3, %v7183_v52 }
  0x12   : > { %v7027_v7 = vld [vmem:[%s7236_s24 + $0x200] sm:$0xff]   ;;  %6738 = vmatprep.mubr.msk.bf16.mxu0 %vm1688_vm2, %v7026_v6  ;;  %v7029_v9 = vld [vmem:[%s7236_s24 + $0x208] sm:$0xff]   ;;  %v7031_v11 = vld [vmem:[%s7236_s24 + $0x210] sm:$0xff]   ;;  %284 = vst.msk [vmem:[#allocation2 + $0x98] sm:$0xff] %vm264_vm3, %v7183_v52 }
  0x13   : > { %6866 = vmatprep.mubr.msk.bf16.mxu1 %vm1688_vm2, %v7027_v7  ;;  %6739 = vmatmul.mubr.msk.bf16.vlgmr.msra.gmra.mrb[0].mxu0 %vm1688_vm2, %v7028_v8  ;;  %v7032_v12 = vld [vmem:[%s7236_s24 + $0x18] sm:$0xff]   ;;  %v7034_v14 = vld [vmem:[%s7236_s24 + $0x20] sm:$0xff]   ;;  %v7036_v16 = vld [vmem:[%s7236_s24 + $0x28] sm:$0xff]   ;;  %285 = vst.msk [vmem:[#allocation2 + $0xa0] sm:$0xff] %vm264_vm3, %v7183_v52 }
  0x14   : > { %6867 = vmatmul.mubr.msk.bf16.vlgmr.msra.gmra.mrb[0].mxu1 %vm1688_vm2, %v7029_v9  ;;  %6742 = vmatprep.mubr.msk.bf16.mxu0 %vm1688_vm2, %v7030_v10  ;;  %v7033_v13 = vld [vmem:[%s7236_s24 + $0x218] sm:$0xff]   ;;  %v7035_v15 = vld [vmem:[%s7236_s24 + $0x220] sm:$0xff]   ;;  %v7037_v17 = vld [vmem:[%s7236_s24 + $0x228] sm:$0xff]   ;;  %286 = vst.msk [vmem:[#allocation2 + $0xa8] sm:$0xff] %vm264_vm3, %v7183_v52 }
  0x15   : > { %6870 = vmatprep.mubr.msk.bf16.mxu1 %vm1688_vm2, %v7031_v11  ;;  %v7038_v18 = vld [vmem:[%s7236_s24 + $0x30] sm:$0xff]   ;;  %v7040_v20 = vld [vmem:[%s7236_s24 + $0x38] sm:$0xff]   ;;  %v7042_v22 = vld [vmem:[%s7236_s24 + $0x40] sm:$0xff]   ;;  %287 = vst.msk [vmem:[#allocation2 + $0xb0] sm:$0xff] %vm264_vm3, %v7183_v52 }
  0x16   : > { %v7039_v19 = vld [vmem:[%s7236_s24 + $0x230] sm:$0xff]   ;;  %v7041_v21 = vld [vmem:[%s7236_s24 + $0x238] sm:$0xff]   ;;  %v7043_v23 = vld [vmem:[%s7236_s24 + $0x240] sm:$0xff]   ;;  %288 = vst.msk [vmem:[#allocation2 + $0xb8] sm:$0xff] %vm264_vm3, %v7183_v52 }
  0x17   : > { %v7044_v24 = vld [vmem:[%s7236_s24 + $0x48] sm:$0xff]   ;;  %v7046_v26 = vld [vmem:[%s7236_s24 + $0x50] sm:$0xff]   ;;  %v7048_v28 = vld [vmem:[%s7236_s24 + $0x58] sm:$0xff]   ;;  %289 = vst.msk [vmem:[#allocation2 + $0xc0] sm:$0xff] %vm264_vm3, %v7183_v52 }
  0x18   : > { %v7045_v25 = vld [vmem:[%s7236_s24 + $0x248] sm:$0xff]   ;;  %v7047_v27 = vld [vmem:[%s7236_s24 + $0x250] sm:$0xff]   ;;  %v7049_v29 = vld [vmem:[%s7236_s24 + $0x258] sm:$0xff]   ;;  %290 = vst.msk [vmem:[#allocation2 + $0xc8] sm:$0xff] %vm264_vm3, %v7183_v52 }
  0x19   : > { %v7050_v30 = vld [vmem:[%s7236_s24 + $0x60] sm:$0xff]   ;;  %v7052_v32 = vld [vmem:[%s7236_s24 + $0x68] sm:$0xff]   ;;  %v7054_v34 = vld [vmem:[%s7236_s24 + $0x70] sm:$0xff]   ;;  %291 = vst.msk [vmem:[#allocation2 + $0xd0] sm:$0xff] %vm264_vm3, %v7183_v52 }
  0x1a   : > { %v7051_v31 = vld [vmem:[%s7236_s24 + $0x260] sm:$0xff]   ;;  %v7053_v33 = vld [vmem:[%s7236_s24 + $0x268] sm:$0xff]   ;;  %v7055_v35 = vld [vmem:[%s7236_s24 + $0x270] sm:$0xff]   ;;  %292 = vst.msk [vmem:[#allocation2 + $0xd8] sm:$0xff] %vm264_vm3, %v7183_v52 }
  0x1b   : > { %6743 = vmatmul.mubr.msk.bf16.gmra.mrb[4].mxu0 %vm1688_vm2, %v7032_v12  ;;  %v7056_v36 = vld [vmem:[%s7236_s24 + $0x78] sm:$0xff]   ;;  %v7058_v38 = vld [vmem:[%s7236_s24 + $0x80] sm:$0xff]   ;;  %v7060_v40 = vld [vmem:[%s7236_s24 + $0x88] sm:$0xff]   ;;  %293 = vst.msk [vmem:[#allocation2 + $0xe0] sm:$0xff] %vm264_vm3, %v7183_v52 }
  0x1c   : > { %6871 = vmatmul.mubr.msk.bf16.gmra.mrb[4].mxu1 %vm1688_vm2, %v7033_v13  ;;  %6746 = vmatprep.mubr.msk.bf16.mxu0 %vm1688_vm2, %v7034_v14  ;;  %v7057_v37 = vld [vmem:[%s7236_s24 + $0x278] sm:$0xff]   ;;  %v7059_v39 = vld [vmem:[%s7236_s24 + $0x280] sm:$0xff]   ;;  %v7061_v41 = vld [vmem:[%s7236_s24 + $0x288] sm:$0xff]   ;;  %294 = vst.msk [vmem:[#allocation2 + $0xe8] sm:$0xff] %vm264_vm3, %v7183_v52 }
  0x1d   : > { %6874 = vmatprep.mubr.msk.bf16.mxu1 %vm1688_vm2, %v7035_v15  ;;  %v7062_v42 = vld [vmem:[%s7236_s24 + $0x90] sm:$0xff]   ;;  %v7064_v44 = vld [vmem:[%s7236_s24 + $0x98] sm:$0xff]   ;;  %v7066_v46 = vld [vmem:[%s7236_s24 + $0xa0] sm:$0xff]   ;;  %295 = vst.msk [vmem:[#allocation2 + $0xf0] sm:$0xff] %vm264_vm3, %v7183_v52 }
  0x1e   : > { %v7063_v43 = vld [vmem:[%s7236_s24 + $0x290] sm:$0xff]   ;;  %v7065_v45 = vld [vmem:[%s7236_s24 + $0x298] sm:$0xff]   ;;  %v7067_v47 = vld [vmem:[%s7236_s24 + $0x2a0] sm:$0xff]   ;;  %296 = vst.msk [vmem:[#allocation2 + $0xf8] sm:$0xff] %vm264_vm3, %v7183_v52 }
  0x1f   : > { %v7323_v48 = vld [vmem:[%s7236_s24 + $0xa8] sm:$0xff]   ;;  %v7329_v50 = vld [vmem:[%s7236_s24 + $0xb0] sm:$0xff]   ;;  %297 = vst.msk [vmem:[#allocation2 + $0x100] sm:$0xff] %vm264_vm3, %v7183_v52  ;;  %298 = vst.msk [vmem:[#allocation2 + $0x108] sm:$0xff] %vm264_vm3, %v7183_v52 }
  0x20   : > { %v7326_v49 = vld [vmem:[%s7236_s24 + $0x2a8] sm:$0xff]   ;;  %v7332_v51 = vld [vmem:[%s7236_s24 + $0x2b0] sm:$0xff]   ;;  %299 = vst.msk [vmem:[#allocation2 + $0x110] sm:$0xff] %vm264_vm3, %v7183_v52  ;;  %300 = vst.msk [vmem:[#allocation2 + $0x118] sm:$0xff] %vm264_vm3, %v7183_v52 }
  0x21   : > { %301 = vst.msk [vmem:[#allocation2 + $0x120] sm:$0xff] %vm264_vm3, %v7183_v52  ;;  %302 = vst.msk [vmem:[#allocation2 + $0x128] sm:$0xff] %vm264_vm3, %v7183_v52  ;;  %v7072_v53 = vld [vmem:[%s7236_s24 + $0xb8] sm:$0xff]   ;;  %v7074_v55 = vld [vmem:[%s7236_s24 + $0xc0] sm:$0xff]  }
  0x22   : > { %303 = vst.msk [vmem:[#allocation2 + $0x130] sm:$0xff] %vm264_vm3, %v7183_v52  ;;  %304 = vst.msk [vmem:[#allocation2 + $0x138] sm:$0xff] %vm264_vm3, %v7183_v52  ;;  %v7073_v54 = vld [vmem:[%s7236_s24 + $0x2b8] sm:$0xff]   ;;  %v7075_v56 = vld [vmem:[%s7236_s24 + $0x2c0] sm:$0xff]  }
  0x23   : > { %6747 = vmatmul.mubr.msk.bf16.gmra.mrb[8].mxu0 %vm1688_vm2, %v7036_v16  ;;  %305 = vst.msk [vmem:[#allocation2 + $0x140] sm:$0xff] %vm264_vm3, %v7183_v52  ;;  %306 = vst.msk [vmem:[#allocation2 + $0x148] sm:$0xff] %vm264_vm3, %v7183_v52  ;;  %v7076_v57 = vld [vmem:[%s7236_s24 + $0xc8] sm:$0xff]   ;;  %v7078_v59 = vld [vmem:[%s7236_s24 + $0xd0] sm:$0xff]  }
  0x24   : > { %6875 = vmatmul.mubr.msk.bf16.gmra.mrb[8].mxu1 %vm1688_vm2, %v7037_v17  ;;  %6750 = vmatprep.mubr.msk.bf16.mxu0 %vm1688_vm2, %v7038_v18  ;;  %307 = vst.msk [vmem:[#allocation2 + $0x150] sm:$0xff] %vm264_vm3, %v7183_v52  ;;  %308 = vst.msk [vmem:[#allocation2 + $0x158] sm:$0xff] %vm264_vm3, %v7183_v52  ;;  %v7077_v58 = vld [vmem:[%s7236_s24 + $0x2c8] sm:$0xff]   ;;  %v7079_v60 = vld [vmem:[%s7236_s24 + $0x2d0] sm:$0xff]  }
  0x25   : > { %6878 = vmatprep.mubr.msk.bf16.mxu1 %vm1688_vm2, %v7039_v19  ;;  %309 = vst.msk [vmem:[#allocation2 + $0x160] sm:$0xff] %vm264_vm3, %v7183_v52  ;;  %310 = vst.msk [vmem:[#allocation2 + $0x168] sm:$0xff] %vm264_vm3, %v7183_v52  ;;  %v7080_v61 = vld [vmem:[%s7236_s24 + $0xd8] sm:$0xff]   ;;  %v7082_v63 = vld [vmem:[%s7236_s24 + $0xe0] sm:$0xff]  }
  0x26   : > { %311 = vst.msk [vmem:[#allocation2 + $0x170] sm:$0xff] %vm264_vm3, %v7183_v52  ;;  %312 = vst.msk [vmem:[#allocation2 + $0x178] sm:$0xff] %vm264_vm3, %v7183_v52  ;;  %v7081_v62 = vld [vmem:[%s7236_s24 + $0x2d8] sm:$0xff]   ;;  %v7083_v0 = vld [vmem:[%s7236_s24 + $0x2e0] sm:$0xff]  }
  0x27   : > { %313 = vst.msk [vmem:[#allocation2 + $0x180] sm:$0xff] %vm264_vm3, %v7183_v52  ;;  %314 = vst.msk [vmem:[#allocation2 + $0x188] sm:$0xff] %vm264_vm3, %v7183_v52  ;;  %v7084_v1 = vld [vmem:[%s7236_s24 + $0xe8] sm:$0xff]   ;;  %v7086_v3 = vld [vmem:[%s7236_s24 + $0xf0] sm:$0xff]  }
  0x28   : > { %315 = vst.msk [vmem:[#allocation2 + $0x190] sm:$0xff] %vm264_vm3, %v7183_v52  ;;  %316 = vst.msk [vmem:[#allocation2 + $0x198] sm:$0xff] %vm264_vm3, %v7183_v52  ;;  %v7085_v2 = vld [vmem:[%s7236_s24 + $0x2e8] sm:$0xff]   ;;  %v7087_v4 = vld [vmem:[%s7236_s24 + $0x2f0] sm:$0xff]  }
  0x29   : > { %317 = vst.msk [vmem:[#allocation2 + $0x1a0] sm:$0xff] %vm264_vm3, %v7183_v52  ;;  %318 = vst.msk [vmem:[#allocation2 + $0x1a8] sm:$0xff] %vm264_vm3, %v7183_v52  ;;  %v7088_v5 = vld [vmem:[%s7236_s24 + $0xf8] sm:$0xff]   ;;  %v7090_v7 = vld [vmem:[%s7236_s24 + $0x100] sm:$0xff]  }
  0x2a   : > { %319 = vst.msk [vmem:[#allocation2 + $0x1b0] sm:$0xff] %vm264_vm3, %v7183_v52  ;;  %320 = vst.msk [vmem:[#allocation2 + $0x1b8] sm:$0xff] %vm264_vm3, %v7183_v52  ;;  %v7089_v6 = vld [vmem:[%s7236_s24 + $0x2f8] sm:$0xff]   ;;  %v7091_v8 = vld [vmem:[%s7236_s24 + $0x300] sm:$0xff]  }
  0x2b   : > { %6751 = vmatmul.mubr.msk.bf16.gmra.mrb[12].mxu0 %vm1688_vm2, %v7040_v20  ;;  %321 = vst.msk [vmem:[#allocation2 + $0x1c0] sm:$0xff] %vm264_vm3, %v7183_v52  ;;  %322 = vst.msk [vmem:[#allocation2 + $0x1c8] sm:$0xff] %vm264_vm3, %v7183_v52  ;;  %v7092_v9 = vld [vmem:[%s7236_s24 + $0x108] sm:$0xff]   ;;  %v7094_v11 = vld [vmem:[%s7236_s24 + $0x110] sm:$0xff]  }
  0x2c   : > { %6879 = vmatmul.mubr.msk.bf16.gmra.mrb[12].mxu1 %vm1688_vm2, %v7041_v21  ;;  %6754 = vmatprep.mubr.msk.bf16.mxu0 %vm1688_vm2, %v7042_v22  ;;  %323 = vst.msk [vmem:[#allocation2 + $0x1d0] sm:$0xff] %vm264_vm3, %v7183_v52  ;;  %324 = vst.msk [vmem:[#allocation2 + $0x1d8] sm:$0xff] %vm264_vm3, %v7183_v52  ;;  %v7093_v10 = vld [vmem:[%s7236_s24 + $0x308] sm:$0xff]   ;;  %v7095_v12 = vld [vmem:[%s7236_s24 + $0x310] sm:$0xff]  }
  0x2d   : > { %6882 = vmatprep.mubr.msk.bf16.mxu1 %vm1688_vm2, %v7043_v23  ;;  %325 = vst.msk [vmem:[#allocation2 + $0x1e0] sm:$0xff] %vm264_vm3, %v7183_v52  ;;  %326 = vst.msk [vmem:[#allocation2 + $0x1e8] sm:$0xff] %vm264_vm3, %v7183_v52  ;;  %v7096_v13 = vld [vmem:[%s7236_s24 + $0x118] sm:$0xff]   ;;  %v7098_v15 = vld [vmem:[%s7236_s24 + $0x120] sm:$0xff]  }
  0x2e   : > { %327 = vst.msk [vmem:[#allocation2 + $0x1f0] sm:$0xff] %vm264_vm3, %v7183_v52  ;;  %328 = vst.msk [vmem:[#allocation2 + $0x1f8] sm:$0xff] %vm264_vm3, %v7183_v52  ;;  %v7097_v14 = vld [vmem:[%s7236_s24 + $0x318] sm:$0xff]   ;;  %v7099_v16 = vld [vmem:[%s7236_s24 + $0x320] sm:$0xff]  }
  0x2f   : > { %329 = vst.msk [vmem:[#allocation2 + $0x200] sm:$0xff] %vm264_vm3, %v7183_v52  ;;  %330 = vst.msk [vmem:[#allocation2 + $0x208] sm:$0xff] %vm264_vm3, %v7183_v52  ;;  %v7100_v17 = vld [vmem:[%s7236_s24 + $0x128] sm:$0xff]   ;;  %v7102_v19 = vld [vmem:[%s7236_s24 + $0x130] sm:$0xff]  }
  0x30   : > { %331 = vst.msk [vmem:[#allocation2 + $0x210] sm:$0xff] %vm264_vm3, %v7183_v52  ;;  %332 = vst.msk [vmem:[#allocation2 + $0x218] sm:$0xff] %vm264_vm3, %v7183_v52  ;;  %v7101_v18 = vld [vmem:[%s7236_s24 + $0x328] sm:$0xff]   ;;  %v7103_v20 = vld [vmem:[%s7236_s24 + $0x330] sm:$0xff]  }
  0x31   : > { %333 = vst.msk [vmem:[#allocation2 + $0x220] sm:$0xff] %vm264_vm3, %v7183_v52  ;;  %334 = vst.msk [vmem:[#allocation2 + $0x228] sm:$0xff] %vm264_vm3, %v7183_v52  ;;  %v7104_v21 = vld [vmem:[%s7236_s24 + $0x138] sm:$0xff]   ;;  %v7106_v23 = vld [vmem:[%s7236_s24 + $0x140] sm:$0xff]  }
  0x32   : > { %335 = vst.msk [vmem:[#allocation2 + $0x230] sm:$0xff] %vm264_vm3, %v7183_v52  ;;  %336 = vst.msk [vmem:[#allocation2 + $0x238] sm:$0xff] %vm264_vm3, %v7183_v52  ;;  %v7105_v22 = vld [vmem:[%s7236_s24 + $0x338] sm:$0xff]  }
  0x33   : > { %6755 = vmatmul.mubr.msk.bf16.gmra.mrb[16].mxu0 %vm1688_vm2, %v7044_v24  ;;  %337 = vst.msk [vmem:[#allocation2 + $0x240] sm:$0xff] %vm264_vm3, %v7183_v52  ;;  %338 = vst.msk [vmem:[#allocation2 + $0x248] sm:$0xff] %vm264_vm3, %v7183_v52  ;;  %v7107_v24 = vld [vmem:[%s7236_s24 + $0x340] sm:$0xff]  }
  0x34   : > { %6883 = vmatmul.mubr.msk.bf16.gmra.mrb[16].mxu1 %vm1688_vm2, %v7045_v25  ;;  %6758 = vmatprep.mubr.msk.bf16.mxu0 %vm1688_vm2, %v7046_v26  ;;  %339 = vst.msk [vmem:[#allocation2 + $0x250] sm:$0xff] %vm264_vm3, %v7183_v52  ;;  %340 = vst.msk [vmem:[#allocation2 + $0x258] sm:$0xff] %vm264_vm3, %v7183_v52  ;;  %v7108_v25 = vld [vmem:[%s7236_s24 + $0x148] sm:$0xff]  }
  0x35   : > { %6886 = vmatprep.mubr.msk.bf16.mxu1 %vm1688_vm2, %v7047_v27  ;;  %341 = vst.msk [vmem:[#allocation2 + $0x260] sm:$0xff] %vm264_vm3, %v7183_v52  ;;  %342 = vst.msk [vmem:[#allocation2 + $0x268] sm:$0xff] %vm264_vm3, %v7183_v52  ;;  %v7109_v26 = vld [vmem:[%s7236_s24 + $0x348] sm:$0xff]   ;;  %v7110_v27 = vld [vmem:[%s7236_s24 + $0x150] sm:$0xff]  }
  0x36   : > { %343 = vst.msk [vmem:[#allocation2 + $0x270] sm:$0xff] %vm264_vm3, %v7183_v52  ;;  %344 = vst.msk [vmem:[#allocation2 + $0x278] sm:$0xff] %vm264_vm3, %v7183_v52 }
  0x37   : > { %345 = vst.msk [vmem:[#allocation2 + $0x280] sm:$0xff] %vm264_vm3, %v7183_v52  ;;  %346 = vst.msk [vmem:[#allocation2 + $0x288] sm:$0xff] %vm264_vm3, %v7183_v52 }
  0x38   : > { %347 = vst.msk [vmem:[#allocation2 + $0x290] sm:$0xff] %vm264_vm3, %v7183_v52  ;;  %348 = vst.msk [vmem:[#allocation2 + $0x298] sm:$0xff] %vm264_vm3, %v7183_v52 }
  0x39   : > { %349 = vst.msk [vmem:[#allocation2 + $0x2a0] sm:$0xff] %vm264_vm3, %v7183_v52  ;;  %350 = vst.msk [vmem:[#allocation2 + $0x2a8] sm:$0xff] %vm264_vm3, %v7183_v52 }
  0x3a   : > { %351 = vst.msk [vmem:[#allocation2 + $0x2b0] sm:$0xff] %vm264_vm3, %v7183_v52  ;;  %352 = vst.msk [vmem:[#allocation2 + $0x2b8] sm:$0xff] %vm264_vm3, %v7183_v52 }
  0x3b   : > { %6759 = vmatmul.mubr.msk.bf16.gmra.mrb[20].mxu0 %vm1688_vm2, %v7048_v28  ;;  %353 = vst.msk [vmem:[#allocation2 + $0x2c0] sm:$0xff] %vm264_vm3, %v7183_v52  ;;  %354 = vst.msk [vmem:[#allocation2 + $0x2c8] sm:$0xff] %vm264_vm3, %v7183_v52  ;;  %v7111_v28 = vld [vmem:[%s7236_s24 + $0x350] sm:$0xff]  }
  0x3c   : > { %6887 = vmatmul.mubr.msk.bf16.gmra.mrb[20].mxu1 %vm1688_vm2, %v7049_v29  ;;  %6762 = vmatprep.mubr.msk.bf16.mxu0 %vm1688_vm2, %v7050_v30  ;;  %355 = vst.msk [vmem:[#allocation2 + $0x2d0] sm:$0xff] %vm264_vm3, %v7183_v52  ;;  %356 = vst.msk [vmem:[#allocation2 + $0x2d8] sm:$0xff] %vm264_vm3, %v7183_v52  ;;  %v7112_v29 = vld [vmem:[%s7236_s24 + $0x158] sm:$0xff]  }
  0x3d   : > { %6890 = vmatprep.mubr.msk.bf16.mxu1 %vm1688_vm2, %v7051_v31  ;;  %357 = vst.msk [vmem:[#allocation2 + $0x2e0] sm:$0xff] %vm264_vm3, %v7183_v52  ;;  %358 = vst.msk [vmem:[#allocation2 + $0x2e8] sm:$0xff] %vm264_vm3, %v7183_v52  ;;  %v7113_v30 = vld [vmem:[%s7236_s24 + $0x358] sm:$0xff]   ;;  %v7114_v31 = vld [vmem:[%s7236_s24 + $0x160] sm:$0xff]  }
  0x3e   : > { %359 = vst.msk [vmem:[#allocation2 + $0x2f0] sm:$0xff] %vm264_vm3, %v7183_v52  ;;  %360 = vst.msk [vmem:[#allocation2 + $0x2f8] sm:$0xff] %vm264_vm3, %v7183_v52 }
  0x3f   : > { %361 = vst.msk [vmem:[#allocation2 + $0x300] sm:$0xff] %vm264_vm3, %v7183_v52  ;;  %362 = vst.msk [vmem:[#allocation2 + $0x308] sm:$0xff] %vm264_vm3, %v7183_v52 }
  0x40   : > { %363 = vst.msk [vmem:[#allocation2 + $0x310] sm:$0xff] %vm264_vm3, %v7183_v52  ;;  %364 = vst.msk [vmem:[#allocation2 + $0x318] sm:$0xff] %vm264_vm3, %v7183_v52 }
  0x41   : > { %365 = vst.msk [vmem:[#allocation2 + $0x320] sm:$0xff] %vm264_vm3, %v7183_v52  ;;  %366 = vst.msk [vmem:[#allocation2 + $0x328] sm:$0xff] %vm264_vm3, %v7183_v52 }
  0x42   : > { %367 = vst.msk [vmem:[#allocation2 + $0x330] sm:$0xff] %vm264_vm3, %v7183_v52  ;;  %368 = vst.msk [vmem:[#allocation2 + $0x338] sm:$0xff] %vm264_vm3, %v7183_v52 }
  0x43   : > { %6763 = vmatmul.mubr.msk.bf16.gmra.mrb[24].mxu0 %vm1688_vm2, %v7052_v32  ;;  %369 = vst.msk [vmem:[#allocation2 + $0x340] sm:$0xff] %vm264_vm3, %v7183_v52  ;;  %370 = vst.msk [vmem:[#allocation2 + $0x348] sm:$0xff] %vm264_vm3, %v7183_v52  ;;  %v7115_v32 = vld [vmem:[%s7236_s24 + $0x360] sm:$0xff]  }
  0x44   : > { %6891 = vmatmul.mubr.msk.bf16.gmra.mrb[24].mxu1 %vm1688_vm2, %v7053_v33  ;;  %6766 = vmatprep.mubr.msk.bf16.mxu0 %vm1688_vm2, %v7054_v34  ;;  %371 = vst.msk [vmem:[#allocation2 + $0x350] sm:$0xff] %vm264_vm3, %v7183_v52  ;;  %372 = vst.msk [vmem:[#allocation2 + $0x358] sm:$0xff] %vm264_vm3, %v7183_v52  ;;  %v7116_v33 = vld [vmem:[%s7236_s24 + $0x168] sm:$0xff]  }
  0x45   : > { %6894 = vmatprep.mubr.msk.bf16.mxu1 %vm1688_vm2, %v7055_v35  ;;  %373 = vst.msk [vmem:[#allocation2 + $0x360] sm:$0xff] %vm264_vm3, %v7183_v52  ;;  %374 = vst.msk [vmem:[#allocation2 + $0x368] sm:$0xff] %vm264_vm3, %v7183_v52  ;;  %v7117_v34 = vld [vmem:[%s7236_s24 + $0x368] sm:$0xff]   ;;  %v7118_v35 = vld [vmem:[%s7236_s24 + $0x170] sm:$0xff]  }
  0x46   : > { %375 = vst.msk [vmem:[#allocation2 + $0x370] sm:$0xff] %vm264_vm3, %v7183_v52  ;;  %376 = vst.msk [vmem:[#allocation2 + $0x378] sm:$0xff] %vm264_vm3, %v7183_v52 }
  0x47   : > { %377 = vst.msk [vmem:[#allocation2 + $0x380] sm:$0xff] %vm264_vm3, %v7183_v52  ;;  %378 = vst.msk [vmem:[#allocation2 + $0x388] sm:$0xff] %vm264_vm3, %v7183_v52 }
  0x48   : > { %379 = vst.msk [vmem:[#allocation2 + $0x390] sm:$0xff] %vm264_vm3, %v7183_v52  ;;  %380 = vst.msk [vmem:[#allocation2 + $0x398] sm:$0xff] %vm264_vm3, %v7183_v52 }
  0x49   : > { %381 = vst.msk [vmem:[#allocation2 + $0x3a0] sm:$0xff] %vm264_vm3, %v7183_v52  ;;  %382 = vst.msk [vmem:[#allocation2 + $0x3a8] sm:$0xff] %vm264_vm3, %v7183_v52 }
  0x4a   : > { %383 = vst.msk [vmem:[#allocation2 + $0x3b0] sm:$0xff] %vm264_vm3, %v7183_v52  ;;  %384 = vst.msk [vmem:[#allocation2 + $0x3b8] sm:$0xff] %vm264_vm3, %v7183_v52 }
  0x4b   : > { %6767 = vmatmul.mubr.msk.bf16.gmra.mrb[28].mxu0 %vm1688_vm2, %v7056_v36  ;;  %385 = vst.msk [vmem:[#allocation2 + $0x3c0] sm:$0xff] %vm264_vm3, %v7183_v52  ;;  %386 = vst.msk [vmem:[#allocation2 + $0x3c8] sm:$0xff] %vm264_vm3, %v7183_v52  ;;  %v7119_v36 = vld [vmem:[%s7236_s24 + $0x370] sm:$0xff]  }
  0x4c   : > { %6895 = vmatmul.mubr.msk.bf16.gmra.mrb[28].mxu1 %vm1688_vm2, %v7057_v37  ;;  %6770 = vmatprep.mubr.msk.bf16.mxu0 %vm1688_vm2, %v7058_v38  ;;  %387 = vst.msk [vmem:[#allocation2 + $0x3d0] sm:$0xff] %vm264_vm3, %v7183_v52  ;;  %388 = vst.msk [vmem:[#allocation2 + $0x3d8] sm:$0xff] %vm264_vm3, %v7183_v52  ;;  %v7120_v37 = vld [vmem:[%s7236_s24 + $0x178] sm:$0xff]  }
  0x4d   : > { %6898 = vmatprep.mubr.msk.bf16.mxu1 %vm1688_vm2, %v7059_v39  ;;  %389 = vst.msk [vmem:[#allocation2 + $0x3e0] sm:$0xff] %vm264_vm3, %v7183_v52  ;;  %390 = vst.msk [vmem:[#allocation2 + $0x3e8] sm:$0xff] %vm264_vm3, %v7183_v52  ;;  %v7121_v38 = vld [vmem:[%s7236_s24 + $0x378] sm:$0xff]   ;;  %v7122_v39 = vld [vmem:[%s7236_s24 + $0x180] sm:$0xff]  }
  0x4e   : > { %391 = vst.msk [vmem:[#allocation2 + $0x3f0] sm:$0xff] %vm264_vm3, %v7183_v52  ;;  %392 = vst.msk [vmem:[#allocation2 + $0x3f8] sm:$0xff] %vm264_vm3, %v7183_v52 }
  0x4f   : > { %393 = vst.msk [vmem:[#allocation2 + $0x400] sm:$0xff] %vm264_vm3, %v7183_v52  ;;  %394 = vst.msk [vmem:[#allocation2 + $0x408] sm:$0xff] %vm264_vm3, %v7183_v52 }
  0x50   : > { %395 = vst.msk [vmem:[#allocation2 + $0x410] sm:$0xff] %vm264_vm3, %v7183_v52  ;;  %396 = vst.msk [vmem:[#allocation2 + $0x418] sm:$0xff] %vm264_vm3, %v7183_v52 }
  0x51   : > { %397 = vst.msk [vmem:[#allocation2 + $0x420] sm:$0xff] %vm264_vm3, %v7183_v52  ;;  %398 = vst.msk [vmem:[#allocation2 + $0x428] sm:$0xff] %vm264_vm3, %v7183_v52 }
  0x52   : > { %399 = vst.msk [vmem:[#allocation2 + $0x430] sm:$0xff] %vm264_vm3, %v7183_v52  ;;  %400 = vst.msk [vmem:[#allocation2 + $0x438] sm:$0xff] %vm264_vm3, %v7183_v52 }
  0x53   : > { %6771 = vmatmul.mubr.msk.bf16.gmra.mrb[32].mxu0 %vm1688_vm2, %v7060_v40  ;;  %401 = vst.msk [vmem:[#allocation2 + $0x440] sm:$0xff] %vm264_vm3, %v7183_v52  ;;  %402 = vst.msk [vmem:[#allocation2 + $0x448] sm:$0xff] %vm264_vm3, %v7183_v52  ;;  %v7123_v40 = vld [vmem:[%s7236_s24 + $0x380] sm:$0xff]  }
  0x54   : > { %6899 = vmatmul.mubr.msk.bf16.gmra.mrb[32].mxu1 %vm1688_vm2, %v7061_v41  ;;  %6774 = vmatprep.mubr.msk.bf16.mxu0 %vm1688_vm2, %v7062_v42  ;;  %403 = vst.msk [vmem:[#allocation2 + $0x450] sm:$0xff] %vm264_vm3, %v7183_v52  ;;  %404 = vst.msk [vmem:[#allocation2 + $0x458] sm:$0xff] %vm264_vm3, %v7183_v52  ;;  %v7124_v41 = vld [vmem:[%s7236_s24 + $0x188] sm:$0xff]  }
  0x55   : > { %6902 = vmatprep.mubr.msk.bf16.mxu1 %vm1688_vm2, %v7063_v43  ;;  %405 = vst.msk [vmem:[#allocation2 + $0x460] sm:$0xff] %vm264_vm3, %v7183_v52  ;;  %406 = vst.msk [vmem:[#allocation2 + $0x468] sm:$0xff] %vm264_vm3, %v7183_v52  ;;  %v7125_v42 = vld [vmem:[%s7236_s24 + $0x388] sm:$0xff]   ;;  %v7126_v43 = vld [vmem:[%s7236_s24 + $0x190] sm:$0xff]  }
  0x56   : > { %407 = vst.msk [vmem:[#allocation2 + $0x470] sm:$0xff] %vm264_vm3, %v7183_v52  ;;  %408 = vst.msk [vmem:[#allocation2 + $0x478] sm:$0xff] %vm264_vm3, %v7183_v52 }
  0x57   : > { %409 = vst.msk [vmem:[#allocation2 + $0x480] sm:$0xff] %vm264_vm3, %v7183_v52  ;;  %410 = vst.msk [vmem:[#allocation2 + $0x488] sm:$0xff] %vm264_vm3, %v7183_v52 }
  0x58   : > { %411 = vst.msk [vmem:[#allocation2 + $0x490] sm:$0xff] %vm264_vm3, %v7183_v52  ;;  %412 = vst.msk [vmem:[#allocation2 + $0x498] sm:$0xff] %vm264_vm3, %v7183_v52 }
  0x59   : > { %413 = vst.msk [vmem:[#allocation2 + $0x4a0] sm:$0xff] %vm264_vm3, %v7183_v52  ;;  %414 = vst.msk [vmem:[#allocation2 + $0x4a8] sm:$0xff] %vm264_vm3, %v7183_v52 }
  0x5a   : > { %415 = vst.msk [vmem:[#allocation2 + $0x4b0] sm:$0xff] %vm264_vm3, %v7183_v52  ;;  %416 = vst.msk [vmem:[#allocation2 + $0x4b8] sm:$0xff] %vm264_vm3, %v7183_v52 }
  0x5b   : > { %6775 = vmatmul.mubr.msk.bf16.gmra.mrb[36].mxu0 %vm1688_vm2, %v7064_v44  ;;  %417 = vst.msk [vmem:[#allocation2 + $0x4c0] sm:$0xff] %vm264_vm3, %v7183_v52  ;;  %418 = vst.msk [vmem:[#allocation2 + $0x4c8] sm:$0xff] %vm264_vm3, %v7183_v52  ;;  %v7127_v44 = vld [vmem:[%s7236_s24 + $0x390] sm:$0xff]  }
  0x5c   : > { %6903 = vmatmul.mubr.msk.bf16.gmra.mrb[36].mxu1 %vm1688_vm2, %v7065_v45  ;;  %6778 = vmatprep.mubr.msk.bf16.mxu0 %vm1688_vm2, %v7066_v46  ;;  %419 = vst.msk [vmem:[#allocation2 + $0x4d0] sm:$0xff] %vm264_vm3, %v7183_v52  ;;  %420 = vst.msk [vmem:[#allocation2 + $0x4d8] sm:$0xff] %vm264_vm3, %v7183_v52  ;;  %v7128_v45 = vld [vmem:[%s7236_s24 + $0x198] sm:$0xff]  }
  0x5d   : > { %6906 = vmatprep.mubr.msk.bf16.mxu1 %vm1688_vm2, %v7067_v47  ;;  %421 = vst.msk [vmem:[#allocation2 + $0x4e0] sm:$0xff] %vm264_vm3, %v7183_v52  ;;  %422 = vst.msk [vmem:[#allocation2 + $0x4e8] sm:$0xff] %vm264_vm3, %v7183_v52  ;;  %v7129_v46 = vld [vmem:[%s7236_s24 + $0x398] sm:$0xff]   ;;  %v7130_v47 = vld [vmem:[%s7236_s24 + $0x1a0] sm:$0xff]  }
  0x5e   : > { %423 = vst.msk [vmem:[#allocation2 + $0x4f0] sm:$0xff] %vm264_vm3, %v7183_v52  ;;  %424 = vst.msk [vmem:[#allocation2 + $0x4f8] sm:$0xff] %vm264_vm3, %v7183_v52 }
  0x5f   : > { %425 = vst.msk [vmem:[#allocation2 + $0x500] sm:$0xff] %vm264_vm3, %v7183_v52  ;;  %426 = vst.msk [vmem:[#allocation2 + $0x508] sm:$0xff] %vm264_vm3, %v7183_v52 }
  0x60   : > { %427 = vst.msk [vmem:[#allocation2 + $0x510] sm:$0xff] %vm264_vm3, %v7183_v52  ;;  %428 = vst.msk [vmem:[#allocation2 + $0x518] sm:$0xff] %vm264_vm3, %v7183_v52 }
  0x61   : > { %429 = vst.msk [vmem:[#allocation2 + $0x520] sm:$0xff] %vm264_vm3, %v7183_v52  ;;  %430 = vst.msk [vmem:[#allocation2 + $0x528] sm:$0xff] %vm264_vm3, %v7183_v52 }
  0x62   : > { %431 = vst.msk [vmem:[#allocation2 + $0x530] sm:$0xff] %vm264_vm3, %v7183_v52  ;;  %432 = vst.msk [vmem:[#allocation2 + $0x538] sm:$0xff] %vm264_vm3, %v7183_v52 }
  0x63   : > { %433 = vst.msk [vmem:[#allocation2 + $0x540] sm:$0xff] %vm264_vm3, %v7183_v52  ;;  %434 = vst.msk [vmem:[#allocation2 + $0x548] sm:$0xff] %vm264_vm3, %v7183_v52  ;;  %6779 = vmatmul.mubr.msk.bf16.gmra.mrb[40].mxu0 %vm1688_vm2, %v7323_v48  ;;  %v7131_v48 = vld [vmem:[%s7236_s24 + $0x3a0] sm:$0xff]  }
  0x64   : > { %435 = vst.msk [vmem:[#allocation2 + $0x550] sm:$0xff] %vm264_vm3, %v7183_v52  ;;  %436 = vst.msk [vmem:[#allocation2 + $0x558] sm:$0xff] %vm264_vm3, %v7183_v52  ;;  %6907 = vmatmul.mubr.msk.bf16.gmra.mrb[40].mxu1 %vm1688_vm2, %v7326_v49  ;;  %6782 = vmatprep.mubr.msk.bf16.mxu0 %vm1688_vm2, %v7329_v50  ;;  %v7132_v49 = vld [vmem:[%s7236_s24 + $0x1a8] sm:$0xff]  }
  0x65   : > { %437 = vst.msk [vmem:[#allocation2 + $0x560] sm:$0xff] %vm264_vm3, %v7183_v52  ;;  %438 = vst.msk [vmem:[#allocation2 + $0x568] sm:$0xff] %vm264_vm3, %v7183_v52  ;;  %6910 = vmatprep.mubr.msk.bf16.mxu1 %vm1688_vm2, %v7332_v51  ;;  %v7133_v50 = vld [vmem:[%s7236_s24 + $0x3a8] sm:$0xff]   ;;  %v7134_v51 = vld [vmem:[%s7236_s24 + $0x1b0] sm:$0xff]  }
  0x66   : > { %439 = vst.msk [vmem:[#allocation2 + $0x570] sm:$0xff] %vm264_vm3, %v7183_v52  ;;  %440 = vst.msk [vmem:[#allocation2 + $0x578] sm:$0xff] %vm264_vm3, %v7183_v52 }
  0x67   : > { %441 = vst.msk [vmem:[#allocation2 + $0x580] sm:$0xff] %vm264_vm3, %v7183_v52  ;;  %442 = vst.msk [vmem:[#allocation2 + $0x588] sm:$0xff] %vm264_vm3, %v7183_v52 }
  0x68   : > { %443 = vst.msk [vmem:[#allocation2 + $0x590] sm:$0xff] %vm264_vm3, %v7183_v52  ;;  %444 = vst.msk [vmem:[#allocation2 + $0x598] sm:$0xff] %vm264_vm3, %v7183_v52 }
  0x69   : > { %445 = vst.msk [vmem:[#allocation2 + $0x5a0] sm:$0xff] %vm264_vm3, %v7183_v52  ;;  %446 = vst.msk [vmem:[#allocation2 + $0x5a8] sm:$0xff] %vm264_vm3, %v7183_v52 }
  0x6a   : > { %447 = vst.msk [vmem:[#allocation2 + $0x5b0] sm:$0xff] %vm264_vm3, %v7183_v52  ;;  %448 = vst.msk [vmem:[#allocation2 + $0x5b8] sm:$0xff] %vm264_vm3, %v7183_v52 }
  0x6b   : > { %449 = vst.msk [vmem:[#allocation2 + $0x5c0] sm:$0xff] %vm264_vm3, %v7183_v52  ;;  %450 = vst.msk [vmem:[#allocation2 + $0x5c8] sm:$0xff] %vm264_vm3, %v7183_v52  ;;  %6783 = vmatmul.mubr.msk.bf16.gmra.mrb[44].mxu0 %vm1688_vm2, %v7072_v53  ;;  %v523_v53 = vld [vmem:[#allocation2 + $0x10] sm:$0xff] }
  0x6c   : > { %451 = vst.msk [vmem:[#allocation2 + $0x5d0] sm:$0xff] %vm264_vm3, %v7183_v52  ;;  %452 = vst.msk [vmem:[#allocation2 + $0x5d8] sm:$0xff] %vm264_vm3, %v7183_v52  ;;  %6911 = vmatmul.mubr.msk.bf16.gmra.mrb[44].mxu1 %vm1688_vm2, %v7073_v54  ;;  %6786 = vmatprep.mubr.msk.bf16.mxu0 %vm1688_vm2, %v7074_v55  ;;  %v651_v54 = vld [vmem:[#allocation2 + $0x410] sm:$0xff]  ;;  %v521_v55 = vld [vmem:[#allocation2] sm:$0xff] }
  0x6d   : > { %453 = vst.msk [vmem:[#allocation2 + $0x5e0] sm:$0xff] %vm264_vm3, %v7183_v52  ;;  %454 = vst.msk [vmem:[#allocation2 + $0x5e8] sm:$0xff] %vm264_vm3, %v7183_v52  ;;  %6914 = vmatprep.mubr.msk.bf16.mxu1 %vm1688_vm2, %v7075_v56 }
  0x6e   : > { %455 = vst.msk [vmem:[#allocation2 + $0x5f0] sm:$0xff] %vm264_vm3, %v7183_v52  ;;  %456 = vst.msk [vmem:[#allocation2 + $0x5f8] sm:$0xff] %vm264_vm3, %v7183_v52 }
  0x6f   : > { %457 = vst.msk [vmem:[#allocation2 + $0x600] sm:$0xff] %vm264_vm3, %v7183_v52  ;;  %458 = vst.msk [vmem:[#allocation2 + $0x608] sm:$0xff] %vm264_vm3, %v7183_v52 }
  0x70   : > { %459 = vst.msk [vmem:[#allocation2 + $0x610] sm:$0xff] %vm264_vm3, %v7183_v52  ;;  %460 = vst.msk [vmem:[#allocation2 + $0x618] sm:$0xff] %vm264_vm3, %v7183_v52 }
  0x71   : > { %461 = vst.msk [vmem:[#allocation2 + $0x620] sm:$0xff] %vm264_vm3, %v7183_v52  ;;  %462 = vst.msk [vmem:[#allocation2 + $0x628] sm:$0xff] %vm264_vm3, %v7183_v52 }
  0x72   : > { %463 = vst.msk [vmem:[#allocation2 + $0x630] sm:$0xff] %vm264_vm3, %v7183_v52  ;;  %464 = vst.msk [vmem:[#allocation2 + $0x638] sm:$0xff] %vm264_vm3, %v7183_v52 }
  0x73   : > { %465 = vst.msk [vmem:[#allocation2 + $0x640] sm:$0xff] %vm264_vm3, %v7183_v52  ;;  %466 = vst.msk [vmem:[#allocation2 + $0x648] sm:$0xff] %vm264_vm3, %v7183_v52  ;;  %6787 = vmatmul.mubr.msk.bf16.gmra.mrb[48].mxu0 %vm1688_vm2, %v7076_v57  ;;  %v649_v57 = vld [vmem:[#allocation2 + $0x400] sm:$0xff] }
  0x74   : > { %467 = vst.msk [vmem:[#allocation2 + $0x650] sm:$0xff] %vm264_vm3, %v7183_v52  ;;  %468 = vst.msk [vmem:[#allocation2 + $0x658] sm:$0xff] %vm264_vm3, %v7183_v52  ;;  %6915 = vmatmul.mubr.msk.bf16.gmra.mrb[48].mxu1 %vm1688_vm2, %v7077_v58  ;;  %6790 = vmatprep.mubr.msk.bf16.mxu0 %vm1688_vm2, %v7078_v59  ;;  %v524_v58 = vld [vmem:[#allocation2 + $0x18] sm:$0xff] }
  0x75   : > { %469 = vst.msk [vmem:[#allocation2 + $0x660] sm:$0xff] %vm264_vm3, %v7183_v52  ;;  %470 = vst.msk [vmem:[#allocation2 + $0x668] sm:$0xff] %vm264_vm3, %v7183_v52  ;;  %6918 = vmatprep.mubr.msk.bf16.mxu1 %vm1688_vm2, %v7079_v60 }
  0x76   : > { %471 = vst.msk [vmem:[#allocation2 + $0x670] sm:$0xff] %vm264_vm3, %v7183_v52  ;;  %472 = vst.msk [vmem:[#allocation2 + $0x678] sm:$0xff] %vm264_vm3, %v7183_v52 }
  0x77   : > { %473 = vst.msk [vmem:[#allocation2 + $0x680] sm:$0xff] %vm264_vm3, %v7183_v52  ;;  %474 = vst.msk [vmem:[#allocation2 + $0x688] sm:$0xff] %vm264_vm3, %v7183_v52 }
  0x78   : > { %475 = vst.msk [vmem:[#allocation2 + $0x690] sm:$0xff] %vm264_vm3, %v7183_v52  ;;  %476 = vst.msk [vmem:[#allocation2 + $0x698] sm:$0xff] %vm264_vm3, %v7183_v52 }
  0x79   : > { %477 = vst.msk [vmem:[#allocation2 + $0x6a0] sm:$0xff] %vm264_vm3, %v7183_v52  ;;  %478 = vst.msk [vmem:[#allocation2 + $0x6a8] sm:$0xff] %vm264_vm3, %v7183_v52 }
  0x7a   : > { %479 = vst.msk [vmem:[#allocation2 + $0x6b0] sm:$0xff] %vm264_vm3, %v7183_v52  ;;  %480 = vst.msk [vmem:[#allocation2 + $0x6b8] sm:$0xff] %vm264_vm3, %v7183_v52 }
  0x7b   : > { %481 = vst.msk [vmem:[#allocation2 + $0x6c0] sm:$0xff] %vm264_vm3, %v7183_v52  ;;  %482 = vst.msk [vmem:[#allocation2 + $0x6c8] sm:$0xff] %vm264_vm3, %v7183_v52  ;;  %6791 = vmatmul.mubr.msk.bf16.gmra.mrb[52].mxu0 %vm1688_vm2, %v7080_v61 }
  0x7c   : > { %483 = vst.msk [vmem:[#allocation2 + $0x6d0] sm:$0xff] %vm264_vm3, %v7183_v52  ;;  %484 = vst.msk [vmem:[#allocation2 + $0x6d8] sm:$0xff] %vm264_vm3, %v7183_v52  ;;  %6919 = vmatmul.mubr.msk.bf16.gmra.mrb[52].mxu1 %vm1688_vm2, %v7081_v62  ;;  %6794 = vmatprep.mubr.msk.bf16.mxu0 %vm1688_vm2, %v7082_v63  ;;  %v652_v62 = vld [vmem:[#allocation2 + $0x418] sm:$0xff]  ;;  %v522_v63 = vld [vmem:[#allocation2 + $0x8] sm:$0xff] }
  0x7d   : > { %485 = vst.msk [vmem:[#allocation2 + $0x6e0] sm:$0xff] %vm264_vm3, %v7183_v52  ;;  %486 = vst.msk [vmem:[#allocation2 + $0x6e8] sm:$0xff] %vm264_vm3, %v7183_v52  ;;  %6922 = vmatprep.mubr.msk.bf16.mxu1 %vm1688_vm2, %v7083_v0  ;;  %v7136_v0 = vld [vmem:[%s7236_s24 + $0x1b8] sm:$0xff]  }
  0x7e   : > { %487 = vst.msk [vmem:[#allocation2 + $0x6f0] sm:$0xff] %vm264_vm3, %v7183_v52  ;;  %488 = vst.msk [vmem:[#allocation2 + $0x6f8] sm:$0xff] %vm264_vm3, %v7183_v52 }
  0x7f   : > { %489 = vst.msk [vmem:[#allocation2 + $0x700] sm:$0xff] %vm264_vm3, %v7183_v52  ;;  %490 = vst.msk [vmem:[#allocation2 + $0x708] sm:$0xff] %vm264_vm3, %v7183_v52 }
  0x80   : > { %491 = vst.msk [vmem:[#allocation2 + $0x710] sm:$0xff] %vm264_vm3, %v7183_v52  ;;  %492 = vst.msk [vmem:[#allocation2 + $0x718] sm:$0xff] %vm264_vm3, %v7183_v52 }
  0x81   : > { %493 = vst.msk [vmem:[#allocation2 + $0x720] sm:$0xff] %vm264_vm3, %v7183_v52  ;;  %494 = vst.msk [vmem:[#allocation2 + $0x728] sm:$0xff] %vm264_vm3, %v7183_v52 }
  0x82   : > { %495 = vst.msk [vmem:[#allocation2 + $0x730] sm:$0xff] %vm264_vm3, %v7183_v52  ;;  %496 = vst.msk [vmem:[#allocation2 + $0x738] sm:$0xff] %vm264_vm3, %v7183_v52 }
  0x83   : > { %497 = vst.msk [vmem:[#allocation2 + $0x740] sm:$0xff] %vm264_vm3, %v7183_v52  ;;  %498 = vst.msk [vmem:[#allocation2 + $0x748] sm:$0xff] %vm264_vm3, %v7183_v52  ;;  %6795 = vmatmul.mubr.msk.bf16.gmra.mrb[56].mxu0 %vm1688_vm2, %v7084_v1 }
  0x84   : > { %499 = vst.msk [vmem:[#allocation2 + $0x750] sm:$0xff] %vm264_vm3, %v7183_v52  ;;  %500 = vst.msk [vmem:[#allocation2 + $0x758] sm:$0xff] %vm264_vm3, %v7183_v52  ;;  %6923 = vmatmul.mubr.msk.bf16.gmra.mrb[56].mxu1 %vm1688_vm2, %v7085_v2  ;;  %6798 = vmatprep.mubr.msk.bf16.mxu0 %vm1688_vm2, %v7086_v3 }
  0x85   : > { %501 = vst.msk [vmem:[#allocation2 + $0x760] sm:$0xff] %vm264_vm3, %v7183_v52  ;;  %502 = vst.msk [vmem:[#allocation2 + $0x768] sm:$0xff] %vm264_vm3, %v7183_v52  ;;  %6926 = vmatprep.mubr.msk.bf16.mxu1 %vm1688_vm2, %v7087_v4 }
  0x86   : > { %503 = vst.msk [vmem:[#allocation2 + $0x770] sm:$0xff] %vm264_vm3, %v7183_v52  ;;  %504 = vst.msk [vmem:[#allocation2 + $0x778] sm:$0xff] %vm264_vm3, %v7183_v52 }
  0x87   : > { %505 = vst.msk [vmem:[#allocation2 + $0x780] sm:$0xff] %vm264_vm3, %v7183_v52  ;;  %506 = vst.msk [vmem:[#allocation2 + $0x788] sm:$0xff] %vm264_vm3, %v7183_v52 }
  0x88   : > { %507 = vst.msk [vmem:[#allocation2 + $0x790] sm:$0xff] %vm264_vm3, %v7183_v52  ;;  %508 = vst.msk [vmem:[#allocation2 + $0x798] sm:$0xff] %vm264_vm3, %v7183_v52 }
  0x89   : > { %509 = vst.msk [vmem:[#allocation2 + $0x7a0] sm:$0xff] %vm264_vm3, %v7183_v52  ;;  %510 = vst.msk [vmem:[#allocation2 + $0x7a8] sm:$0xff] %vm264_vm3, %v7183_v52 }
  0x8a   : > { %511 = vst.msk [vmem:[#allocation2 + $0x7b0] sm:$0xff] %vm264_vm3, %v7183_v52  ;;  %512 = vst.msk [vmem:[#allocation2 + $0x7b8] sm:$0xff] %vm264_vm3, %v7183_v52 }
  0x8b   : > { %513 = vst.msk [vmem:[#allocation2 + $0x7c0] sm:$0xff] %vm264_vm3, %v7183_v52  ;;  %514 = vst.msk [vmem:[#allocation2 + $0x7c8] sm:$0xff] %vm264_vm3, %v7183_v52  ;;  %6799 = vmatmul.mubr.msk.bf16.gmra.mrb[60].mxu0 %vm1688_vm2, %v7088_v5  ;;  %v650_v5 = vld [vmem:[#allocation2 + $0x408] sm:$0xff] }
  0x8c   : > { %515 = vst.msk [vmem:[#allocation2 + $0x7d0] sm:$0xff] %vm264_vm3, %v7183_v52  ;;  %516 = vst.msk [vmem:[#allocation2 + $0x7d8] sm:$0xff] %vm264_vm3, %v7183_v52  ;;  %6927 = vmatmul.mubr.msk.bf16.gmra.mrb[60].mxu1 %vm1688_vm2, %v7089_v6  ;;  %6802 = vmatprep.mubr.msk.bf16.mxu0 %vm1688_vm2, %v7090_v7  ;;  %v7137_v6 = vld [vmem:[%s7236_s24 + $0x3b8] sm:$0xff]   ;;  %v7138_v7 = vld [vmem:[%s7236_s24 + $0x1c0] sm:$0xff]  }
  0x8d   : > { %517 = vst.msk [vmem:[#allocation2 + $0x7e0] sm:$0xff] %vm264_vm3, %v7183_v52  ;;  %518 = vst.msk [vmem:[#allocation2 + $0x7e8] sm:$0xff] %vm264_vm3, %v7183_v52  ;;  %6930 = vmatprep.mubr.msk.bf16.mxu1 %vm1688_vm2, %v7091_v8 }
  0x8e   : > { %519 = vst.msk [vmem:[#allocation2 + $0x7f0] sm:$0xff] %vm264_vm3, %v7183_v52  ;;  %520 = vst.msk [vmem:[#allocation2 + $0x7f8] sm:$0xff] %vm264_vm3, %v7183_v52  ;;  %v7135_v52 = vld [vmem:[%s7236_s24 + $0x3b0] sm:$0xff]  }
  0x93   : > { %6803 = vmatmul.mubr.msk.bf16.gmra.mrb[64].mxu0 %vm1688_vm2, %v7092_v9 }
  0x94   : > { %6931 = vmatmul.mubr.msk.bf16.gmra.mrb[64].mxu1 %vm1688_vm2, %v7093_v10  ;;  %6806 = vmatprep.mubr.msk.bf16.mxu0 %vm1688_vm2, %v7094_v11 }
  0x95   : > { %6934 = vmatprep.mubr.msk.bf16.mxu1 %vm1688_vm2, %v7095_v12  ;;  %v7139_v12 = vld [vmem:[%s7236_s24 + $0x3c0] sm:$0xff]  }
  0x9b   : > { %6807 = vmatmul.mubr.msk.bf16.gmra.mrb[68].mxu0 %vm1688_vm2, %v7096_v13 }
  0x9c   : > { %6935 = vmatmul.mubr.msk.bf16.gmra.mrb[68].mxu1 %vm1688_vm2, %v7097_v14  ;;  %6810 = vmatprep.mubr.msk.bf16.mxu0 %vm1688_vm2, %v7098_v15 }
  0x9d   : > { %6938 = vmatprep.mubr.msk.bf16.mxu1 %vm1688_vm2, %v7099_v16 }
  0xa3   : > { %6811 = vmatmul.mubr.msk.bf16.gmra.mrb[72].mxu0 %vm1688_vm2, %v7100_v17  ;;  %v527_v17 = vld [vmem:[#allocation2 + $0x30] sm:$0xff] }
  0xa4   : > { %6939 = vmatmul.mubr.msk.bf16.gmra.mrb[72].mxu1 %vm1688_vm2, %v7101_v18  ;;  %6814 = vmatprep.mubr.msk.bf16.mxu0 %vm1688_vm2, %v7102_v19  ;;  %v7999_v18 = vld [vmem:[%s9085_s2] ss:$0 sm:$0xff]  ;;  %v655_v19 = vld [vmem:[#allocation2 + $0x430] sm:$0xff] }
  0xa5   : > { %6942 = vmatprep.mubr.msk.bf16.mxu1 %vm1688_vm2, %v7103_v20  ;;  %v525_v20 = vld [vmem:[#allocation2 + $0x20] sm:$0xff] }
  0xab   : > { %6815 = vmatmul.mubr.msk.bf16.gmra.mrb[76].mxu0 %vm1688_vm2, %v7104_v21 }
  0xac   : > { %6943 = vmatmul.mubr.msk.bf16.gmra.mrb[76].mxu1 %vm1688_vm2, %v7105_v22  ;;  %6818 = vmatprep.mubr.msk.bf16.mxu0 %vm1688_vm2, %v7106_v23  ;;  %v653_v22 = vld [vmem:[#allocation2 + $0x420] sm:$0xff]  ;;  %v528_v23 = vld [vmem:[#allocation2 + $0x38] sm:$0xff] }
  0xad   : > { %6946 = vmatprep.mubr.msk.bf16.mxu1 %vm1688_vm2, %v7107_v24  ;;  %v656_v24 = vld [vmem:[#allocation2 + $0x438] sm:$0xff] }
  0xb3   : > { %6819 = vmatmul.mubr.msk.bf16.gmra.mrb[80].mxu0 %vm1688_vm2, %v7108_v25 }
  0xb4   : > { %6947 = vmatmul.mubr.msk.bf16.gmra.mrb[80].mxu1 %vm1688_vm2, %v7109_v26  ;;  %6822 = vmatprep.mubr.msk.bf16.mxu0 %vm1688_vm2, %v7110_v27 }
  0xb5   : > { %6950 = vmatprep.mubr.msk.bf16.mxu1 %vm1688_vm2, %v7111_v28  ;;  %v526_v28 = vld [vmem:[#allocation2 + $0x28] sm:$0xff] }
  0xbb   : > { %6823 = vmatmul.mubr.msk.bf16.gmra.mrb[84].mxu0 %vm1688_vm2, %v7112_v29  ;;  %v654_v29 = vld [vmem:[#allocation2 + $0x428] sm:$0xff] }
  0xbc   : > { %6951 = vmatmul.mubr.msk.bf16.gmra.mrb[84].mxu1 %vm1688_vm2, %v7113_v30  ;;  %6826 = vmatprep.mubr.msk.bf16.mxu0 %vm1688_vm2, %v7114_v31  ;;  %v7140_v30 = vld [vmem:[%s7236_s24 + $0x1c8] sm:$0xff]  }
  0xbd   : > { %6954 = vmatprep.mubr.msk.bf16.mxu1 %vm1688_vm2, %v7115_v32 }
  0xc3   : > { %6827 = vmatmul.mubr.msk.bf16.gmra.mrb[88].mxu0 %vm1688_vm2, %v7116_v33 }
  0xc4   : > { %6955 = vmatmul.mubr.msk.bf16.gmra.mrb[88].mxu1 %vm1688_vm2, %v7117_v34  ;;  %6830 = vmatprep.mubr.msk.bf16.mxu0 %vm1688_vm2, %v7118_v35 }
  0xc5   : > { %6958 = vmatprep.mubr.msk.bf16.mxu1 %vm1688_vm2, %v7119_v36  ;;  %v7141_v36 = vld [vmem:[%s7236_s24 + $0x3c8] sm:$0xff]  }
  0xcb   : > { %6831 = vmatmul.mubr.msk.bf16.gmra.mrb[92].mxu0 %vm1688_vm2, %v7120_v37  ;;  %v7142_v37 = vld [vmem:[%s7236_s24 + $0x1d0] sm:$0xff]  }
  0xcc   : > { %6959 = vmatmul.mubr.msk.bf16.gmra.mrb[92].mxu1 %vm1688_vm2, %v7121_v38  ;;  %6834 = vmatprep.mubr.msk.bf16.mxu0 %vm1688_vm2, %v7122_v39 }
  0xcd   : > { %6962 = vmatprep.mubr.msk.bf16.mxu1 %vm1688_vm2, %v7123_v40 }
  0xd3   : > { %6835 = vmatmul.mubr.msk.bf16.gmra.mrb[96].mxu0 %vm1688_vm2, %v7124_v41 }
  0xd4   : > { %6963 = vmatmul.mubr.msk.bf16.gmra.mrb[96].mxu1 %vm1688_vm2, %v7125_v42  ;;  %6838 = vmatprep.mubr.msk.bf16.mxu0 %vm1688_vm2, %v7126_v43 }
  0xd5   : > { %6966 = vmatprep.mubr.msk.bf16.mxu1 %vm1688_vm2, %v7127_v44 }
  0xdb   : > { %6839 = vmatmul.mubr.msk.bf16.gmra.mrb[100].mxu0 %vm1688_vm2, %v7128_v45  ;;  %v7143_v45 = vld [vmem:[%s7236_s24 + $0x3d0] sm:$0xff]  }
  0xdc   : > { %6967 = vmatmul.mubr.msk.bf16.gmra.mrb[100].mxu1 %vm1688_vm2, %v7129_v46  ;;  %6842 = vmatprep.mubr.msk.bf16.mxu0 %vm1688_vm2, %v7130_v47 }
  0xdd   : > { %6970 = vmatprep.mubr.msk.bf16.mxu1 %vm1688_vm2, %v7131_v48 }
  0xe3   : > { %6843 = vmatmul.mubr.msk.bf16.gmra.mrb[104].mxu0 %vm1688_vm2, %v7132_v49 }
  0xe4   : > { %6971 = vmatmul.mubr.msk.bf16.gmra.mrb[104].mxu1 %vm1688_vm2, %v7133_v50  ;;  %6846 = vmatprep.mubr.msk.bf16.mxu0 %vm1688_vm2, %v7134_v51 }
  0xe5   : > { %6974 = vmatprep.mubr.msk.bf16.mxu1 %vm1688_vm2, %v7135_v52 }
  0xe6   : > { %v6740_v56 = vpop.f32.mrb[0].mxu0 }
  0xe7   : > { %v3139_v59 = vadd.f32 %v6740_v56, %v523_v53  ;;  %v6868_v60 = vpop.f32.mrb[0].mxu1  ;;  %v2114_v61 = vpop.f32.mrb[1].mxu0 }
  0xe8   : > { %v3267_v1 = vadd.f32 %v6868_v60, %v651_v54  ;;  %v3137_v2 = vadd.f32 %v2114_v61, %v521_v55  ;;  %v2626_v3 = vpop.f32.mrb[1].mxu1  ;;  %v6741_v4 = vpop.f32.mrb[2].mxu0 }
  0xe9   : > { %3396 = vst.msk [vmem:[#allocation2 + $0x10] sm:$0xff] %vm264_vm3, %v3139_v59  ;;  %v3265_v8 = vadd.f32 %v2626_v3, %v649_v57  ;;  %v3140_v9 = vadd.f32 %v6741_v4, %v524_v58  ;;  %v6869_v10 = vpop.f32.mrb[2].mxu1  ;;  %v2117_v11 = vpop.f32.mrb[3].mxu0 }
  0xea   : > { %3524 = vst.msk [vmem:[#allocation2 + $0x410] sm:$0xff] %vm264_vm3, %v3267_v1  ;;  %3394 = vst.msk [vmem:[#allocation2] sm:$0xff] %vm264_vm3, %v3137_v2  ;;  %v3268_v13 = vadd.f32 %v6869_v10, %v652_v62  ;;  %v3138_v14 = vadd.f32 %v2117_v11, %v522_v63  ;;  %v2629_v15 = vpop.f32.mrb[3].mxu1 }
  0xeb   : > { %3522 = vst.msk [vmem:[#allocation2 + $0x400] sm:$0xff] %vm264_vm3, %v3265_v8  ;;  %3397 = vst.msk [vmem:[#allocation2 + $0x18] sm:$0xff] %vm264_vm3, %v3140_v9  ;;  %v3266_v16 = vadd.f32 %v2629_v15, %v650_v5  ;;  %6847 = vmatmul.mubr.msk.bf16.gmra.mrb[108].mxu0 %vm1688_vm2, %v7136_v0  ;;  %v531_v0 = vld [vmem:[#allocation2 + $0x50] sm:$0xff] }
  0xec   : > { %3525 = vst.msk [vmem:[#allocation2 + $0x418] sm:$0xff] %vm264_vm3, %v3268_v13  ;;  %3395 = vst.msk [vmem:[#allocation2 + $0x8] sm:$0xff] %vm264_vm3, %v3138_v14  ;;  %6975 = vmatmul.mubr.msk.bf16.gmra.mrb[108].mxu1 %vm1688_vm2, %v7137_v6  ;;  %6850 = vmatprep.mubr.msk.bf16.mxu0 %vm1688_vm2, %v7138_v7  ;;  %v659_v5 = vld [vmem:[#allocation2 + $0x450] sm:$0xff]  ;;  %v529_v6 = vld [vmem:[#allocation2 + $0x40] sm:$0xff] }
  0xed   : > { %3523 = vst.msk [vmem:[#allocation2 + $0x408] sm:$0xff] %vm264_vm3, %v3266_v16  ;;  %6978 = vmatprep.mubr.msk.bf16.mxu1 %vm1688_vm2, %v7139_v12  ;;  %v657_v12 = vld [vmem:[#allocation2 + $0x440] sm:$0xff]  ;;  %v532_v13 = vld [vmem:[#allocation2 + $0x58] sm:$0xff] }
  0xee   : > { %v6744_v21 = vpop.f32.mrb[4].mxu0  ;;  %v660_v14 = vld [vmem:[#allocation2 + $0x458] sm:$0xff] }
  0xef   : > { %v3143_v25 = vadd.f32 %v6744_v21, %v527_v17  ;;  %v6872_v26 = vpop.f32.mrb[4].mxu1  ;;  %v2130_v27 = vpop.f32.mrb[5].mxu0 }
  0xf0   : > { %v3655_v31 = vld [vmem:[#allocation2 + $0x10] sm:$0xff]  ;;  %v3271_v32 = vadd.f32 %v6872_v26, %v655_v19  ;;  %v3141_v33 = vadd.f32 %v2130_v27, %v525_v20  ;;  %v2642_v34 = vpop.f32.mrb[5].mxu1  ;;  %v6745_v35 = vpop.f32.mrb[6].mxu0 }
  0xf1   : > { %v3918_v38 = vadd.f32 %v7999_v18, %v3655_v31  ;;  %v3783_v39 = vld [vmem:[#allocation2 + $0x410] sm:$0xff]  ;;  %v3653_v40 = vld [vmem:[#allocation2] sm:$0xff]  ;;  %3400 = vst.msk [vmem:[#allocation2 + $0x30] sm:$0xff] %vm264_vm3, %v3143_v25  ;;  %v3269_v41 = vadd.f32 %v2642_v34, %v653_v22  ;;  %v3144_v42 = vadd.f32 %v6745_v35, %v528_v23  ;;  %v6873_v43 = vpop.f32.mrb[6].mxu1  ;;  %v2133_v44 = vpop.f32.mrb[7].mxu0  ;;  %v530_v22 = vld [vmem:[#allocation2 + $0x48] sm:$0xff] }
  0xf2   : > { %v4046_v46 = vadd.f32 %v7999_v18, %v3783_v39  ;;  %v3916_v47 = vadd.f32 %v7999_v18, %v3653_v40  ;;  %v3781_v48 = vld [vmem:[#allocation2 + $0x400] sm:$0xff]  ;;  %v3656_v49 = vld [vmem:[#allocation2 + $0x18] sm:$0xff]  ;;  %3528 = vst.msk [vmem:[#allocation2 + $0x430] sm:$0xff] %vm264_vm3, %v3271_v32  ;;  %3398 = vst.msk [vmem:[#allocation2 + $0x20] sm:$0xff] %vm264_vm3, %v3141_v33  ;;  %v3272_v50 = vadd.f32 %v6873_v43, %v656_v24  ;;  %v2645_v52 = vpop.f32.mrb[7].mxu1 }
  0xf3   : > { %v3142_v51 = vadd.f32 %v2133_v44, %v526_v28  ;;  %v4174_v53 = vmax.f32 %v3918_v38, 0.0  ;;  %v4044_v54 = vadd.f32 %v7999_v18, %v3781_v48  ;;  %v3919_v55 = vadd.f32 %v7999_v18, %v3656_v49  ;;  %v3784_v56 = vld [vmem:[#allocation2 + $0x418] sm:$0xff]  ;;  %v3654_v57 = vld [vmem:[#allocation2 + $0x8] sm:$0xff]  ;;  %3526 = vst.msk [vmem:[#allocation2 + $0x420] sm:$0xff] %vm264_vm3, %v3269_v41  ;;  %3401 = vst.msk [vmem:[#allocation2 + $0x38] sm:$0xff] %vm264_vm3, %v3144_v42 }
  0xf4   : > { %v3270_v58 = vadd.f32 %v2645_v52, %v654_v29  ;;  %6851 = vmatmul.mubr.msk.bf16.gmra.mrb[112].mxu0 %vm1688_vm2, %v7140_v30  ;;  %v4302_v59 = vmax.f32 %v4046_v46, 0.0  ;;  %v4172_v60 = vmax.f32 %v3916_v47, 0.0  ;;  %v4047_v61 = vadd.f32 %v7999_v18, %v3784_v56  ;;  %v3782_v63 = vld [vmem:[#allocation2 + $0x408] sm:$0xff]  ;;  %3529 = vst.msk [vmem:[#allocation2 + $0x438] sm:$0xff] %vm264_vm3, %v3272_v50  ;;  %6979 = vmatmul.mubr.msk.bf16.gmra.mrb[112].mxu1 %vm1688_vm2, %v7141_v36  ;;  %v7144_v24 = vld [vmem:[%s7236_s24 + $0x1d8] sm:$0xff]   ;;  %v7146_v33 = vld [vmem:[%s7236_s24 + $0x1e0] sm:$0xff]  }
  0xf5   : > { %v3917_v62 = vadd.f32 %v7999_v18, %v3654_v57  ;;  %3399 = vst.msk [vmem:[#allocation2 + $0x28] sm:$0xff] %vm264_vm3, %v3142_v51  ;;  %6854 = vmatprep.mubr.msk.bf16.mxu0 %vm1688_vm2, %v7142_v37  ;;  %v6350_v1 = vpack.c.bf16 %v4174_v53, %v4174_v53  ;;  %v4300_v2 = vmax.f32 %v4044_v54, 0.0  ;;  %v4175_v3 = vmax.f32 %v3919_v55, 0.0  ;;  %6982 = vmatprep.mubr.msk.bf16.mxu1 %vm1688_vm2, %v7143_v45  ;;  %v658_v23 = vld [vmem:[#allocation2 + $0x448] sm:$0xff]  ;;  %v7145_v32 = vld [vmem:[%s7236_s24 + $0x3d8] sm:$0xff]   ;;  %v7147_v42 = vld [vmem:[%s7236_s24 + $0x3e0] sm:$0xff]  }
  0xf6   : > { %v4045_v4 = vadd.f32 %v7999_v18, %v3782_v63  ;;  %3527 = vst.msk [vmem:[#allocation2 + $0x428] sm:$0xff] %vm264_vm3, %v3270_v58  ;;  %v6478_v7 = vpack.c.bf16 %v4302_v59, %v4302_v59  ;;  %v6348_v8 = vpack.c.bf16 %v4172_v60, %v4172_v60  ;;  %v4303_v9 = vmax.f32 %v4047_v61, 0.0  ;;  %v6748_v11 = vpop.f32.mrb[8].mxu0  ;;  %v535_v61 = vld [vmem:[#allocation2 + $0x70] sm:$0xff] }
  0xf7   : > { %v4173_v10 = vmax.f32 %v3917_v62, 0.0  ;;  %5455 = vst.msk [vmem:[%s8023_s29 + $0x8] sm:$0xf] %vm5452_vm4, %v6350_v1  ;;  %v6476_v15 = vpack.c.bf16 %v4300_v2, %v4300_v2  ;;  %v6351_v16 = vpack.c.bf16 %v4175_v3, %v4175_v3  ;;  %v3147_v19 = vadd.f32 %v6748_v11, %v531_v0  ;;  %v6876_v20 = vpop.f32.mrb[8].mxu1  ;;  %v2146_v21 = vpop.f32.mrb[9].mxu0  ;;  %v663_v2 = vld [vmem:[#allocation2 + $0x470] sm:$0xff] }
  0xf8   : > { %v4301_v17 = vmax.f32 %v4045_v4, 0.0  ;;  %5583 = vst.msk [vmem:[%s8023_s29 + $0x208] sm:$0xf] %vm5452_vm4, %v6478_v7  ;;  %5453 = vst.msk [vmem:[%s8023_s29] sm:$0xf] %vm5452_vm4, %v6348_v8  ;;  %v6479_v25 = vpack.c.bf16 %v4303_v9, %v4303_v9  ;;  %v3659_v27 = vld [vmem:[#allocation2 + $0x30] sm:$0xff]  ;;  %v3275_v28 = vadd.f32 %v6876_v20, %v659_v5  ;;  %v3145_v29 = vadd.f32 %v2146_v21, %v529_v6 }
  0xf9   : > { %v6349_v26 = vpack.c.bf16 %v4173_v10, %v4173_v10  ;;  %v2658_v30 = vpop.f32.mrb[9].mxu1  ;;  %v6749_v31 = vpop.f32.mrb[10].mxu0  ;;  %5581 = vst.msk [vmem:[%s8023_s29 + $0x200] sm:$0xf] %vm5452_vm4, %v6476_v15  ;;  %5456 = vst.msk [vmem:[%s8023_s29 + $0xc] sm:$0xf] %vm5452_vm4, %v6351_v16  ;;  %v3922_v35 = vadd.f32 %v7999_v18, %v3659_v27 }
  0xfa   : > { %v6477_v34 = vpack.c.bf16 %v4301_v17, %v4301_v17  ;;  %v3787_v36 = vld [vmem:[#allocation2 + $0x430] sm:$0xff]  ;;  %v3657_v37 = vld [vmem:[#allocation2 + $0x20] sm:$0xff]  ;;  %3404 = vst.msk [vmem:[#allocation2 + $0x50] sm:$0xff] %vm264_vm3, %v3147_v19  ;;  %v3273_v38 = vadd.f32 %v2658_v30, %v657_v12  ;;  %v3148_v39 = vadd.f32 %v6749_v31, %v532_v13  ;;  %v6877_v40 = vpop.f32.mrb[10].mxu1  ;;  %v2149_v41 = vpop.f32.mrb[11].mxu0  ;;  %v3660_v46 = vld [vmem:[#allocation2 + $0x38] sm:$0xff] }
  0xfb   : > { %5584 = vst.msk [vmem:[%s8023_s29 + $0x20c] sm:$0xf] %vm5452_vm4, %v6479_v25  ;;  %5454 = vst.msk [vmem:[%s8023_s29 + $0x4] sm:$0xf] %vm5452_vm4, %v6349_v26  ;;  %v4050_v43 = vadd.f32 %v7999_v18, %v3787_v36  ;;  %v3920_v44 = vadd.f32 %v7999_v18, %v3657_v37  ;;  %v3785_v45 = vld [vmem:[#allocation2 + $0x420] sm:$0xff]  ;;  %v3276_v47 = vadd.f32 %v6877_v40, %v660_v14  ;;  %v2661_v49 = vpop.f32.mrb[11].mxu1 }
  0xfc   : > { %3532 = vst.msk [vmem:[#allocation2 + $0x450] sm:$0xff] %vm264_vm3, %v3275_v28  ;;  %3402 = vst.msk [vmem:[#allocation2 + $0x40] sm:$0xff] %vm264_vm3, %v3145_v29  ;;  %v3146_v48 = vadd.f32 %v2149_v41, %v530_v22  ;;  %v4178_v50 = vmax.f32 %v3922_v35, 0.0  ;;  %v4048_v51 = vadd.f32 %v7999_v18, %v3785_v45  ;;  %v3923_v52 = vadd.f32 %v7999_v18, %v3660_v46  ;;  %v3788_v53 = vld [vmem:[#allocation2 + $0x438] sm:$0xff]  ;;  %v3658_v54 = vld [vmem:[#allocation2 + $0x28] sm:$0xff] }
  0xfd   : > { %5582 = vst.msk [vmem:[%s8023_s29 + $0x204] sm:$0xf] %vm5452_vm4, %v6477_v34  ;;  %v3274_v55 = vadd.f32 %v2661_v49, %v658_v23  ;;  %6855 = vmatmul.mubr.msk.bf16.gmra.mrb[116].mxu0 %vm1688_vm2, %v7144_v24  ;;  %v4306_v56 = vmax.f32 %v4050_v43, 0.0  ;;  %v4176_v57 = vmax.f32 %v3920_v44, 0.0  ;;  %v4051_v58 = vadd.f32 %v7999_v18, %v3788_v53  ;;  %v3786_v60 = vld [vmem:[#allocation2 + $0x428] sm:$0xff]  ;;  %6983 = vmatmul.mubr.msk.bf16.gmra.mrb[116].mxu1 %vm1688_vm2, %v7145_v32  ;;  %v533_v3 = vld [vmem:[#allocation2 + $0x60] sm:$0xff] }
  0xfe   : > { %3530 = vst.msk [vmem:[#allocation2 + $0x440] sm:$0xff] %vm264_vm3, %v3273_v38  ;;  %3405 = vst.msk [vmem:[#allocation2 + $0x58] sm:$0xff] %vm264_vm3, %v3148_v39  ;;  %v3921_v59 = vadd.f32 %v7999_v18, %v3658_v54  ;;  %6858 = vmatprep.mubr.msk.bf16.mxu0 %vm1688_vm2, %v7146_v33  ;;  %v6354_v62 = vpack.c.bf16 %v4178_v50, %v4178_v50  ;;  %v4304_v63 = vmax.f32 %v4048_v51, 0.0  ;;  %v4179_v0 = vmax.f32 %v3923_v52, 0.0  ;;  %v6752_v8 = vpop.f32.mrb[12].mxu0  ;;  %v661_v9 = vld [vmem:[#allocation2 + $0x460] sm:$0xff] }
  0xff   : > { %3533 = vst.msk [vmem:[#allocation2 + $0x458] sm:$0xff] %vm264_vm3, %v3276_v47  ;;  %3403 = vst.msk [vmem:[#allocation2 + $0x48] sm:$0xff] %vm264_vm3, %v3146_v48  ;;  %v4049_v1 = vadd.f32 %v7999_v18, %v3786_v60  ;;  %6986 = vmatprep.mubr.msk.bf16.mxu1 %vm1688_vm2, %v7147_v42  ;;  %v6482_v4 = vpack.c.bf16 %v4306_v56, %v4306_v56  ;;  %v6352_v5 = vpack.c.bf16 %v4176_v57, %v4176_v57  ;;  %v536_v10 = vld [vmem:[#allocation2 + $0x78] sm:$0xff]  ;;  %v6880_v16 = vpop.f32.mrb[12].mxu1  ;;  %v2162_v17 = vpop.f32.mrb[13].mxu0  ;;  %v534_v19 = vld [vmem:[#allocation2 + $0x68] sm:$0xff] }
 0x100   : > { %3531 = vst.msk [vmem:[#allocation2 + $0x448] sm:$0xff] %vm264_vm3, %v3274_v55  ;;  %v4307_v6 = vmax.f32 %v4051_v58, 0.0  ;;  %v4177_v7 = vmax.f32 %v3921_v59, 0.0  ;;  %v664_v11 = vld [vmem:[#allocation2 + $0x478] sm:$0xff]  ;;  %v6480_v12 = vpack.c.bf16 %v4304_v63, %v4304_v63  ;;  %v6355_v13 = vpack.c.bf16 %v4179_v0, %v4179_v0  ;;  %v662_v20 = vld [vmem:[#allocation2 + $0x468] sm:$0xff]  ;;  %v2674_v27 = vpop.f32.mrb[13].mxu1 }
 0x101   : > { %5459 = vst.msk [vmem:[%s8023_s29 + $0x18] sm:$0xf] %vm5452_vm4, %v6354_v62  ;;  %v4305_v14 = vmax.f32 %v4049_v1, 0.0  ;;  %v3151_v15 = vadd.f32 %v6752_v8, %v535_v61  ;;  %v7148_v21 = vld [vmem:[%s7236_s24 + $0x1e8] sm:$0xff]   ;;  %5587 = vst.msk [vmem:[%s8023_s29 + $0x218] sm:$0xf] %vm5452_vm4, %v6482_v4  ;;  %v3279_v25 = vadd.f32 %v6880_v16, %v663_v2  ;;  %v3149_v26 = vadd.f32 %v2162_v17, %v533_v3 }
 0x102   : > { %5457 = vst.msk [vmem:[%s8023_s29 + $0x10] sm:$0xf] %vm5452_vm4, %v6352_v5  ;;  %v6483_v22 = vpack.c.bf16 %v4307_v6, %v4307_v6  ;;  %v6353_v23 = vpack.c.bf16 %v4177_v7, %v4177_v7  ;;  %v3663_v24 = vld [vmem:[#allocation2 + $0x50] sm:$0xff]  ;;  %v6753_v28 = vpop.f32.mrb[14].mxu0  ;;  %v7149_v29 = vld [vmem:[%s7236_s24 + $0x3e8] sm:$0xff]   ;;  %v3277_v35 = vadd.f32 %v2674_v27, %v661_v9  ;;  %v6881_v37 = vpop.f32.mrb[14].mxu1 }
 0x103   : > { %v7150_v30 = vld [vmem:[%s7236_s24 + $0x1f0] sm:$0xff]   ;;  %5585 = vst.msk [vmem:[%s8023_s29 + $0x210] sm:$0xf] %vm5452_vm4, %v6480_v12  ;;  %5460 = vst.msk [vmem:[%s8023_s29 + $0x1c] sm:$0xf] %vm5452_vm4, %v6355_v13  ;;  %v6481_v31 = vpack.c.bf16 %v4305_v14, %v4305_v14  ;;  %v3926_v32 = vadd.f32 %v7999_v18, %v3663_v24  ;;  %v3661_v34 = vld [vmem:[#allocation2 + $0x40] sm:$0xff]  ;;  %v3152_v36 = vadd.f32 %v6753_v28, %v536_v10 }
 0x104   : > { %v3791_v33 = vld [vmem:[#allocation2 + $0x450] sm:$0xff]  ;;  %3408 = vst.msk [vmem:[#allocation2 + $0x70] sm:$0xff] %vm264_vm3, %v3151_v15  ;;  %v2165_v38 = vpop.f32.mrb[15].mxu0  ;;  %v3924_v41 = vadd.f32 %v7999_v18, %v3661_v34  ;;  %3536 = vst.msk [vmem:[#allocation2 + $0x470] sm:$0xff] %vm264_vm3, %v3279_v25  ;;  %v3280_v44 = vadd.f32 %v6881_v37, %v664_v11  ;;  %v2677_v46 = vpop.f32.mrb[15].mxu1  ;;  %v537_v0 = vld [vmem:[#allocation2 + $0x80] sm:$0xff] }
 0x105   : > { %v7151_v39 = vld [vmem:[%s7236_s24 + $0x3f0] sm:$0xff]   ;;  %5588 = vst.msk [vmem:[%s8023_s29 + $0x21c] sm:$0xf] %vm5452_vm4, %v6483_v22  ;;  %5458 = vst.msk [vmem:[%s8023_s29 + $0x14] sm:$0xf] %vm5452_vm4, %v6353_v23  ;;  %v4054_v40 = vadd.f32 %v7999_v18, %v3791_v33  ;;  %v3789_v42 = vld [vmem:[#allocation2 + $0x440] sm:$0xff]  ;;  %v3150_v45 = vadd.f32 %v2165_v38, %v534_v19  ;;  %v3278_v52 = vadd.f32 %v2677_v46, %v662_v20  ;;  %6859 = vmatmul.mubr.msk.bf16.gmra.mrb[120].mxu0 %vm1688_vm2, %v7148_v21 }
 0x106   : > { %v3664_v43 = vld [vmem:[#allocation2 + $0x58] sm:$0xff]  ;;  %3406 = vst.msk [vmem:[#allocation2 + $0x60] sm:$0xff] %vm264_vm3, %v3149_v26  ;;  %v4182_v47 = vmax.f32 %v3926_v32, 0.0  ;;  %v4052_v48 = vadd.f32 %v7999_v18, %v3789_v42  ;;  %v3662_v51 = vld [vmem:[#allocation2 + $0x48] sm:$0xff]  ;;  %3534 = vst.msk [vmem:[#allocation2 + $0x460] sm:$0xff] %vm264_vm3, %v3277_v35  ;;  %v4180_v54 = vmax.f32 %v3924_v41, 0.0  ;;  %6987 = vmatmul.mubr.msk.bf16.gmra.mrb[120].mxu1 %vm1688_vm2, %v7149_v29  ;;  %6862 = vmatprep.mubr.msk.bf16.mxu0 %vm1688_vm2, %v7150_v30 }
 0x107   : > { %5586 = vst.msk [vmem:[%s8023_s29 + $0x214] sm:$0xf] %vm5452_vm4, %v6481_v31  ;;  %v3927_v49 = vadd.f32 %v7999_v18, %v3664_v43  ;;  %v3792_v50 = vld [vmem:[#allocation2 + $0x458] sm:$0xff]  ;;  %v4310_v53 = vmax.f32 %v4054_v40, 0.0  ;;  %v3925_v56 = vadd.f32 %v7999_v18, %v3662_v51  ;;  %v3790_v57 = vld [vmem:[#allocation2 + $0x448] sm:$0xff]  ;;  %v539_v58 = vld [vmem:[#allocation2 + $0x90] sm:$0xff]  ;;  %6990 = vmatprep.mubr.msk.bf16.mxu1 %vm1688_vm2, %v7151_v39 }
 0x108   : > { %3409 = vst.msk [vmem:[#allocation2 + $0x78] sm:$0xff] %vm264_vm3, %v3152_v36  ;;  %v4055_v55 = vadd.f32 %v7999_v18, %v3792_v50  ;;  %3537 = vst.msk [vmem:[#allocation2 + $0x478] sm:$0xff] %vm264_vm3, %v3280_v44  ;;  %v6358_v59 = vpack.c.bf16 %v4182_v47, %v4182_v47  ;;  %v4308_v60 = vmax.f32 %v4052_v48, 0.0  ;;  %v4053_v62 = vadd.f32 %v7999_v18, %v3790_v57  ;;  %v667_v63 = vld [vmem:[#allocation2 + $0x490] sm:$0xff]  ;;  %v6756_v5 = vpop.f32.mrb[16].mxu0  ;;  %v665_v6 = vld [vmem:[#allocation2 + $0x480] sm:$0xff] }
 0x109   : > { %3407 = vst.msk [vmem:[#allocation2 + $0x68] sm:$0xff] %vm264_vm3, %v3150_v45  ;;  %v4183_v61 = vmax.f32 %v3927_v49, 0.0  ;;  %3535 = vst.msk [vmem:[#allocation2 + $0x468] sm:$0xff] %vm264_vm3, %v3278_v52  ;;  %v6486_v1 = vpack.c.bf16 %v4310_v53, %v4310_v53  ;;  %v6356_v2 = vpack.c.bf16 %v4180_v54, %v4180_v54  ;;  %v4181_v4 = vmax.f32 %v3925_v56, 0.0  ;;  %v540_v7 = vld [vmem:[#allocation2 + $0x98] sm:$0xff]  ;;  %v6884_v12 = vpop.f32.mrb[16].mxu1 }
 0x10a   : > { %v4311_v3 = vmax.f32 %v4055_v55, 0.0  ;;  %5463 = vst.msk [vmem:[%s8023_s29 + $0x28] sm:$0xf] %vm5452_vm4, %v6358_v59  ;;  %v6484_v8 = vpack.c.bf16 %v4308_v60, %v4308_v60  ;;  %v4309_v10 = vmax.f32 %v4053_v62, 0.0  ;;  %v3155_v11 = vadd.f32 %v6756_v5, %v539_v58  ;;  %v2178_v13 = vpop.f32.mrb[17].mxu0  ;;  %v668_v14 = vld [vmem:[#allocation2 + $0x498] sm:$0xff] }
 0x10b   : > { %v6359_v9 = vpack.c.bf16 %v4183_v61, %v4183_v61  ;;  %v538_v15 = vld [vmem:[#allocation2 + $0x88] sm:$0xff]  ;;  %v7152_v16 = vld [vmem:[%s7236_s24 + $0x1f8] sm:$0xff]   ;;  %5591 = vst.msk [vmem:[%s8023_s29 + $0x228] sm:$0xf] %vm5452_vm4, %v6486_v1  ;;  %5461 = vst.msk [vmem:[%s8023_s29 + $0x20] sm:$0xf] %vm5452_vm4, %v6356_v2  ;;  %v6357_v19 = vpack.c.bf16 %v4181_v4, %v4181_v4  ;;  %v3283_v21 = vadd.f32 %v6884_v12, %v667_v63 }
 0x10c   : > { %v6487_v17 = vpack.c.bf16 %v4311_v3, %v4311_v3  ;;  %v3667_v20 = vld [vmem:[#allocation2 + $0x70] sm:$0xff]  ;;  %v3153_v22 = vadd.f32 %v2178_v13, %v537_v0  ;;  %v2690_v23 = vpop.f32.mrb[17].mxu1  ;;  %v6757_v24 = vpop.f32.mrb[18].mxu0  ;;  %v666_v25 = vld [vmem:[#allocation2 + $0x488] sm:$0xff]  ;;  %v7153_v26 = vld [vmem:[%s7236_s24 + $0x3f8] sm:$0xff]   ;;  %v6485_v27 = vpack.c.bf16 %v4309_v10, %v4309_v10  ;;  %3412 = vst.msk [vmem:[#allocation2 + $0x90] sm:$0xff] %vm264_vm3, %v3155_v11 }
 0x10d   : > { %5589 = vst.msk [vmem:[%s8023_s29 + $0x220] sm:$0xf] %vm5452_vm4, %v6484_v8  ;;  %5464 = vst.msk [vmem:[%s8023_s29 + $0x2c] sm:$0xf] %vm5452_vm4, %v6359_v9  ;;  %v3930_v28 = vadd.f32 %v7999_v18, %v3667_v20  ;;  %v3795_v29 = vld [vmem:[#allocation2 + $0x470] sm:$0xff]  ;;  %v3665_v30 = vld [vmem:[#allocation2 + $0x60] sm:$0xff]  ;;  %v3281_v31 = vadd.f32 %v2690_v23, %v665_v6  ;;  %v3156_v32 = vadd.f32 %v6757_v24, %v540_v7  ;;  %6863 = vmatmul.mubr.msk.bf16.gmra.mrb[124].mxu0 %vm1688_vm2, %v7152_v16 }
 0x10e   : > { %v6885_v33 = vpop.f32.mrb[18].mxu1  ;;  %v2181_v34 = vpop.f32.mrb[19].mxu0  ;;  %5592 = vst.msk [vmem:[%s8023_s29 + $0x22c] sm:$0xf] %vm5452_vm4, %v6487_v17  ;;  %5462 = vst.msk [vmem:[%s8023_s29 + $0x24] sm:$0xf] %vm5452_vm4, %v6357_v19  ;;  %v4058_v35 = vadd.f32 %v7999_v18, %v3795_v29  ;;  %v3928_v36 = vadd.f32 %v7999_v18, %v3665_v30  ;;  %6991 = vmatmul.mubr.msk.bf16.gmra.mrb[124].mxu1 %vm1688_vm2, %v7153_v26 }
 0x10f   : > { %v3793_v37 = vld [vmem:[#allocation2 + $0x460] sm:$0xff]  ;;  %v3668_v38 = vld [vmem:[#allocation2 + $0x78] sm:$0xff]  ;;  %3540 = vst.msk [vmem:[#allocation2 + $0x490] sm:$0xff] %vm264_vm3, %v3283_v21  ;;  %3410 = vst.msk [vmem:[#allocation2 + $0x80] sm:$0xff] %vm264_vm3, %v3153_v22  ;;  %v3284_v39 = vadd.f32 %v6885_v33, %v668_v14  ;;  %v3154_v40 = vadd.f32 %v2181_v34, %v538_v15  ;;  %v2693_v41 = vpop.f32.mrb[19].mxu1  ;;  %v4186_v42 = vmax.f32 %v3930_v28, 0.0 }
 0x110   : > { %5590 = vst.msk [vmem:[%s8023_s29 + $0x224] sm:$0xf] %vm5452_vm4, %v6485_v27  ;;  %v4056_v43 = vadd.f32 %v7999_v18, %v3793_v37  ;;  %v3931_v44 = vadd.f32 %v7999_v18, %v3668_v38  ;;  %v3796_v45 = vld [vmem:[#allocation2 + $0x478] sm:$0xff]  ;;  %v3666_v46 = vld [vmem:[#allocation2 + $0x68] sm:$0xff]  ;;  %v3282_v47 = vadd.f32 %v2693_v41, %v666_v25  ;;  %v4314_v48 = vmax.f32 %v4058_v35, 0.0  ;;  %v543_v53 = vld [vmem:[#allocation2 + $0xb0] sm:$0xff] }
 0x111   : > { %3538 = vst.msk [vmem:[#allocation2 + $0x480] sm:$0xff] %vm264_vm3, %v3281_v31  ;;  %3413 = vst.msk [vmem:[#allocation2 + $0x98] sm:$0xff] %vm264_vm3, %v3156_v32  ;;  %v4184_v49 = vmax.f32 %v3928_v36, 0.0  ;;  %v4059_v50 = vadd.f32 %v7999_v18, %v3796_v45  ;;  %v3929_v51 = vadd.f32 %v7999_v18, %v3666_v46  ;;  %v3794_v52 = vld [vmem:[#allocation2 + $0x468] sm:$0xff]  ;;  %v6362_v54 = vpack.c.bf16 %v4186_v42, %v4186_v42  ;;  %v671_v58 = vld [vmem:[#allocation2 + $0x4b0] sm:$0xff]  ;;  %v6760_v0 = vpop.f32.mrb[20].mxu0 }
 0x112   : > { %3541 = vst.msk [vmem:[#allocation2 + $0x498] sm:$0xff] %vm264_vm3, %v3284_v39  ;;  %3411 = vst.msk [vmem:[#allocation2 + $0x88] sm:$0xff] %vm264_vm3, %v3154_v40  ;;  %v4312_v55 = vmax.f32 %v4056_v43, 0.0  ;;  %v4187_v56 = vmax.f32 %v3931_v44, 0.0  ;;  %v4057_v57 = vadd.f32 %v7999_v18, %v3794_v52  ;;  %v541_v59 = vld [vmem:[#allocation2 + $0xa0] sm:$0xff]  ;;  %v6490_v60 = vpack.c.bf16 %v4314_v48, %v4314_v48  ;;  %v544_v2 = vld [vmem:[#allocation2 + $0xb8] sm:$0xff] }
 0x113   : > { %3539 = vst.msk [vmem:[#allocation2 + $0x488] sm:$0xff] %vm264_vm3, %v3282_v47  ;;  %v6360_v61 = vpack.c.bf16 %v4184_v49, %v4184_v49  ;;  %v4315_v62 = vmax.f32 %v4059_v50, 0.0  ;;  %v4185_v63 = vmax.f32 %v3929_v51, 0.0  ;;  %v669_v1 = vld [vmem:[#allocation2 + $0x4a0] sm:$0xff]  ;;  %v3159_v6 = vadd.f32 %v6760_v0, %v543_v53  ;;  %v6888_v7 = vpop.f32.mrb[20].mxu1  ;;  %v2194_v8 = vpop.f32.mrb[21].mxu0 }
 0x114   : > { %5467 = vst.msk [vmem:[%s8023_s29 + $0x38] sm:$0xf] %vm5452_vm4, %v6362_v54  ;;  %v6488_v3 = vpack.c.bf16 %v4312_v55, %v4312_v55  ;;  %v6363_v4 = vpack.c.bf16 %v4187_v56, %v4187_v56  ;;  %v4313_v5 = vmax.f32 %v4057_v57, 0.0  ;;  %v672_v9 = vld [vmem:[#allocation2 + $0x4b8] sm:$0xff]  ;;  %v542_v10 = vld [vmem:[#allocation2 + $0xa8] sm:$0xff]  ;;  %v3671_v13 = vld [vmem:[#allocation2 + $0x90] sm:$0xff]  ;;  %v3287_v14 = vadd.f32 %v6888_v7, %v671_v58 }
 0x115   : > { %5595 = vst.msk [vmem:[%s8023_s29 + $0x238] sm:$0xf] %vm5452_vm4, %v6490_v60  ;;  %5465 = vst.msk [vmem:[%s8023_s29 + $0x30] sm:$0xf] %vm5452_vm4, %v6360_v61  ;;  %v6491_v11 = vpack.c.bf16 %v4315_v62, %v4315_v62  ;;  %v6361_v12 = vpack.c.bf16 %v4185_v63, %v4185_v63  ;;  %v3157_v15 = vadd.f32 %v2194_v8, %v541_v59  ;;  %v2706_v16 = vpop.f32.mrb[21].mxu1  ;;  %v6761_v17 = vpop.f32.mrb[22].mxu0 }
 0x116   : > { %v670_v19 = vld [vmem:[#allocation2 + $0x4a8] sm:$0xff]  ;;  %5593 = vst.msk [vmem:[%s8023_s29 + $0x230] sm:$0xf] %vm5452_vm4, %v6488_v3  ;;  %5468 = vst.msk [vmem:[%s8023_s29 + $0x3c] sm:$0xf] %vm5452_vm4, %v6363_v4  ;;  %v6489_v20 = vpack.c.bf16 %v4313_v5, %v4313_v5  ;;  %v3934_v21 = vadd.f32 %v7999_v18, %v3671_v13  ;;  %v3799_v22 = vld [vmem:[#allocation2 + $0x490] sm:$0xff]  ;;  %v3285_v24 = vadd.f32 %v2706_v16, %v669_v1 }
 0x117   : > { %v3669_v23 = vld [vmem:[#allocation2 + $0x80] sm:$0xff]  ;;  %3416 = vst.msk [vmem:[#allocation2 + $0xb0] sm:$0xff] %vm264_vm3, %v3159_v6  ;;  %v3160_v25 = vadd.f32 %v6761_v17, %v544_v2  ;;  %v6889_v26 = vpop.f32.mrb[22].mxu1  ;;  %v2197_v27 = vpop.f32.mrb[23].mxu0  ;;  %v4062_v28 = vadd.f32 %v7999_v18, %v3799_v22  ;;  %3544 = vst.msk [vmem:[#allocation2 + $0x4b0] sm:$0xff] %vm264_vm3, %v3287_v14  ;;  %v547_v46 = vld [vmem:[#allocation2 + $0xd0] sm:$0xff] }
 0x118   : > { %5596 = vst.msk [vmem:[%s8023_s29 + $0x23c] sm:$0xf] %vm5452_vm4, %v6491_v11  ;;  %5466 = vst.msk [vmem:[%s8023_s29 + $0x34] sm:$0xf] %vm5452_vm4, %v6361_v12  ;;  %v3932_v29 = vadd.f32 %v7999_v18, %v3669_v23  ;;  %v3797_v30 = vld [vmem:[#allocation2 + $0x480] sm:$0xff]  ;;  %v3672_v31 = vld [vmem:[#allocation2 + $0x98] sm:$0xff]  ;;  %v3288_v32 = vadd.f32 %v6889_v26, %v672_v9  ;;  %v3158_v33 = vadd.f32 %v2197_v27, %v542_v10 }
 0x119   : > { %3414 = vst.msk [vmem:[#allocation2 + $0xa0] sm:$0xff] %vm264_vm3, %v3157_v15  ;;  %v2709_v34 = vpop.f32.mrb[23].mxu1  ;;  %v4190_v35 = vmax.f32 %v3934_v21, 0.0  ;;  %v4060_v36 = vadd.f32 %v7999_v18, %v3797_v30  ;;  %v3935_v37 = vadd.f32 %v7999_v18, %v3672_v31  ;;  %v3800_v38 = vld [vmem:[#allocation2 + $0x498] sm:$0xff]  ;;  %v3670_v39 = vld [vmem:[#allocation2 + $0x88] sm:$0xff]  ;;  %3542 = vst.msk [vmem:[#allocation2 + $0x4a0] sm:$0xff] %vm264_vm3, %v3285_v24 }
 0x11a   : > { %5594 = vst.msk [vmem:[%s8023_s29 + $0x234] sm:$0xf] %vm5452_vm4, %v6489_v20  ;;  %v3286_v40 = vadd.f32 %v2709_v34, %v670_v19  ;;  %v4318_v41 = vmax.f32 %v4062_v28, 0.0  ;;  %v4188_v42 = vmax.f32 %v3932_v29, 0.0  ;;  %v4063_v43 = vadd.f32 %v7999_v18, %v3800_v38  ;;  %v3798_v45 = vld [vmem:[#allocation2 + $0x488] sm:$0xff]  ;;  %v675_v51 = vld [vmem:[#allocation2 + $0x4d0] sm:$0xff] }
 0x11b   : > { %3417 = vst.msk [vmem:[#allocation2 + $0xb8] sm:$0xff] %vm264_vm3, %v3160_v25  ;;  %v3933_v44 = vadd.f32 %v7999_v18, %v3670_v39  ;;  %3545 = vst.msk [vmem:[#allocation2 + $0x4b8] sm:$0xff] %vm264_vm3, %v3288_v32  ;;  %v6366_v47 = vpack.c.bf16 %v4190_v35, %v4190_v35  ;;  %v4316_v48 = vmax.f32 %v4060_v36, 0.0  ;;  %v4191_v49 = vmax.f32 %v3935_v37, 0.0  ;;  %v545_v52 = vld [vmem:[#allocation2 + $0xc0] sm:$0xff]  ;;  %v6764_v57 = vpop.f32.mrb[24].mxu0 }
 0x11c   : > { %3415 = vst.msk [vmem:[#allocation2 + $0xa8] sm:$0xff] %vm264_vm3, %v3158_v33  ;;  %v4061_v50 = vadd.f32 %v7999_v18, %v3798_v45  ;;  %3543 = vst.msk [vmem:[#allocation2 + $0x4a8] sm:$0xff] %vm264_vm3, %v3286_v40  ;;  %v6494_v53 = vpack.c.bf16 %v4318_v41, %v4318_v41  ;;  %v6364_v54 = vpack.c.bf16 %v4188_v42, %v4188_v42  ;;  %v4319_v55 = vmax.f32 %v4063_v43, 0.0  ;;  %v673_v58 = vld [vmem:[#allocation2 + $0x4c0] sm:$0xff]  ;;  %v548_v59 = vld [vmem:[#allocation2 + $0xd8] sm:$0xff]  ;;  %v6892_v0 = vpop.f32.mrb[24].mxu1 }
 0x11d   : > { %v4189_v56 = vmax.f32 %v3933_v44, 0.0  ;;  %5471 = vst.msk [vmem:[%s8023_s29 + $0x48] sm:$0xf] %vm5452_vm4, %v6366_v47  ;;  %v6492_v60 = vpack.c.bf16 %v4316_v48, %v4316_v48  ;;  %v6367_v61 = vpack.c.bf16 %v4191_v49, %v4191_v49  ;;  %v3163_v63 = vadd.f32 %v6764_v57, %v547_v46  ;;  %v2210_v1 = vpop.f32.mrb[25].mxu0  ;;  %v676_v2 = vld [vmem:[#allocation2 + $0x4d8] sm:$0xff]  ;;  %v546_v3 = vld [vmem:[#allocation2 + $0xc8] sm:$0xff] }
 0x11e   : > { %v4317_v62 = vmax.f32 %v4061_v50, 0.0  ;;  %5599 = vst.msk [vmem:[%s8023_s29 + $0x248] sm:$0xf] %vm5452_vm4, %v6494_v53  ;;  %5469 = vst.msk [vmem:[%s8023_s29 + $0x40] sm:$0xf] %vm5452_vm4, %v6364_v54  ;;  %v6495_v4 = vpack.c.bf16 %v4319_v55, %v4319_v55  ;;  %v3675_v6 = vld [vmem:[#allocation2 + $0xb0] sm:$0xff]  ;;  %v3291_v7 = vadd.f32 %v6892_v0, %v675_v51  ;;  %v3161_v8 = vadd.f32 %v2210_v1, %v545_v52 }
 0x11f   : > { %v6365_v5 = vpack.c.bf16 %v4189_v56, %v4189_v56  ;;  %v2722_v9 = vpop.f32.mrb[25].mxu1  ;;  %v6765_v10 = vpop.f32.mrb[26].mxu0  ;;  %v674_v11 = vld [vmem:[#allocation2 + $0x4c8] sm:$0xff]  ;;  %5597 = vst.msk [vmem:[%s8023_s29 + $0x240] sm:$0xf] %vm5452_vm4, %v6492_v60  ;;  %v3938_v13 = vadd.f32 %v7999_v18, %v3675_v6  ;;  %v3803_v14 = vld [vmem:[#allocation2 + $0x4b0] sm:$0xff] }
 0x120   : > { %5472 = vst.msk [vmem:[%s8023_s29 + $0x4c] sm:$0xf] %vm5452_vm4, %v6367_v61  ;;  %v6493_v12 = vpack.c.bf16 %v4317_v62, %v4317_v62  ;;  %v3673_v15 = vld [vmem:[#allocation2 + $0xa0] sm:$0xff]  ;;  %v3289_v16 = vadd.f32 %v2722_v9, %v673_v58  ;;  %v3164_v17 = vadd.f32 %v6765_v10, %v548_v59  ;;  %v6893_v19 = vpop.f32.mrb[26].mxu1  ;;  %v2213_v20 = vpop.f32.mrb[27].mxu0  ;;  %v4066_v21 = vadd.f32 %v7999_v18, %v3803_v14  ;;  %v551_v39 = vld [vmem:[#allocation2 + $0xf0] sm:$0xff] }
 0x121   : > { %3420 = vst.msk [vmem:[#allocation2 + $0xd0] sm:$0xff] %vm264_vm3, %v3163_v63  ;;  %v3936_v22 = vadd.f32 %v7999_v18, %v3673_v15  ;;  %v3801_v23 = vld [vmem:[#allocation2 + $0x4a0] sm:$0xff]  ;;  %3548 = vst.msk [vmem:[#allocation2 + $0x4d0] sm:$0xff] %vm264_vm3, %v3291_v7  ;;  %v3292_v25 = vadd.f32 %v6893_v19, %v676_v2  ;;  %v3162_v26 = vadd.f32 %v2213_v20, %v546_v3  ;;  %v2725_v27 = vpop.f32.mrb[27].mxu1  ;;  %v4194_v28 = vmax.f32 %v3938_v13, 0.0  ;;  %v679_v44 = vld [vmem:[#allocation2 + $0x4f0] sm:$0xff] }
 0x122   : > { %5600 = vst.msk [vmem:[%s8023_s29 + $0x24c] sm:$0xf] %vm5452_vm4, %v6495_v4  ;;  %5470 = vst.msk [vmem:[%s8023_s29 + $0x44] sm:$0xf] %vm5452_vm4, %v6365_v5  ;;  %v3676_v24 = vld [vmem:[#allocation2 + $0xb8] sm:$0xff]  ;;  %v4064_v29 = vadd.f32 %v7999_v18, %v3801_v23  ;;  %v3290_v33 = vadd.f32 %v2725_v27, %v674_v11  ;;  %v4322_v34 = vmax.f32 %v4066_v21, 0.0 }
 0x123   : > { %3418 = vst.msk [vmem:[#allocation2 + $0xc0] sm:$0xff] %vm264_vm3, %v3161_v8  ;;  %v3939_v30 = vadd.f32 %v7999_v18, %v3676_v24  ;;  %v3804_v31 = vld [vmem:[#allocation2 + $0x4b8] sm:$0xff]  ;;  %v3674_v32 = vld [vmem:[#allocation2 + $0xa8] sm:$0xff]  ;;  %3546 = vst.msk [vmem:[#allocation2 + $0x4c0] sm:$0xff] %vm264_vm3, %v3289_v16  ;;  %v4192_v35 = vmax.f32 %v3936_v22, 0.0  ;;  %v6370_v40 = vpack.c.bf16 %v4194_v28, %v4194_v28  ;;  %v6768_v50 = vpop.f32.mrb[28].mxu0 }
 0x124   : > { %5598 = vst.msk [vmem:[%s8023_s29 + $0x244] sm:$0xf] %vm5452_vm4, %v6493_v12  ;;  %v4067_v36 = vadd.f32 %v7999_v18, %v3804_v31  ;;  %v3937_v37 = vadd.f32 %v7999_v18, %v3674_v32  ;;  %v3802_v38 = vld [vmem:[#allocation2 + $0x4a8] sm:$0xff]  ;;  %v4320_v41 = vmax.f32 %v4064_v29, 0.0  ;;  %v549_v45 = vld [vmem:[#allocation2 + $0xe0] sm:$0xff]  ;;  %v6498_v46 = vpack.c.bf16 %v4322_v34, %v4322_v34  ;;  %v552_v52 = vld [vmem:[#allocation2 + $0xf8] sm:$0xff] }
 0x125   : > { %3421 = vst.msk [vmem:[#allocation2 + $0xd8] sm:$0xff] %vm264_vm3, %v3164_v17  ;;  %3549 = vst.msk [vmem:[#allocation2 + $0x4d8] sm:$0xff] %vm264_vm3, %v3292_v25  ;;  %v4195_v42 = vmax.f32 %v3939_v30, 0.0  ;;  %v4065_v43 = vadd.f32 %v7999_v18, %v3802_v38  ;;  %v6368_v47 = vpack.c.bf16 %v4192_v35, %v4192_v35  ;;  %v677_v51 = vld [vmem:[#allocation2 + $0x4e0] sm:$0xff]  ;;  %v3167_v56 = vadd.f32 %v6768_v50, %v551_v39  ;;  %v6896_v57 = vpop.f32.mrb[28].mxu1  ;;  %v2226_v58 = vpop.f32.mrb[29].mxu0 }
 0x126   : > { %3419 = vst.msk [vmem:[#allocation2 + $0xc8] sm:$0xff] %vm264_vm3, %v3162_v26  ;;  %3547 = vst.msk [vmem:[#allocation2 + $0x4c8] sm:$0xff] %vm264_vm3, %v3290_v33  ;;  %v4323_v48 = vmax.f32 %v4067_v36, 0.0  ;;  %v4193_v49 = vmax.f32 %v3937_v37, 0.0  ;;  %v6496_v53 = vpack.c.bf16 %v4320_v41, %v4320_v41  ;;  %v680_v59 = vld [vmem:[#allocation2 + $0x4f8] sm:$0xff]  ;;  %v550_v60 = vld [vmem:[#allocation2 + $0xe8] sm:$0xff]  ;;  %v3295_v0 = vadd.f32 %v6896_v57, %v679_v44 }
 0x127   : > { %5475 = vst.msk [vmem:[%s8023_s29 + $0x58] sm:$0xf] %vm5452_vm4, %v6370_v40  ;;  %v6371_v54 = vpack.c.bf16 %v4195_v42, %v4195_v42  ;;  %v4321_v55 = vmax.f32 %v4065_v43, 0.0  ;;  %5603 = vst.msk [vmem:[%s8023_s29 + $0x258] sm:$0xf] %vm5452_vm4, %v6498_v46  ;;  %v3165_v1 = vadd.f32 %v2226_v58, %v549_v45  ;;  %v2738_v2 = vpop.f32.mrb[29].mxu1 }
 0x128   : > { %5473 = vst.msk [vmem:[%s8023_s29 + $0x50] sm:$0xf] %vm5452_vm4, %v6368_v47  ;;  %v6499_v61 = vpack.c.bf16 %v4323_v48, %v4323_v48  ;;  %v6369_v62 = vpack.c.bf16 %v4193_v49, %v4193_v49  ;;  %v3679_v63 = vld [vmem:[#allocation2 + $0xd0] sm:$0xff]  ;;  %v6769_v3 = vpop.f32.mrb[30].mxu0  ;;  %v678_v4 = vld [vmem:[#allocation2 + $0x4e8] sm:$0xff]  ;;  %v3293_v9 = vadd.f32 %v2738_v2, %v677_v51  ;;  %v6897_v11 = vpop.f32.mrb[30].mxu1 }
 0x129   : > { %5601 = vst.msk [vmem:[%s8023_s29 + $0x250] sm:$0xf] %vm5452_vm4, %v6496_v53  ;;  %5476 = vst.msk [vmem:[%s8023_s29 + $0x5c] sm:$0xf] %vm5452_vm4, %v6371_v54  ;;  %v6497_v5 = vpack.c.bf16 %v4321_v55, %v4321_v55  ;;  %v3942_v6 = vadd.f32 %v7999_v18, %v3679_v63  ;;  %v3807_v7 = vld [vmem:[#allocation2 + $0x4d0] sm:$0xff]  ;;  %v3168_v10 = vadd.f32 %v6769_v3, %v552_v52  ;;  %v2229_v12 = vpop.f32.mrb[31].mxu0 }
 0x12a   : > { %v3677_v8 = vld [vmem:[#allocation2 + $0xc0] sm:$0xff]  ;;  %3424 = vst.msk [vmem:[#allocation2 + $0xf0] sm:$0xff] %vm264_vm3, %v3167_v56  ;;  %v4070_v13 = vadd.f32 %v7999_v18, %v3807_v7  ;;  %3552 = vst.msk [vmem:[#allocation2 + $0x4f0] sm:$0xff] %vm264_vm3, %v3295_v0  ;;  %v3296_v17 = vadd.f32 %v6897_v11, %v680_v59  ;;  %v3166_v19 = vadd.f32 %v2229_v12, %v550_v60  ;;  %v2741_v20 = vpop.f32.mrb[31].mxu1  ;;  %v555_v32 = vld [vmem:[#allocation2 + $0x110] sm:$0xff]  ;;  %v6772_v43 = vpop.f32.mrb[32].mxu0 }
 0x12b   : > { %5604 = vst.msk [vmem:[%s8023_s29 + $0x25c] sm:$0xf] %vm5452_vm4, %v6499_v61  ;;  %5474 = vst.msk [vmem:[%s8023_s29 + $0x54] sm:$0xf] %vm5452_vm4, %v6369_v62  ;;  %v3940_v14 = vadd.f32 %v7999_v18, %v3677_v8  ;;  %v3805_v15 = vld [vmem:[#allocation2 + $0x4c0] sm:$0xff]  ;;  %v4198_v21 = vmax.f32 %v3942_v6, 0.0  ;;  %v3294_v26 = vadd.f32 %v2741_v20, %v678_v4  ;;  %v3171_v49 = vadd.f32 %v6772_v43, %v555_v32 }
 0x12c   : > { %v3680_v16 = vld [vmem:[#allocation2 + $0xd8] sm:$0xff]  ;;  %3422 = vst.msk [vmem:[#allocation2 + $0xe0] sm:$0xff] %vm264_vm3, %v3165_v1  ;;  %v4068_v22 = vadd.f32 %v7999_v18, %v3805_v15  ;;  %3550 = vst.msk [vmem:[#allocation2 + $0x4e0] sm:$0xff] %vm264_vm3, %v3293_v9  ;;  %v4326_v27 = vmax.f32 %v4070_v13, 0.0  ;;  %v8247_v36 = vld [vmem:[%s9085_s2] ss:$0 sm:$0xff] }
 0x12d   : > { %5602 = vst.msk [vmem:[%s8023_s29 + $0x254] sm:$0xf] %vm5452_vm4, %v6497_v5  ;;  %v3943_v23 = vadd.f32 %v7999_v18, %v3680_v16  ;;  %v3808_v24 = vld [vmem:[#allocation2 + $0x4d8] sm:$0xff]  ;;  %v3678_v25 = vld [vmem:[#allocation2 + $0xc8] sm:$0xff]  ;;  %v4196_v28 = vmax.f32 %v3940_v14, 0.0  ;;  %v6374_v33 = vpack.c.bf16 %v4198_v21, %v4198_v21  ;;  %v553_v38 = vld [vmem:[#allocation2 + $0x100] sm:$0xff] }
 0x12e   : > { %3425 = vst.msk [vmem:[#allocation2 + $0xf8] sm:$0xff] %vm264_vm3, %v3168_v10  ;;  %v4071_v29 = vadd.f32 %v7999_v18, %v3808_v24  ;;  %v3941_v30 = vadd.f32 %v7999_v18, %v3678_v25  ;;  %v3806_v31 = vld [vmem:[#allocation2 + $0x4c8] sm:$0xff]  ;;  %3553 = vst.msk [vmem:[#allocation2 + $0x4f8] sm:$0xff] %vm264_vm3, %v3296_v17  ;;  %v4324_v34 = vmax.f32 %v4068_v22, 0.0  ;;  %v683_v18 = vld [vmem:[#allocation2 + $0x510] sm:$0xff]  ;;  %v6502_v39 = vpack.c.bf16 %v4326_v27, %v4326_v27  ;;  %v6900_v50 = vpop.f32.mrb[32].mxu1 }
 0x12f   : > { %3423 = vst.msk [vmem:[#allocation2 + $0xe8] sm:$0xff] %vm264_vm3, %v3166_v19  ;;  %v4199_v35 = vmax.f32 %v3943_v23, 0.0  ;;  %v4069_v37 = vadd.f32 %v8247_v36, %v3806_v31  ;;  %3551 = vst.msk [vmem:[#allocation2 + $0x4e8] sm:$0xff] %vm264_vm3, %v3294_v26  ;;  %v6372_v40 = vpack.c.bf16 %v4196_v28, %v4196_v28  ;;  %v681_v44 = vld [vmem:[#allocation2 + $0x500] sm:$0xff]  ;;  %v556_v45 = vld [vmem:[#allocation2 + $0x118] sm:$0xff]  ;;  %v2242_v51 = vpop.f32.mrb[33].mxu0  ;;  %v3299_v57 = vadd.f32 %v6900_v50, %v683_v18 }
 0x130   : > { %v4327_v41 = vmax.f32 %v4071_v29, 0.0  ;;  %v4197_v42 = vmax.f32 %v3941_v30, 0.0  ;;  %5479 = vst.msk [vmem:[%s8023_s29 + $0x68] sm:$0xf] %vm5452_vm4, %v6374_v33  ;;  %v6500_v46 = vpack.c.bf16 %v4324_v34, %v4324_v34  ;;  %v684_v52 = vld [vmem:[#allocation2 + $0x518] sm:$0xff]  ;;  %v554_v53 = vld [vmem:[#allocation2 + $0x108] sm:$0xff]  ;;  %v3169_v58 = vadd.f32 %v2242_v51, %v553_v38 }
 0x131   : > { %v6375_v47 = vpack.c.bf16 %v4199_v35, %v4199_v35  ;;  %v4325_v48 = vmax.f32 %v4069_v37, 0.0  ;;  %5607 = vst.msk [vmem:[%s8023_s29 + $0x268] sm:$0xf] %vm5452_vm4, %v6502_v39  ;;  %5477 = vst.msk [vmem:[%s8023_s29 + $0x60] sm:$0xf] %vm5452_vm4, %v6372_v40  ;;  %v3683_v56 = vld [vmem:[#allocation2 + $0xf0] sm:$0xff] }
 0x132   : > { %v6503_v54 = vpack.c.bf16 %v4327_v41, %v4327_v41  ;;  %v6373_v55 = vpack.c.bf16 %v4197_v42, %v4197_v42  ;;  %v2754_v59 = vpop.f32.mrb[33].mxu1  ;;  %v6773_v60 = vpop.f32.mrb[34].mxu0  ;;  %v682_v61 = vld [vmem:[#allocation2 + $0x508] sm:$0xff]  ;;  %5605 = vst.msk [vmem:[%s8023_s29 + $0x260] sm:$0xf] %vm5452_vm4, %v6500_v46  ;;  %v3946_v63 = vadd.f32 %v8247_v36, %v3683_v56  ;;  %v3811_v0 = vld [vmem:[#allocation2 + $0x4f0] sm:$0xff] }
 0x133   : > { %5480 = vst.msk [vmem:[%s8023_s29 + $0x6c] sm:$0xf] %vm5452_vm4, %v6375_v47  ;;  %v6501_v62 = vpack.c.bf16 %v4325_v48, %v4325_v48  ;;  %v3681_v1 = vld [vmem:[#allocation2 + $0xe0] sm:$0xff]  ;;  %v3297_v2 = vadd.f32 %v2754_v59, %v681_v44  ;;  %v3172_v3 = vadd.f32 %v6773_v60, %v556_v45  ;;  %v6901_v4 = vpop.f32.mrb[34].mxu1  ;;  %v2245_v5 = vpop.f32.mrb[35].mxu0  ;;  %v4074_v6 = vadd.f32 %v8247_v36, %v3811_v0  ;;  %v559_v25 = vld [vmem:[#allocation2 + $0x130] sm:$0xff] }
 0x134   : > { %3428 = vst.msk [vmem:[#allocation2 + $0x110] sm:$0xff] %vm264_vm3, %v3171_v49  ;;  %v3944_v7 = vadd.f32 %v8247_v36, %v3681_v1  ;;  %v3809_v8 = vld [vmem:[#allocation2 + $0x4e0] sm:$0xff]  ;;  %3556 = vst.msk [vmem:[#allocation2 + $0x510] sm:$0xff] %vm264_vm3, %v3299_v57  ;;  %v3300_v10 = vadd.f32 %v6901_v4, %v684_v52  ;;  %v3170_v11 = vadd.f32 %v2245_v5, %v554_v53  ;;  %v2757_v12 = vpop.f32.mrb[35].mxu1  ;;  %v4202_v13 = vmax.f32 %v3946_v63, 0.0  ;;  %v687_v30 = vld [vmem:[#allocation2 + $0x530] sm:$0xff] }
 0x135   : > { %5608 = vst.msk [vmem:[%s8023_s29 + $0x26c] sm:$0xf] %vm5452_vm4, %v6503_v54  ;;  %5478 = vst.msk [vmem:[%s8023_s29 + $0x64] sm:$0xf] %vm5452_vm4, %v6373_v55  ;;  %v3684_v9 = vld [vmem:[#allocation2 + $0xf8] sm:$0xff]  ;;  %v4072_v14 = vadd.f32 %v8247_v36, %v3809_v8  ;;  %v3298_v19 = vadd.f32 %v2757_v12, %v682_v61  ;;  %v4330_v20 = vmax.f32 %v4074_v6, 0.0 }
 0x136   : > { %3426 = vst.msk [vmem:[#allocation2 + $0x100] sm:$0xff] %vm264_vm3, %v3169_v58  ;;  %v3947_v15 = vadd.f32 %v8247_v36, %v3684_v9  ;;  %v3812_v16 = vld [vmem:[#allocation2 + $0x4f8] sm:$0xff]  ;;  %v3682_v17 = vld [vmem:[#allocation2 + $0xe8] sm:$0xff]  ;;  %3554 = vst.msk [vmem:[#allocation2 + $0x500] sm:$0xff] %vm264_vm3, %v3297_v2  ;;  %v4200_v21 = vmax.f32 %v3944_v7, 0.0  ;;  %v6378_v26 = vpack.c.bf16 %v4202_v13, %v4202_v13  ;;  %v6776_v37 = vpop.f32.mrb[36].mxu0 }
 0x137   : > { %5606 = vst.msk [vmem:[%s8023_s29 + $0x264] sm:$0xf] %vm5452_vm4, %v6501_v62  ;;  %v4075_v22 = vadd.f32 %v8247_v36, %v3812_v16  ;;  %v3945_v23 = vadd.f32 %v8247_v36, %v3682_v17  ;;  %v3810_v24 = vld [vmem:[#allocation2 + $0x4e8] sm:$0xff]  ;;  %v4328_v27 = vmax.f32 %v4072_v14, 0.0  ;;  %v557_v31 = vld [vmem:[#allocation2 + $0x120] sm:$0xff]  ;;  %v6506_v32 = vpack.c.bf16 %v4330_v20, %v4330_v20  ;;  %v560_v38 = vld [vmem:[#allocation2 + $0x138] sm:$0xff] }
 0x138   : > { %3429 = vst.msk [vmem:[#allocation2 + $0x118] sm:$0xff] %vm264_vm3, %v3172_v3  ;;  %3557 = vst.msk [vmem:[#allocation2 + $0x518] sm:$0xff] %vm264_vm3, %v3300_v10  ;;  %v4203_v28 = vmax.f32 %v3947_v15, 0.0  ;;  %v4073_v29 = vadd.f32 %v8247_v36, %v3810_v24  ;;  %v6376_v33 = vpack.c.bf16 %v4200_v21, %v4200_v21  ;;  %v685_v18 = vld [vmem:[#allocation2 + $0x520] sm:$0xff]  ;;  %v3175_v42 = vadd.f32 %v6776_v37, %v559_v25  ;;  %v6904_v43 = vpop.f32.mrb[36].mxu1  ;;  %v2258_v44 = vpop.f32.mrb[37].mxu0 }
 0x139   : > { %3427 = vst.msk [vmem:[#allocation2 + $0x108] sm:$0xff] %vm264_vm3, %v3170_v11  ;;  %3555 = vst.msk [vmem:[#allocation2 + $0x508] sm:$0xff] %vm264_vm3, %v3298_v19  ;;  %v4331_v34 = vmax.f32 %v4075_v22, 0.0  ;;  %v4201_v35 = vmax.f32 %v3945_v23, 0.0  ;;  %v6504_v39 = vpack.c.bf16 %v4328_v27, %v4328_v27  ;;  %v688_v45 = vld [vmem:[#allocation2 + $0x538] sm:$0xff]  ;;  %v558_v46 = vld [vmem:[#allocation2 + $0x128] sm:$0xff]  ;;  %v3303_v50 = vadd.f32 %v6904_v43, %v687_v30 }
 0x13a   : > { %5483 = vst.msk [vmem:[%s8023_s29 + $0x78] sm:$0xf] %vm5452_vm4, %v6378_v26  ;;  %v6379_v40 = vpack.c.bf16 %v4203_v28, %v4203_v28  ;;  %v4329_v41 = vmax.f32 %v4073_v29, 0.0  ;;  %5611 = vst.msk [vmem:[%s8023_s29 + $0x278] sm:$0xf] %vm5452_vm4, %v6506_v32  ;;  %v3173_v51 = vadd.f32 %v2258_v44, %v557_v31  ;;  %v2770_v52 = vpop.f32.mrb[37].mxu1 }
 0x13b   : > { %5481 = vst.msk [vmem:[%s8023_s29 + $0x70] sm:$0xf] %vm5452_vm4, %v6376_v33  ;;  %v6507_v47 = vpack.c.bf16 %v4331_v34, %v4331_v34  ;;  %v6377_v48 = vpack.c.bf16 %v4201_v35, %v4201_v35  ;;  %v3687_v49 = vld [vmem:[#allocation2 + $0x110] sm:$0xff]  ;;  %v6777_v53 = vpop.f32.mrb[38].mxu0  ;;  %v686_v54 = vld [vmem:[#allocation2 + $0x528] sm:$0xff]  ;;  %v3301_v59 = vadd.f32 %v2770_v52, %v685_v18  ;;  %v6905_v61 = vpop.f32.mrb[38].mxu1 }
 0x13c   : > { %5609 = vst.msk [vmem:[%s8023_s29 + $0x270] sm:$0xf] %vm5452_vm4, %v6504_v39  ;;  %5484 = vst.msk [vmem:[%s8023_s29 + $0x7c] sm:$0xf] %vm5452_vm4, %v6379_v40  ;;  %v6505_v55 = vpack.c.bf16 %v4329_v41, %v4329_v41  ;;  %v3950_v56 = vadd.f32 %v8247_v36, %v3687_v49  ;;  %v3815_v57 = vld [vmem:[#allocation2 + $0x510] sm:$0xff]  ;;  %v3176_v60 = vadd.f32 %v6777_v53, %v560_v38  ;;  %v2261_v62 = vpop.f32.mrb[39].mxu0 }
 0x13d   : > { %v3685_v58 = vld [vmem:[#allocation2 + $0x100] sm:$0xff]  ;;  %3432 = vst.msk [vmem:[#allocation2 + $0x130] sm:$0xff] %vm264_vm3, %v3175_v42  ;;  %v4078_v63 = vadd.f32 %v8247_v36, %v3815_v57  ;;  %3560 = vst.msk [vmem:[#allocation2 + $0x530] sm:$0xff] %vm264_vm3, %v3303_v50  ;;  %v3304_v3 = vadd.f32 %v6905_v61, %v688_v45  ;;  %v3174_v4 = vadd.f32 %v2261_v62, %v558_v46  ;;  %v2773_v5 = vpop.f32.mrb[39].mxu1  ;;  %v563_v17 = vld [vmem:[#allocation2 + $0x150] sm:$0xff]  ;;  %v6780_v29 = vpop.f32.mrb[40].mxu0 }
 0x13e   : > { %5612 = vst.msk [vmem:[%s8023_s29 + $0x27c] sm:$0xf] %vm5452_vm4, %v6507_v47  ;;  %5482 = vst.msk [vmem:[%s8023_s29 + $0x74] sm:$0xf] %vm5452_vm4, %v6377_v48  ;;  %v3948_v0 = vadd.f32 %v8247_v36, %v3685_v58  ;;  %v3813_v1 = vld [vmem:[#allocation2 + $0x500] sm:$0xff]  ;;  %v4206_v6 = vmax.f32 %v3950_v56, 0.0  ;;  %v3302_v11 = vadd.f32 %v2773_v5, %v686_v54  ;;  %v3179_v35 = vadd.f32 %v6780_v29, %v563_v17 }
 0x13f   : > { %v3688_v2 = vld [vmem:[#allocation2 + $0x118] sm:$0xff]  ;;  %3430 = vst.msk [vmem:[#allocation2 + $0x120] sm:$0xff] %vm264_vm3, %v3173_v51  ;;  %v4076_v7 = vadd.f32 %v8247_v36, %v3813_v1  ;;  %3558 = vst.msk [vmem:[#allocation2 + $0x520] sm:$0xff] %vm264_vm3, %v3301_v59  ;;  %v4334_v12 = vmax.f32 %v4078_v63, 0.0  ;;  %v691_v23 = vld [vmem:[#allocation2 + $0x550] sm:$0xff]  ;;  %v6908_v37 = vpop.f32.mrb[40].mxu1 }
 0x140   : > { %5610 = vst.msk [vmem:[%s8023_s29 + $0x274] sm:$0xf] %vm5452_vm4, %v6505_v55  ;;  %v3951_v8 = vadd.f32 %v8247_v36, %v3688_v2  ;;  %v3816_v9 = vld [vmem:[#allocation2 + $0x518] sm:$0xff]  ;;  %v3686_v10 = vld [vmem:[#allocation2 + $0x108] sm:$0xff]  ;;  %v4204_v13 = vmax.f32 %v3948_v0, 0.0  ;;  %v6382_v19 = vpack.c.bf16 %v4206_v6, %v4206_v6  ;;  %v561_v24 = vld [vmem:[#allocation2 + $0x140] sm:$0xff]  ;;  %v3307_v43 = vadd.f32 %v6908_v37, %v691_v23 }
 0x141   : > { %3433 = vst.msk [vmem:[#allocation2 + $0x138] sm:$0xff] %vm264_vm3, %v3176_v60  ;;  %v4079_v14 = vadd.f32 %v8247_v36, %v3816_v9  ;;  %v3949_v15 = vadd.f32 %v8247_v36, %v3686_v10  ;;  %v3814_v16 = vld [vmem:[#allocation2 + $0x508] sm:$0xff]  ;;  %3561 = vst.msk [vmem:[#allocation2 + $0x538] sm:$0xff] %vm264_vm3, %v3304_v3  ;;  %v4332_v20 = vmax.f32 %v4076_v7, 0.0  ;;  %v6510_v25 = vpack.c.bf16 %v4334_v12, %v4334_v12  ;;  %v689_v30 = vld [vmem:[#allocation2 + $0x540] sm:$0xff]  ;;  %v2274_v18 = vpop.f32.mrb[41].mxu0 }
 0x142   : > { %3431 = vst.msk [vmem:[#allocation2 + $0x128] sm:$0xff] %vm264_vm3, %v3174_v4  ;;  %v4207_v21 = vmax.f32 %v3951_v8, 0.0  ;;  %v4077_v22 = vadd.f32 %v8247_v36, %v3814_v16  ;;  %3559 = vst.msk [vmem:[#allocation2 + $0x528] sm:$0xff] %vm264_vm3, %v3302_v11  ;;  %v6380_v26 = vpack.c.bf16 %v4204_v13, %v4204_v13  ;;  %v564_v31 = vld [vmem:[#allocation2 + $0x158] sm:$0xff]  ;;  %v562_v39 = vld [vmem:[#allocation2 + $0x148] sm:$0xff]  ;;  %v3177_v44 = vadd.f32 %v2274_v18, %v561_v24  ;;  %v2786_v45 = vpop.f32.mrb[41].mxu1 }
 0x143   : > { %v4335_v27 = vmax.f32 %v4079_v14, 0.0  ;;  %v4205_v28 = vmax.f32 %v3949_v15, 0.0  ;;  %5487 = vst.msk [vmem:[%s8023_s29 + $0x88] sm:$0xf] %vm5452_vm4, %v6382_v19  ;;  %v6508_v32 = vpack.c.bf16 %v4332_v20, %v4332_v20  ;;  %v692_v38 = vld [vmem:[#allocation2 + $0x558] sm:$0xff]  ;;  %v6781_v46 = vpop.f32.mrb[42].mxu0  ;;  %v3305_v52 = vadd.f32 %v2786_v45, %v689_v30 }
 0x144   : > { %v6383_v33 = vpack.c.bf16 %v4207_v21, %v4207_v21  ;;  %v4333_v34 = vmax.f32 %v4077_v22, 0.0  ;;  %5615 = vst.msk [vmem:[%s8023_s29 + $0x288] sm:$0xf] %vm5452_vm4, %v6510_v25  ;;  %5485 = vst.msk [vmem:[%s8023_s29 + $0x80] sm:$0xf] %vm5452_vm4, %v6380_v26  ;;  %v3691_v42 = vld [vmem:[#allocation2 + $0x130] sm:$0xff]  ;;  %v3180_v53 = vadd.f32 %v6781_v46, %v564_v31 }
 0x145   : > { %v6511_v40 = vpack.c.bf16 %v4335_v27, %v4335_v27  ;;  %v6381_v41 = vpack.c.bf16 %v4205_v28, %v4205_v28  ;;  %v690_v47 = vld [vmem:[#allocation2 + $0x548] sm:$0xff]  ;;  %5613 = vst.msk [vmem:[%s8023_s29 + $0x280] sm:$0xf] %vm5452_vm4, %v6508_v32  ;;  %v3954_v49 = vadd.f32 %v8247_v36, %v3691_v42  ;;  %v3819_v50 = vld [vmem:[#allocation2 + $0x530] sm:$0xff]  ;;  %v6909_v54 = vpop.f32.mrb[42].mxu1  ;;  %v2277_v55 = vpop.f32.mrb[43].mxu0 }
 0x146   : > { %5488 = vst.msk [vmem:[%s8023_s29 + $0x8c] sm:$0xf] %vm5452_vm4, %v6383_v33  ;;  %v6509_v48 = vpack.c.bf16 %v4333_v34, %v4333_v34  ;;  %v3689_v51 = vld [vmem:[#allocation2 + $0x120] sm:$0xff]  ;;  %v4082_v56 = vadd.f32 %v8247_v36, %v3819_v50  ;;  %v3308_v60 = vadd.f32 %v6909_v54, %v692_v38  ;;  %v3178_v61 = vadd.f32 %v2277_v55, %v562_v39  ;;  %v2789_v62 = vpop.f32.mrb[43].mxu1  ;;  %v567_v10 = vld [vmem:[#allocation2 + $0x170] sm:$0xff]  ;;  %v6784_v22 = vpop.f32.mrb[44].mxu0 }
 0x147   : > { %3436 = vst.msk [vmem:[#allocation2 + $0x150] sm:$0xff] %vm264_vm3, %v3179_v35  ;;  %v3952_v57 = vadd.f32 %v8247_v36, %v3689_v51  ;;  %v3817_v58 = vld [vmem:[#allocation2 + $0x520] sm:$0xff]  ;;  %3564 = vst.msk [vmem:[#allocation2 + $0x550] sm:$0xff] %vm264_vm3, %v3307_v43  ;;  %v4210_v63 = vmax.f32 %v3954_v49, 0.0  ;;  %v3306_v4 = vadd.f32 %v2789_v62, %v690_v47  ;;  %v695_v15 = vld [vmem:[#allocation2 + $0x570] sm:$0xff]  ;;  %v3183_v28 = vadd.f32 %v6784_v22, %v567_v10  ;;  %v6912_v29 = vpop.f32.mrb[44].mxu1 }
 0x148   : > { %5616 = vst.msk [vmem:[%s8023_s29 + $0x28c] sm:$0xf] %vm5452_vm4, %v6511_v40  ;;  %5486 = vst.msk [vmem:[%s8023_s29 + $0x84] sm:$0xf] %vm5452_vm4, %v6381_v41  ;;  %v3692_v59 = vld [vmem:[#allocation2 + $0x138] sm:$0xff]  ;;  %v4080_v0 = vadd.f32 %v8247_v36, %v3817_v58  ;;  %v4338_v5 = vmax.f32 %v4082_v56, 0.0  ;;  %v3311_v37 = vadd.f32 %v6912_v29, %v695_v15 }
 0x149   : > { %3434 = vst.msk [vmem:[#allocation2 + $0x140] sm:$0xff] %vm264_vm3, %v3177_v44  ;;  %v3955_v1 = vadd.f32 %v8247_v36, %v3692_v59  ;;  %v3820_v2 = vld [vmem:[#allocation2 + $0x538] sm:$0xff]  ;;  %v3690_v3 = vld [vmem:[#allocation2 + $0x128] sm:$0xff]  ;;  %3562 = vst.msk [vmem:[#allocation2 + $0x540] sm:$0xff] %vm264_vm3, %v3305_v52  ;;  %v4208_v6 = vmax.f32 %v3952_v57, 0.0  ;;  %v6386_v11 = vpack.c.bf16 %v4210_v63, %v4210_v63  ;;  %v2290_v30 = vpop.f32.mrb[45].mxu0 }
 0x14a   : > { %5614 = vst.msk [vmem:[%s8023_s29 + $0x284] sm:$0xf] %vm5452_vm4, %v6509_v48  ;;  %v4083_v7 = vadd.f32 %v8247_v36, %v3820_v2  ;;  %v3953_v8 = vadd.f32 %v8247_v36, %v3690_v3  ;;  %v3818_v9 = vld [vmem:[#allocation2 + $0x528] sm:$0xff]  ;;  %v4336_v12 = vmax.f32 %v4080_v0, 0.0  ;;  %v565_v16 = vld [vmem:[#allocation2 + $0x160] sm:$0xff]  ;;  %v6514_v17 = vpack.c.bf16 %v4338_v5, %v4338_v5  ;;  %v568_v24 = vld [vmem:[#allocation2 + $0x178] sm:$0xff] }
 0x14b   : > { %3437 = vst.msk [vmem:[#allocation2 + $0x158] sm:$0xff] %vm264_vm3, %v3180_v53  ;;  %3565 = vst.msk [vmem:[#allocation2 + $0x558] sm:$0xff] %vm264_vm3, %v3308_v60  ;;  %v4211_v13 = vmax.f32 %v3955_v1, 0.0  ;;  %v4081_v14 = vadd.f32 %v8247_v36, %v3818_v9  ;;  %v6384_v19 = vpack.c.bf16 %v4208_v6, %v4208_v6  ;;  %v693_v23 = vld [vmem:[#allocation2 + $0x560] sm:$0xff]  ;;  %v696_v31 = vld [vmem:[#allocation2 + $0x578] sm:$0xff]  ;;  %v3181_v18 = vadd.f32 %v2290_v30, %v565_v16  ;;  %v2802_v38 = vpop.f32.mrb[45].mxu1 }
 0x14c   : > { %3435 = vst.msk [vmem:[#allocation2 + $0x148] sm:$0xff] %vm264_vm3, %v3178_v61  ;;  %3563 = vst.msk [vmem:[#allocation2 + $0x548] sm:$0xff] %vm264_vm3, %v3306_v4  ;;  %v4339_v20 = vmax.f32 %v4083_v7, 0.0  ;;  %v4209_v21 = vmax.f32 %v3953_v8, 0.0  ;;  %v6512_v25 = vpack.c.bf16 %v4336_v12, %v4336_v12  ;;  %v566_v32 = vld [vmem:[#allocation2 + $0x168] sm:$0xff]  ;;  %v6785_v39 = vpop.f32.mrb[46].mxu0  ;;  %v3309_v45 = vadd.f32 %v2802_v38, %v693_v23 }
 0x14d   : > { %5491 = vst.msk [vmem:[%s8023_s29 + $0x98] sm:$0xf] %vm5452_vm4, %v6386_v11  ;;  %v6387_v26 = vpack.c.bf16 %v4211_v13, %v4211_v13  ;;  %v4337_v27 = vmax.f32 %v4081_v14, 0.0  ;;  %5619 = vst.msk [vmem:[%s8023_s29 + $0x298] sm:$0xf] %vm5452_vm4, %v6514_v17  ;;  %v694_v40 = vld [vmem:[#allocation2 + $0x568] sm:$0xff]  ;;  %v3184_v46 = vadd.f32 %v6785_v39, %v568_v24 }
 0x14e   : > { %5489 = vst.msk [vmem:[%s8023_s29 + $0x90] sm:$0xf] %vm5452_vm4, %v6384_v19  ;;  %v6515_v33 = vpack.c.bf16 %v4339_v20, %v4339_v20  ;;  %v6385_v34 = vpack.c.bf16 %v4209_v21, %v4209_v21  ;;  %v3695_v35 = vld [vmem:[#allocation2 + $0x150] sm:$0xff]  ;;  %5617 = vst.msk [vmem:[%s8023_s29 + $0x290] sm:$0xf] %vm5452_vm4, %v6512_v25  ;;  %v6913_v47 = vpop.f32.mrb[46].mxu1 }
 0x14f   : > { %5492 = vst.msk [vmem:[%s8023_s29 + $0x9c] sm:$0xf] %vm5452_vm4, %v6387_v26  ;;  %v6513_v41 = vpack.c.bf16 %v4337_v27, %v4337_v27  ;;  %v3958_v42 = vadd.f32 %v8247_v36, %v3695_v35  ;;  %v3823_v43 = vld [vmem:[#allocation2 + $0x550] sm:$0xff]  ;;  %v2293_v48 = vpop.f32.mrb[47].mxu0  ;;  %v3312_v53 = vadd.f32 %v6913_v47, %v696_v31  ;;  %v2805_v55 = vpop.f32.mrb[47].mxu1  ;;  %v569_v9 = vld [vmem:[#allocation2 + $0x180] sm:$0xff] }
 0x150   : > { %v3693_v44 = vld [vmem:[#allocation2 + $0x140] sm:$0xff]  ;;  %3440 = vst.msk [vmem:[#allocation2 + $0x170] sm:$0xff] %vm264_vm3, %v3183_v28  ;;  %v4086_v49 = vadd.f32 %v8247_v36, %v3823_v43  ;;  %3568 = vst.msk [vmem:[#allocation2 + $0x570] sm:$0xff] %vm264_vm3, %v3311_v37  ;;  %v3182_v54 = vadd.f32 %v2293_v48, %v566_v32  ;;  %v3310_v61 = vadd.f32 %v2805_v55, %v694_v40  ;;  %v571_v3 = vld [vmem:[#allocation2 + $0x190] sm:$0xff]  ;;  %v6788_v14 = vpop.f32.mrb[48].mxu0  ;;  %v6916_v22 = vpop.f32.mrb[48].mxu1 }
 0x151   : > { %5620 = vst.msk [vmem:[%s8023_s29 + $0x29c] sm:$0xf] %vm5452_vm4, %v6515_v33  ;;  %5490 = vst.msk [vmem:[%s8023_s29 + $0x94] sm:$0xf] %vm5452_vm4, %v6385_v34  ;;  %v3956_v50 = vadd.f32 %v8247_v36, %v3693_v44  ;;  %v3821_v51 = vld [vmem:[#allocation2 + $0x540] sm:$0xff]  ;;  %v4214_v56 = vmax.f32 %v3958_v42, 0.0  ;;  %v3187_v21 = vadd.f32 %v6788_v14, %v571_v3 }
 0x152   : > { %v3696_v52 = vld [vmem:[#allocation2 + $0x158] sm:$0xff]  ;;  %3438 = vst.msk [vmem:[#allocation2 + $0x160] sm:$0xff] %vm264_vm3, %v3181_v18  ;;  %v4084_v57 = vadd.f32 %v8247_v36, %v3821_v51  ;;  %3566 = vst.msk [vmem:[#allocation2 + $0x560] sm:$0xff] %vm264_vm3, %v3309_v45  ;;  %v4342_v62 = vmax.f32 %v4086_v49, 0.0  ;;  %v699_v8 = vld [vmem:[#allocation2 + $0x590] sm:$0xff]  ;;  %v2306_v23 = vpop.f32.mrb[49].mxu0 }
 0x153   : > { %5618 = vst.msk [vmem:[%s8023_s29 + $0x294] sm:$0xf] %vm5452_vm4, %v6513_v41  ;;  %v3959_v58 = vadd.f32 %v8247_v36, %v3696_v52  ;;  %v3824_v59 = vld [vmem:[#allocation2 + $0x558] sm:$0xff]  ;;  %v3694_v60 = vld [vmem:[#allocation2 + $0x148] sm:$0xff]  ;;  %v4212_v63 = vmax.f32 %v3956_v50, 0.0  ;;  %v6390_v4 = vpack.c.bf16 %v4214_v56, %v4214_v56  ;;  %v697_v15 = vld [vmem:[#allocation2 + $0x580] sm:$0xff]  ;;  %v3315_v29 = vadd.f32 %v6916_v22, %v699_v8 }
 0x154   : > { %3441 = vst.msk [vmem:[#allocation2 + $0x178] sm:$0xff] %vm264_vm3, %v3184_v46  ;;  %v4087_v0 = vadd.f32 %v8247_v36, %v3824_v59  ;;  %v3957_v1 = vadd.f32 %v8247_v36, %v3694_v60  ;;  %v3822_v2 = vld [vmem:[#allocation2 + $0x548] sm:$0xff]  ;;  %3569 = vst.msk [vmem:[#allocation2 + $0x578] sm:$0xff] %vm264_vm3, %v3312_v53  ;;  %v4340_v5 = vmax.f32 %v4084_v57, 0.0  ;;  %v6518_v10 = vpack.c.bf16 %v4342_v62, %v4342_v62  ;;  %v572_v16 = vld [vmem:[#allocation2 + $0x198] sm:$0xff]  ;;  %v2818_v31 = vpop.f32.mrb[49].mxu1 }
 0x155   : > { %3439 = vst.msk [vmem:[#allocation2 + $0x168] sm:$0xff] %vm264_vm3, %v3182_v54  ;;  %v4215_v6 = vmax.f32 %v3959_v58, 0.0  ;;  %v4085_v7 = vadd.f32 %v8247_v36, %v3822_v2  ;;  %3567 = vst.msk [vmem:[#allocation2 + $0x568] sm:$0xff] %vm264_vm3, %v3310_v61  ;;  %v6388_v11 = vpack.c.bf16 %v4212_v63, %v4212_v63  ;;  %v700_v24 = vld [vmem:[#allocation2 + $0x598] sm:$0xff]  ;;  %v570_v25 = vld [vmem:[#allocation2 + $0x188] sm:$0xff]  ;;  %v3185_v30 = vadd.f32 %v2306_v23, %v569_v9  ;;  %v6789_v32 = vpop.f32.mrb[50].mxu0 }
 0x156   : > { %v4343_v12 = vmax.f32 %v4087_v0, 0.0  ;;  %v4213_v13 = vmax.f32 %v3957_v1, 0.0  ;;  %5495 = vst.msk [vmem:[%s8023_s29 + $0xa8] sm:$0xf] %vm5452_vm4, %v6390_v4  ;;  %v6516_v17 = vpack.c.bf16 %v4340_v5, %v4340_v5  ;;  %5623 = vst.msk [vmem:[%s8023_s29 + $0x2a8] sm:$0xf] %vm5452_vm4, %v6518_v10  ;;  %v3313_v38 = vadd.f32 %v2818_v31, %v697_v15 }
 0x157   : > { %v6391_v19 = vpack.c.bf16 %v4215_v6, %v4215_v6  ;;  %v4341_v20 = vmax.f32 %v4085_v7, 0.0  ;;  %5493 = vst.msk [vmem:[%s8023_s29 + $0xa0] sm:$0xf] %vm5452_vm4, %v6388_v11  ;;  %v3699_v28 = vld [vmem:[#allocation2 + $0x170] sm:$0xff]  ;;  %v698_v33 = vld [vmem:[#allocation2 + $0x588] sm:$0xff]  ;;  %v3188_v39 = vadd.f32 %v6789_v32, %v572_v16  ;;  %v6917_v40 = vpop.f32.mrb[50].mxu1 }
 0x158   : > { %v6519_v26 = vpack.c.bf16 %v4343_v12, %v4343_v12  ;;  %v6389_v27 = vpack.c.bf16 %v4213_v13, %v4213_v13  ;;  %5621 = vst.msk [vmem:[%s8023_s29 + $0x2a0] sm:$0xf] %vm5452_vm4, %v6516_v17  ;;  %v3962_v35 = vadd.f32 %v8247_v36, %v3699_v28  ;;  %v3827_v37 = vld [vmem:[#allocation2 + $0x570] sm:$0xff]  ;;  %v2309_v41 = vpop.f32.mrb[51].mxu0  ;;  %v3316_v46 = vadd.f32 %v6917_v40, %v700_v24  ;;  %v2821_v48 = vpop.f32.mrb[51].mxu1  ;;  %v573_v2 = vld [vmem:[#allocation2 + $0x1a0] sm:$0xff] }
 0x159   : > { %5496 = vst.msk [vmem:[%s8023_s29 + $0xac] sm:$0xf] %vm5452_vm4, %v6391_v19  ;;  %v6517_v34 = vpack.c.bf16 %v4341_v20, %v4341_v20  ;;  %v3697_v18 = vld [vmem:[#allocation2 + $0x160] sm:$0xff]  ;;  %v4090_v42 = vadd.f32 %v8247_v36, %v3827_v37  ;;  %v3186_v47 = vadd.f32 %v2309_v41, %v570_v25  ;;  %v3314_v54 = vadd.f32 %v2821_v48, %v698_v33  ;;  %v575_v60 = vld [vmem:[#allocation2 + $0x1b0] sm:$0xff]  ;;  %v6792_v7 = vpop.f32.mrb[52].mxu0  ;;  %v576_v9 = vld [vmem:[#allocation2 + $0x1b8] sm:$0xff] }
 0x15a   : > { %3444 = vst.msk [vmem:[#allocation2 + $0x190] sm:$0xff] %vm264_vm3, %v3187_v21  ;;  %v3960_v43 = vadd.f32 %v8247_v36, %v3697_v18  ;;  %v3825_v44 = vld [vmem:[#allocation2 + $0x560] sm:$0xff]  ;;  %3572 = vst.msk [vmem:[#allocation2 + $0x590] sm:$0xff] %vm264_vm3, %v3315_v29  ;;  %v4218_v49 = vmax.f32 %v3962_v35, 0.0  ;;  %v703_v1 = vld [vmem:[#allocation2 + $0x5b0] sm:$0xff]  ;;  %v3191_v13 = vadd.f32 %v6792_v7, %v575_v60  ;;  %v6920_v14 = vpop.f32.mrb[52].mxu1 }
 0x15b   : > { %5624 = vst.msk [vmem:[%s8023_s29 + $0x2ac] sm:$0xf] %vm5452_vm4, %v6519_v26  ;;  %5494 = vst.msk [vmem:[%s8023_s29 + $0xa4] sm:$0xf] %vm5452_vm4, %v6389_v27  ;;  %v3700_v45 = vld [vmem:[#allocation2 + $0x178] sm:$0xff]  ;;  %v4088_v50 = vadd.f32 %v8247_v36, %v3825_v44  ;;  %v4346_v55 = vmax.f32 %v4090_v42, 0.0  ;;  %v3319_v22 = vadd.f32 %v6920_v14, %v703_v1 }
 0x15c   : > { %3442 = vst.msk [vmem:[#allocation2 + $0x180] sm:$0xff] %vm264_vm3, %v3185_v30  ;;  %v3963_v51 = vadd.f32 %v8247_v36, %v3700_v45  ;;  %v3828_v52 = vld [vmem:[#allocation2 + $0x578] sm:$0xff]  ;;  %v3698_v53 = vld [vmem:[#allocation2 + $0x168] sm:$0xff]  ;;  %3570 = vst.msk [vmem:[#allocation2 + $0x580] sm:$0xff] %vm264_vm3, %v3313_v38  ;;  %v4216_v56 = vmax.f32 %v3960_v43, 0.0  ;;  %v6394_v61 = vpack.c.bf16 %v4218_v49, %v4218_v49  ;;  %v2322_v15 = vpop.f32.mrb[53].mxu0 }
 0x15d   : > { %5622 = vst.msk [vmem:[%s8023_s29 + $0x2a4] sm:$0xf] %vm5452_vm4, %v6517_v34  ;;  %v4091_v57 = vadd.f32 %v8247_v36, %v3828_v52  ;;  %v3961_v58 = vadd.f32 %v8247_v36, %v3698_v53  ;;  %v3826_v59 = vld [vmem:[#allocation2 + $0x568] sm:$0xff]  ;;  %v4344_v62 = vmax.f32 %v4088_v50, 0.0  ;;  %v6522_v3 = vpack.c.bf16 %v4346_v55, %v4346_v55  ;;  %v701_v8 = vld [vmem:[#allocation2 + $0x5a0] sm:$0xff]  ;;  %v704_v16 = vld [vmem:[#allocation2 + $0x5b8] sm:$0xff] }
 0x15e   : > { %3445 = vst.msk [vmem:[#allocation2 + $0x198] sm:$0xff] %vm264_vm3, %v3188_v39  ;;  %3573 = vst.msk [vmem:[#allocation2 + $0x598] sm:$0xff] %vm264_vm3, %v3316_v46  ;;  %v4219_v63 = vmax.f32 %v3963_v51, 0.0  ;;  %v4089_v0 = vadd.f32 %v8247_v36, %v3826_v59  ;;  %v6392_v4 = vpack.c.bf16 %v4216_v56, %v4216_v56  ;;  %v574_v17 = vld [vmem:[#allocation2 + $0x1a8] sm:$0xff]  ;;  %v3189_v23 = vadd.f32 %v2322_v15, %v573_v2  ;;  %v2834_v24 = vpop.f32.mrb[53].mxu1  ;;  %v6793_v25 = vpop.f32.mrb[54].mxu0 }
 0x15f   : > { %3443 = vst.msk [vmem:[#allocation2 + $0x188] sm:$0xff] %vm264_vm3, %v3186_v47  ;;  %3571 = vst.msk [vmem:[#allocation2 + $0x588] sm:$0xff] %vm264_vm3, %v3314_v54  ;;  %v4347_v5 = vmax.f32 %v4091_v57, 0.0  ;;  %v4217_v6 = vmax.f32 %v3961_v58, 0.0  ;;  %v6520_v10 = vpack.c.bf16 %v4344_v62, %v4344_v62  ;;  %v702_v26 = vld [vmem:[#allocation2 + $0x5a8] sm:$0xff]  ;;  %v3317_v31 = vadd.f32 %v2834_v24, %v701_v8  ;;  %v6921_v33 = vpop.f32.mrb[54].mxu1 }
 0x160   : > { %5499 = vst.msk [vmem:[%s8023_s29 + $0xb8] sm:$0xf] %vm5452_vm4, %v6394_v61  ;;  %v6395_v11 = vpack.c.bf16 %v4219_v63, %v4219_v63  ;;  %v4345_v12 = vmax.f32 %v4089_v0, 0.0  ;;  %5627 = vst.msk [vmem:[%s8023_s29 + $0x2b8] sm:$0xf] %vm5452_vm4, %v6522_v3  ;;  %v3192_v32 = vadd.f32 %v6793_v25, %v576_v9  ;;  %v2325_v34 = vpop.f32.mrb[55].mxu0  ;;  %v3320_v39 = vadd.f32 %v6921_v33, %v704_v16 }
 0x161   : > { %5497 = vst.msk [vmem:[%s8023_s29 + $0xb0] sm:$0xf] %vm5452_vm4, %v6392_v4  ;;  %v6523_v19 = vpack.c.bf16 %v4347_v5, %v4347_v5  ;;  %v6393_v20 = vpack.c.bf16 %v4217_v6, %v4217_v6  ;;  %v3703_v21 = vld [vmem:[#allocation2 + $0x190] sm:$0xff]  ;;  %5625 = vst.msk [vmem:[%s8023_s29 + $0x2b0] sm:$0xf] %vm5452_vm4, %v6520_v10  ;;  %v3190_v40 = vadd.f32 %v2325_v34, %v574_v17  ;;  %v2837_v41 = vpop.f32.mrb[55].mxu1 }
 0x162   : > { %5500 = vst.msk [vmem:[%s8023_s29 + $0xbc] sm:$0xf] %vm5452_vm4, %v6395_v11  ;;  %v6521_v27 = vpack.c.bf16 %v4345_v12, %v4345_v12  ;;  %v3966_v28 = vadd.f32 %v8247_v36, %v3703_v21  ;;  %v3831_v29 = vld [vmem:[#allocation2 + $0x590] sm:$0xff]  ;;  %v3318_v47 = vadd.f32 %v2837_v41, %v702_v26  ;;  %v577_v59 = vld [vmem:[#allocation2 + $0x1c0] sm:$0xff]  ;;  %v6796_v0 = vpop.f32.mrb[56].mxu0  ;;  %v580_v2 = vld [vmem:[#allocation2 + $0x1d8] sm:$0xff] }
 0x163   : > { %v3701_v30 = vld [vmem:[#allocation2 + $0x180] sm:$0xff]  ;;  %3448 = vst.msk [vmem:[#allocation2 + $0x1b0] sm:$0xff] %vm264_vm3, %v3191_v13  ;;  %v4094_v35 = vadd.f32 %v8247_v36, %v3831_v29  ;;  %3576 = vst.msk [vmem:[#allocation2 + $0x5b0] sm:$0xff] %vm264_vm3, %v3319_v22  ;;  %v579_v53 = vld [vmem:[#allocation2 + $0x1d0] sm:$0xff]  ;;  %v6924_v7 = vpop.f32.mrb[56].mxu1  ;;  %v2338_v8 = vpop.f32.mrb[57].mxu0 }
 0x164   : > { %5628 = vst.msk [vmem:[%s8023_s29 + $0x2bc] sm:$0xf] %vm5452_vm4, %v6523_v19  ;;  %5498 = vst.msk [vmem:[%s8023_s29 + $0xb4] sm:$0xf] %vm5452_vm4, %v6393_v20  ;;  %v3964_v37 = vadd.f32 %v8247_v36, %v3701_v30  ;;  %v3829_v18 = vld [vmem:[#allocation2 + $0x580] sm:$0xff]  ;;  %v4222_v42 = vmax.f32 %v3966_v28, 0.0  ;;  %v3195_v6 = vadd.f32 %v6796_v0, %v579_v53  ;;  %v3193_v15 = vadd.f32 %v2338_v8, %v577_v59 }
 0x165   : > { %v3704_v38 = vld [vmem:[#allocation2 + $0x198] sm:$0xff]  ;;  %3446 = vst.msk [vmem:[#allocation2 + $0x1a0] sm:$0xff] %vm264_vm3, %v3189_v23  ;;  %v4092_v43 = vadd.f32 %v8247_v36, %v3829_v18  ;;  %3574 = vst.msk [vmem:[#allocation2 + $0x5a0] sm:$0xff] %vm264_vm3, %v3317_v31  ;;  %v4350_v48 = vmax.f32 %v4094_v35, 0.0  ;;  %v707_v58 = vld [vmem:[#allocation2 + $0x5d0] sm:$0xff]  ;;  %v2850_v16 = vpop.f32.mrb[57].mxu1 }
 0x166   : > { %5626 = vst.msk [vmem:[%s8023_s29 + $0x2b4] sm:$0xf] %vm5452_vm4, %v6521_v27  ;;  %v3967_v44 = vadd.f32 %v8247_v36, %v3704_v38  ;;  %v3832_v45 = vld [vmem:[#allocation2 + $0x598] sm:$0xff]  ;;  %v3702_v46 = vld [vmem:[#allocation2 + $0x188] sm:$0xff]  ;;  %v4220_v49 = vmax.f32 %v3964_v37, 0.0  ;;  %v6398_v54 = vpack.c.bf16 %v4222_v42, %v4222_v42  ;;  %v705_v1 = vld [vmem:[#allocation2 + $0x5c0] sm:$0xff]  ;;  %v3323_v14 = vadd.f32 %v6924_v7, %v707_v58 }
 0x167   : > { %3449 = vst.msk [vmem:[#allocation2 + $0x1b8] sm:$0xff] %vm264_vm3, %v3192_v32  ;;  %v4095_v50 = vadd.f32 %v8247_v36, %v3832_v45  ;;  %v3965_v51 = vadd.f32 %v8247_v36, %v3702_v46  ;;  %v3830_v52 = vld [vmem:[#allocation2 + $0x588] sm:$0xff]  ;;  %3577 = vst.msk [vmem:[#allocation2 + $0x5b8] sm:$0xff] %vm264_vm3, %v3320_v39  ;;  %v4348_v55 = vmax.f32 %v4092_v43, 0.0  ;;  %v6526_v60 = vpack.c.bf16 %v4350_v48, %v4350_v48  ;;  %v708_v9 = vld [vmem:[#allocation2 + $0x5d8] sm:$0xff]  ;;  %v6797_v17 = vpop.f32.mrb[58].mxu0 }
 0x168   : > { %3447 = vst.msk [vmem:[#allocation2 + $0x1a8] sm:$0xff] %vm264_vm3, %v3190_v40  ;;  %v4223_v56 = vmax.f32 %v3967_v44, 0.0  ;;  %v4093_v57 = vadd.f32 %v8247_v36, %v3830_v52  ;;  %3575 = vst.msk [vmem:[#allocation2 + $0x5a8] sm:$0xff] %vm264_vm3, %v3318_v47  ;;  %v6396_v61 = vpack.c.bf16 %v4220_v49, %v4220_v49  ;;  %v578_v10 = vld [vmem:[#allocation2 + $0x1c8] sm:$0xff]  ;;  %v3321_v24 = vadd.f32 %v2850_v16, %v705_v1  ;;  %v6925_v26 = vpop.f32.mrb[58].mxu1  ;;  %v2341_v27 = vpop.f32.mrb[59].mxu0 }
 0x169   : > { %v4351_v62 = vmax.f32 %v4095_v50, 0.0  ;;  %v4221_v63 = vmax.f32 %v3965_v51, 0.0  ;;  %5503 = vst.msk [vmem:[%s8023_s29 + $0xc8] sm:$0xf] %vm5452_vm4, %v6398_v54  ;;  %v6524_v3 = vpack.c.bf16 %v4348_v55, %v4348_v55  ;;  %5631 = vst.msk [vmem:[%s8023_s29 + $0x2c8] sm:$0xf] %vm5452_vm4, %v6526_v60  ;;  %v3196_v25 = vadd.f32 %v6797_v17, %v580_v2 }
 0x16a   : > { %v6399_v4 = vpack.c.bf16 %v4223_v56, %v4223_v56  ;;  %v4349_v5 = vmax.f32 %v4093_v57, 0.0  ;;  %5501 = vst.msk [vmem:[%s8023_s29 + $0xc0] sm:$0xf] %vm5452_vm4, %v6396_v61  ;;  %v3707_v13 = vld [vmem:[#allocation2 + $0x1b0] sm:$0xff]  ;;  %v706_v19 = vld [vmem:[#allocation2 + $0x5c8] sm:$0xff]  ;;  %v3324_v32 = vadd.f32 %v6925_v26, %v708_v9  ;;  %v3194_v33 = vadd.f32 %v2341_v27, %v578_v10  ;;  %v2853_v34 = vpop.f32.mrb[59].mxu1 }
 0x16b   : > { %v6527_v11 = vpack.c.bf16 %v4351_v62, %v4351_v62  ;;  %v6397_v12 = vpack.c.bf16 %v4221_v63, %v4221_v63  ;;  %5629 = vst.msk [vmem:[%s8023_s29 + $0x2c0] sm:$0xf] %vm5452_vm4, %v6524_v3  ;;  %v3970_v21 = vadd.f32 %v8247_v36, %v3707_v13  ;;  %v3835_v22 = vld [vmem:[#allocation2 + $0x5b0] sm:$0xff]  ;;  %v3322_v40 = vadd.f32 %v2853_v34, %v706_v19  ;;  %v581_v52 = vld [vmem:[#allocation2 + $0x1e0] sm:$0xff]  ;;  %v6800_v57 = vpop.f32.mrb[60].mxu0  ;;  %v584_v59 = vld [vmem:[#allocation2 + $0x1f8] sm:$0xff] }
 0x16c   : > { %5504 = vst.msk [vmem:[%s8023_s29 + $0xcc] sm:$0xf] %vm5452_vm4, %v6399_v4  ;;  %v6525_v20 = vpack.c.bf16 %v4349_v5, %v4349_v5  ;;  %v3705_v23 = vld [vmem:[#allocation2 + $0x1a0] sm:$0xff]  ;;  %v4098_v28 = vadd.f32 %v8247_v36, %v3835_v22  ;;  %v583_v46 = vld [vmem:[#allocation2 + $0x1f0] sm:$0xff]  ;;  %v6928_v63 = vpop.f32.mrb[60].mxu1  ;;  %v2354_v0 = vpop.f32.mrb[61].mxu0 }
 0x16d   : > { %3452 = vst.msk [vmem:[#allocation2 + $0x1d0] sm:$0xff] %vm264_vm3, %v3195_v6  ;;  %v3968_v29 = vadd.f32 %v8247_v36, %v3705_v23  ;;  %v3833_v30 = vld [vmem:[#allocation2 + $0x5a0] sm:$0xff]  ;;  %3580 = vst.msk [vmem:[#allocation2 + $0x5d0] sm:$0xff] %vm264_vm3, %v3323_v14  ;;  %v4226_v35 = vmax.f32 %v3970_v21, 0.0  ;;  %v711_v51 = vld [vmem:[#allocation2 + $0x5f0] sm:$0xff]  ;;  %v3197_v7 = vadd.f32 %v2354_v0, %v581_v52  ;;  %v2866_v8 = vpop.f32.mrb[61].mxu1 }
 0x16e   : > { %5632 = vst.msk [vmem:[%s8023_s29 + $0x2cc] sm:$0xf] %vm5452_vm4, %v6527_v11  ;;  %5502 = vst.msk [vmem:[%s8023_s29 + $0xc4] sm:$0xf] %vm5452_vm4, %v6397_v12  ;;  %v3708_v31 = vld [vmem:[#allocation2 + $0x1b8] sm:$0xff]  ;;  %v4096_v37 = vadd.f32 %v8247_v36, %v3833_v30  ;;  %v4354_v41 = vmax.f32 %v4098_v28, 0.0  ;;  %v3327_v6 = vadd.f32 %v6928_v63, %v711_v51 }
 0x16f   : > { %3450 = vst.msk [vmem:[#allocation2 + $0x1c0] sm:$0xff] %vm264_vm3, %v3193_v15  ;;  %v3971_v18 = vadd.f32 %v8247_v36, %v3708_v31  ;;  %v3836_v38 = vld [vmem:[#allocation2 + $0x5b8] sm:$0xff]  ;;  %v3706_v39 = vld [vmem:[#allocation2 + $0x1a8] sm:$0xff]  ;;  %3578 = vst.msk [vmem:[#allocation2 + $0x5c0] sm:$0xff] %vm264_vm3, %v3321_v24  ;;  %v4224_v42 = vmax.f32 %v3968_v29, 0.0  ;;  %v6402_v47 = vpack.c.bf16 %v4226_v35, %v4226_v35  ;;  %v6801_v9 = vpop.f32.mrb[62].mxu0 }
 0x170   : > { %5630 = vst.msk [vmem:[%s8023_s29 + $0x2c4] sm:$0xf] %vm5452_vm4, %v6525_v20  ;;  %v4099_v43 = vadd.f32 %v8247_v36, %v3836_v38  ;;  %v3969_v44 = vadd.f32 %v8247_v36, %v3706_v39  ;;  %v3834_v45 = vld [vmem:[#allocation2 + $0x5a8] sm:$0xff]  ;;  %v4352_v48 = vmax.f32 %v4096_v37, 0.0  ;;  %v6530_v53 = vpack.c.bf16 %v4354_v41, %v4354_v41  ;;  %v709_v58 = vld [vmem:[#allocation2 + $0x5e0] sm:$0xff]  ;;  %v712_v1 = vld [vmem:[#allocation2 + $0x5f8] sm:$0xff] }
 0x171   : > { %3453 = vst.msk [vmem:[#allocation2 + $0x1d8] sm:$0xff] %vm264_vm3, %v3196_v25  ;;  %3581 = vst.msk [vmem:[#allocation2 + $0x5d8] sm:$0xff] %vm264_vm3, %v3324_v32  ;;  %v4227_v49 = vmax.f32 %v3971_v18, 0.0  ;;  %v4097_v50 = vadd.f32 %v8247_v36, %v3834_v45  ;;  %v6400_v54 = vpack.c.bf16 %v4224_v42, %v4224_v42  ;;  %v3199_v36 = vadd.f32 %v6800_v57, %v583_v46  ;;  %v582_v2 = vld [vmem:[#allocation2 + $0x1e8] sm:$0xff]  ;;  %v8488_v12 = vld [vmem:[%s9085_s2] ss:$0 sm:$0xff] }
 0x172   : > { %3451 = vst.msk [vmem:[#allocation2 + $0x1c8] sm:$0xff] %vm264_vm3, %v3194_v33  ;;  %3579 = vst.msk [vmem:[#allocation2 + $0x5c8] sm:$0xff] %vm264_vm3, %v3322_v40  ;;  %v4355_v55 = vmax.f32 %v4099_v43, 0.0  ;;  %v4225_v56 = vmax.f32 %v3969_v44, 0.0  ;;  %v6528_v60 = vpack.c.bf16 %v4352_v48, %v4352_v48  ;;  %v710_v10 = vld [vmem:[#allocation2 + $0x5e8] sm:$0xff]  ;;  %v3325_v16 = vadd.f32 %v2866_v8, %v709_v58  ;;  %v6929_v19 = vpop.f32.mrb[62].mxu1 }
 0x173   : > { %5507 = vst.msk [vmem:[%s8023_s29 + $0xd8] sm:$0xf] %vm5452_vm4, %v6402_v47  ;;  %v6403_v61 = vpack.c.bf16 %v4227_v49, %v4227_v49  ;;  %v4353_v62 = vmax.f32 %v4097_v50, 0.0  ;;  %5635 = vst.msk [vmem:[%s8023_s29 + $0x2d8] sm:$0xf] %vm5452_vm4, %v6530_v53  ;;  %v3200_v17 = vadd.f32 %v6801_v9, %v584_v59  ;;  %v2357_v20 = vpop.f32.mrb[63].mxu0  ;;  %v3328_v25 = vadd.f32 %v6929_v19, %v712_v1 }
 0x174   : > { %5505 = vst.msk [vmem:[%s8023_s29 + $0xd0] sm:$0xf] %vm5452_vm4, %v6400_v54  ;;  %v6531_v3 = vpack.c.bf16 %v4355_v55, %v4355_v55  ;;  %v6401_v4 = vpack.c.bf16 %v4225_v56, %v4225_v56  ;;  %v3711_v5 = vld [vmem:[#allocation2 + $0x1d0] sm:$0xff]  ;;  %5633 = vst.msk [vmem:[%s8023_s29 + $0x2d0] sm:$0xf] %vm5452_vm4, %v6528_v60  ;;  %v3198_v26 = vadd.f32 %v2357_v20, %v582_v2  ;;  %v2869_v27 = vpop.f32.mrb[63].mxu1 }
 0x175   : > { %5508 = vst.msk [vmem:[%s8023_s29 + $0xdc] sm:$0xf] %vm5452_vm4, %v6403_v61  ;;  %v6529_v11 = vpack.c.bf16 %v4353_v62, %v4353_v62  ;;  %v3974_v13 = vadd.f32 %v8488_v12, %v3711_v5  ;;  %v3839_v14 = vld [vmem:[#allocation2 + $0x5d0] sm:$0xff]  ;;  %v3326_v33 = vadd.f32 %v2869_v27, %v710_v10  ;;  %v585_v45 = vld [vmem:[#allocation2 + $0x200] sm:$0xff]  ;;  %v6804_v50 = vpop.f32.mrb[64].mxu0  ;;  %v588_v52 = vld [vmem:[#allocation2 + $0x218] sm:$0xff] }
 0x176   : > { %v3709_v15 = vld [vmem:[#allocation2 + $0x1c0] sm:$0xff]  ;;  %3456 = vst.msk [vmem:[#allocation2 + $0x1f0] sm:$0xff] %vm264_vm3, %v3199_v36  ;;  %v4102_v21 = vadd.f32 %v8488_v12, %v3839_v14  ;;  %3584 = vst.msk [vmem:[#allocation2 + $0x5f0] sm:$0xff] %vm264_vm3, %v3327_v6  ;;  %v587_v39 = vld [vmem:[#allocation2 + $0x210] sm:$0xff]  ;;  %v6932_v57 = vpop.f32.mrb[64].mxu1  ;;  %v2370_v58 = vpop.f32.mrb[65].mxu0 }
 0x177   : > { %5636 = vst.msk [vmem:[%s8023_s29 + $0x2dc] sm:$0xf] %vm5452_vm4, %v6531_v3  ;;  %5506 = vst.msk [vmem:[%s8023_s29 + $0xd4] sm:$0xf] %vm5452_vm4, %v6401_v4  ;;  %v3972_v22 = vadd.f32 %v8488_v12, %v3709_v15  ;;  %v3837_v23 = vld [vmem:[#allocation2 + $0x5c0] sm:$0xff]  ;;  %v4230_v28 = vmax.f32 %v3974_v13, 0.0  ;;  %v3203_v56 = vadd.f32 %v6804_v50, %v587_v39  ;;  %v3201_v0 = vadd.f32 %v2370_v58, %v585_v45 }
 0x178   : > { %v3712_v24 = vld [vmem:[#allocation2 + $0x1d8] sm:$0xff]  ;;  %3454 = vst.msk [vmem:[#allocation2 + $0x1e0] sm:$0xff] %vm264_vm3, %v3197_v7  ;;  %v4100_v29 = vadd.f32 %v8488_v12, %v3837_v23  ;;  %3582 = vst.msk [vmem:[#allocation2 + $0x5e0] sm:$0xff] %vm264_vm3, %v3325_v16  ;;  %v4358_v34 = vmax.f32 %v4102_v21, 0.0  ;;  %v715_v44 = vld [vmem:[#allocation2 + $0x610] sm:$0xff]  ;;  %v2882_v1 = vpop.f32.mrb[65].mxu1 }
 0x179   : > { %5634 = vst.msk [vmem:[%s8023_s29 + $0x2d4] sm:$0xf] %vm5452_vm4, %v6529_v11  ;;  %v3975_v30 = vadd.f32 %v8488_v12, %v3712_v24  ;;  %v3840_v31 = vld [vmem:[#allocation2 + $0x5d8] sm:$0xff]  ;;  %v3710_v32 = vld [vmem:[#allocation2 + $0x1c8] sm:$0xff]  ;;  %v4228_v35 = vmax.f32 %v3972_v22, 0.0  ;;  %v6406_v40 = vpack.c.bf16 %v4230_v28, %v4230_v28  ;;  %v713_v51 = vld [vmem:[#allocation2 + $0x600] sm:$0xff]  ;;  %v3331_v63 = vadd.f32 %v6932_v57, %v715_v44 }
 0x17a   : > { %3457 = vst.msk [vmem:[#allocation2 + $0x1f8] sm:$0xff] %vm264_vm3, %v3200_v17  ;;  %v4103_v37 = vadd.f32 %v8488_v12, %v3840_v31  ;;  %v3973_v18 = vadd.f32 %v8488_v12, %v3710_v32  ;;  %v3838_v38 = vld [vmem:[#allocation2 + $0x5c8] sm:$0xff]  ;;  %3585 = vst.msk [vmem:[#allocation2 + $0x5f8] sm:$0xff] %vm264_vm3, %v3328_v25  ;;  %v4356_v41 = vmax.f32 %v4100_v29, 0.0  ;;  %v6534_v46 = vpack.c.bf16 %v4358_v34, %v4358_v34  ;;  %v716_v59 = vld [vmem:[#allocation2 + $0x618] sm:$0xff]  ;;  %v6805_v2 = vpop.f32.mrb[66].mxu0 }
 0x17b   : > { %3455 = vst.msk [vmem:[#allocation2 + $0x1e8] sm:$0xff] %vm264_vm3, %v3198_v26  ;;  %v4231_v42 = vmax.f32 %v3975_v30, 0.0  ;;  %v4101_v43 = vadd.f32 %v8488_v12, %v3838_v38  ;;  %3583 = vst.msk [vmem:[#allocation2 + $0x5e8] sm:$0xff] %vm264_vm3, %v3326_v33  ;;  %v6404_v47 = vpack.c.bf16 %v4228_v35, %v4228_v35  ;;  %v586_v60 = vld [vmem:[#allocation2 + $0x208] sm:$0xff]  ;;  %v3329_v8 = vadd.f32 %v2882_v1, %v713_v51  ;;  %v6933_v10 = vpop.f32.mrb[66].mxu1  ;;  %v2373_v11 = vpop.f32.mrb[67].mxu0 }
 0x17c   : > { %v4359_v48 = vmax.f32 %v4103_v37, 0.0  ;;  %v4229_v49 = vmax.f32 %v3973_v18, 0.0  ;;  %5511 = vst.msk [vmem:[%s8023_s29 + $0xe8] sm:$0xf] %vm5452_vm4, %v6406_v40  ;;  %v6532_v53 = vpack.c.bf16 %v4356_v41, %v4356_v41  ;;  %5639 = vst.msk [vmem:[%s8023_s29 + $0x2e8] sm:$0xf] %vm5452_vm4, %v6534_v46  ;;  %v3204_v9 = vadd.f32 %v6805_v2, %v588_v52 }
 0x17d   : > { %v6407_v54 = vpack.c.bf16 %v4231_v42, %v4231_v42  ;;  %v4357_v55 = vmax.f32 %v4101_v43, 0.0  ;;  %5509 = vst.msk [vmem:[%s8023_s29 + $0xe0] sm:$0xf] %vm5452_vm4, %v6404_v47  ;;  %v3715_v36 = vld [vmem:[#allocation2 + $0x1f0] sm:$0xff]  ;;  %v714_v3 = vld [vmem:[#allocation2 + $0x608] sm:$0xff]  ;;  %v3332_v17 = vadd.f32 %v6933_v10, %v716_v59  ;;  %v3202_v19 = vadd.f32 %v2373_v11, %v586_v60  ;;  %v2885_v20 = vpop.f32.mrb[67].mxu1 }
 0x17e   : > { %v6535_v61 = vpack.c.bf16 %v4359_v48, %v4359_v48  ;;  %v6405_v62 = vpack.c.bf16 %v4229_v49, %v4229_v49  ;;  %5637 = vst.msk [vmem:[%s8023_s29 + $0x2e0] sm:$0xf] %vm5452_vm4, %v6532_v53  ;;  %v3978_v5 = vadd.f32 %v8488_v12, %v3715_v36  ;;  %v3843_v6 = vld [vmem:[#allocation2 + $0x5f0] sm:$0xff]  ;;  %v3330_v26 = vadd.f32 %v2885_v20, %v714_v3  ;;  %v589_v38 = vld [vmem:[#allocation2 + $0x220] sm:$0xff]  ;;  %v6808_v43 = vpop.f32.mrb[68].mxu0  ;;  %v592_v45 = vld [vmem:[#allocation2 + $0x238] sm:$0xff] }
 0x17f   : > { %5512 = vst.msk [vmem:[%s8023_s29 + $0xec] sm:$0xf] %vm5452_vm4, %v6407_v54  ;;  %v6533_v4 = vpack.c.bf16 %v4357_v55, %v4357_v55  ;;  %v3713_v7 = vld [vmem:[#allocation2 + $0x1e0] sm:$0xff]  ;;  %v4106_v13 = vadd.f32 %v8488_v12, %v3843_v6  ;;  %v591_v32 = vld [vmem:[#allocation2 + $0x230] sm:$0xff]  ;;  %v6936_v50 = vpop.f32.mrb[68].mxu1  ;;  %v2386_v51 = vpop.f32.mrb[69].mxu0 }
 0x180   : > { %3460 = vst.msk [vmem:[#allocation2 + $0x210] sm:$0xff] %vm264_vm3, %v3203_v56  ;;  %v3976_v14 = vadd.f32 %v8488_v12, %v3713_v7  ;;  %v3841_v15 = vld [vmem:[#allocation2 + $0x5e0] sm:$0xff]  ;;  %3588 = vst.msk [vmem:[#allocation2 + $0x610] sm:$0xff] %vm264_vm3, %v3331_v63  ;;  %v4234_v21 = vmax.f32 %v3978_v5, 0.0  ;;  %v719_v18 = vld [vmem:[#allocation2 + $0x630] sm:$0xff]  ;;  %v3207_v49 = vadd.f32 %v6808_v43, %v591_v32  ;;  %v3205_v58 = vadd.f32 %v2386_v51, %v589_v38  ;;  %v2898_v59 = vpop.f32.mrb[69].mxu1 }
 0x181   : > { %5640 = vst.msk [vmem:[%s8023_s29 + $0x2ec] sm:$0xf] %vm5452_vm4, %v6535_v61  ;;  %5510 = vst.msk [vmem:[%s8023_s29 + $0xe4] sm:$0xf] %vm5452_vm4, %v6405_v62  ;;  %v3716_v16 = vld [vmem:[#allocation2 + $0x1f8] sm:$0xff]  ;;  %v4104_v22 = vadd.f32 %v8488_v12, %v3841_v15  ;;  %v4362_v27 = vmax.f32 %v4106_v13, 0.0  ;;  %v3335_v57 = vadd.f32 %v6936_v50, %v719_v18 }
 0x182   : > { %3458 = vst.msk [vmem:[#allocation2 + $0x200] sm:$0xff] %vm264_vm3, %v3201_v0  ;;  %v3979_v23 = vadd.f32 %v8488_v12, %v3716_v16  ;;  %v3844_v24 = vld [vmem:[#allocation2 + $0x5f8] sm:$0xff]  ;;  %v3714_v25 = vld [vmem:[#allocation2 + $0x1e8] sm:$0xff]  ;;  %3586 = vst.msk [vmem:[#allocation2 + $0x600] sm:$0xff] %vm264_vm3, %v3329_v8  ;;  %v4232_v28 = vmax.f32 %v3976_v14, 0.0  ;;  %v6410_v33 = vpack.c.bf16 %v4234_v21, %v4234_v21  ;;  %v6809_v60 = vpop.f32.mrb[70].mxu0 }
 0x183   : > { %5638 = vst.msk [vmem:[%s8023_s29 + $0x2e4] sm:$0xf] %vm5452_vm4, %v6533_v4  ;;  %v4107_v29 = vadd.f32 %v8488_v12, %v3844_v24  ;;  %v3977_v30 = vadd.f32 %v8488_v12, %v3714_v25  ;;  %v3842_v31 = vld [vmem:[#allocation2 + $0x5e8] sm:$0xff]  ;;  %v4360_v34 = vmax.f32 %v4104_v22, 0.0  ;;  %v6538_v39 = vpack.c.bf16 %v4362_v27, %v4362_v27  ;;  %v717_v44 = vld [vmem:[#allocation2 + $0x620] sm:$0xff]  ;;  %v720_v52 = vld [vmem:[#allocation2 + $0x638] sm:$0xff] }
 0x184   : > { %3461 = vst.msk [vmem:[#allocation2 + $0x218] sm:$0xff] %vm264_vm3, %v3204_v9  ;;  %3589 = vst.msk [vmem:[#allocation2 + $0x618] sm:$0xff] %vm264_vm3, %v3332_v17  ;;  %v4235_v35 = vmax.f32 %v3979_v23, 0.0  ;;  %v4105_v37 = vadd.f32 %v8488_v12, %v3842_v31  ;;  %v6408_v40 = vpack.c.bf16 %v4232_v28, %v4232_v28  ;;  %v590_v53 = vld [vmem:[#allocation2 + $0x228] sm:$0xff]  ;;  %v3333_v1 = vadd.f32 %v2898_v59, %v717_v44  ;;  %v6937_v3 = vpop.f32.mrb[70].mxu1  ;;  %v2389_v4 = vpop.f32.mrb[71].mxu0 }
 0x185   : > { %3459 = vst.msk [vmem:[#allocation2 + $0x208] sm:$0xff] %vm264_vm3, %v3202_v19  ;;  %3587 = vst.msk [vmem:[#allocation2 + $0x608] sm:$0xff] %vm264_vm3, %v3330_v26  ;;  %v4363_v41 = vmax.f32 %v4107_v29, 0.0  ;;  %v4233_v42 = vmax.f32 %v3977_v30, 0.0  ;;  %v6536_v46 = vpack.c.bf16 %v4360_v34, %v4360_v34  ;;  %v718_v61 = vld [vmem:[#allocation2 + $0x628] sm:$0xff]  ;;  %v3208_v2 = vadd.f32 %v6809_v60, %v592_v45  ;;  %v2901_v11 = vpop.f32.mrb[71].mxu1 }
 0x186   : > { %5515 = vst.msk [vmem:[%s8023_s29 + $0xf8] sm:$0xf] %vm5452_vm4, %v6410_v33  ;;  %v6411_v47 = vpack.c.bf16 %v4235_v35, %v4235_v35  ;;  %v4361_v48 = vmax.f32 %v4105_v37, 0.0  ;;  %5643 = vst.msk [vmem:[%s8023_s29 + $0x2f8] sm:$0xf] %vm5452_vm4, %v6538_v39  ;;  %v3336_v9 = vadd.f32 %v6937_v3, %v720_v52  ;;  %v3206_v10 = vadd.f32 %v2389_v4, %v590_v53  ;;  %v595_v25 = vld [vmem:[#allocation2 + $0x250] sm:$0xff] }
 0x187   : > { %5513 = vst.msk [vmem:[%s8023_s29 + $0xf0] sm:$0xf] %vm5452_vm4, %v6408_v40  ;;  %v6539_v54 = vpack.c.bf16 %v4363_v41, %v4363_v41  ;;  %v6409_v55 = vpack.c.bf16 %v4233_v42, %v4233_v42  ;;  %v3719_v56 = vld [vmem:[#allocation2 + $0x210] sm:$0xff]  ;;  %5641 = vst.msk [vmem:[%s8023_s29 + $0x2f0] sm:$0xf] %vm5452_vm4, %v6536_v46  ;;  %v3334_v19 = vadd.f32 %v2901_v11, %v718_v61  ;;  %v593_v31 = vld [vmem:[#allocation2 + $0x240] sm:$0xff] }
 0x188   : > { %5516 = vst.msk [vmem:[%s8023_s29 + $0xfc] sm:$0xf] %vm5452_vm4, %v6411_v47  ;;  %v6537_v62 = vpack.c.bf16 %v4361_v48, %v4361_v48  ;;  %v3982_v36 = vadd.f32 %v8488_v12, %v3719_v56  ;;  %v3847_v63 = vld [vmem:[#allocation2 + $0x610] sm:$0xff]  ;;  %v6812_v37 = vpop.f32.mrb[72].mxu0  ;;  %v721_v18 = vld [vmem:[#allocation2 + $0x640] sm:$0xff]  ;;  %v596_v38 = vld [vmem:[#allocation2 + $0x258] sm:$0xff] }
 0x189   : > { %v3717_v0 = vld [vmem:[#allocation2 + $0x200] sm:$0xff]  ;;  %3464 = vst.msk [vmem:[#allocation2 + $0x230] sm:$0xff] %vm264_vm3, %v3207_v49  ;;  %v4110_v5 = vadd.f32 %v8488_v12, %v3847_v63  ;;  %3592 = vst.msk [vmem:[#allocation2 + $0x630] sm:$0xff] %vm264_vm3, %v3335_v57  ;;  %v723_v30 = vld [vmem:[#allocation2 + $0x650] sm:$0xff]  ;;  %v3211_v42 = vadd.f32 %v6812_v37, %v595_v25  ;;  %v6940_v43 = vpop.f32.mrb[72].mxu1  ;;  %v2402_v44 = vpop.f32.mrb[73].mxu0 }
 0x18a   : > { %5644 = vst.msk [vmem:[%s8023_s29 + $0x2fc] sm:$0xf] %vm5452_vm4, %v6539_v54  ;;  %5514 = vst.msk [vmem:[%s8023_s29 + $0xf4] sm:$0xf] %vm5452_vm4, %v6409_v55  ;;  %v3980_v6 = vadd.f32 %v8488_v12, %v3717_v0  ;;  %v3845_v7 = vld [vmem:[#allocation2 + $0x600] sm:$0xff]  ;;  %v4238_v13 = vmax.f32 %v3982_v36, 0.0  ;;  %v3339_v50 = vadd.f32 %v6940_v43, %v723_v30  ;;  %v3209_v51 = vadd.f32 %v2402_v44, %v593_v31 }
 0x18b   : > { %v3720_v8 = vld [vmem:[#allocation2 + $0x218] sm:$0xff]  ;;  %3462 = vst.msk [vmem:[#allocation2 + $0x220] sm:$0xff] %vm264_vm3, %v3205_v58  ;;  %v4108_v14 = vadd.f32 %v8488_v12, %v3845_v7  ;;  %3590 = vst.msk [vmem:[#allocation2 + $0x620] sm:$0xff] %vm264_vm3, %v3333_v1  ;;  %v4366_v20 = vmax.f32 %v4110_v5, 0.0  ;;  %v594_v46 = vld [vmem:[#allocation2 + $0x248] sm:$0xff]  ;;  %v2914_v52 = vpop.f32.mrb[73].mxu1 }
 0x18c   : > { %5642 = vst.msk [vmem:[%s8023_s29 + $0x2f4] sm:$0xf] %vm5452_vm4, %v6537_v62  ;;  %v3983_v15 = vadd.f32 %v8488_v12, %v3720_v8  ;;  %v3848_v16 = vld [vmem:[#allocation2 + $0x618] sm:$0xff]  ;;  %v3718_v17 = vld [vmem:[#allocation2 + $0x208] sm:$0xff]  ;;  %v4236_v21 = vmax.f32 %v3980_v6, 0.0  ;;  %v6414_v26 = vpack.c.bf16 %v4238_v13, %v4238_v13  ;;  %v6813_v53 = vpop.f32.mrb[74].mxu0  ;;  %v3337_v59 = vadd.f32 %v2914_v52, %v721_v18 }
 0x18d   : > { %3465 = vst.msk [vmem:[#allocation2 + $0x238] sm:$0xff] %vm264_vm3, %v3208_v2  ;;  %v4111_v22 = vadd.f32 %v8488_v12, %v3848_v16  ;;  %v3981_v23 = vadd.f32 %v8488_v12, %v3718_v17  ;;  %v3846_v24 = vld [vmem:[#allocation2 + $0x608] sm:$0xff]  ;;  %3593 = vst.msk [vmem:[#allocation2 + $0x638] sm:$0xff] %vm264_vm3, %v3336_v9  ;;  %v4364_v27 = vmax.f32 %v4108_v14, 0.0  ;;  %v6542_v32 = vpack.c.bf16 %v4366_v20, %v4366_v20  ;;  %v724_v45 = vld [vmem:[#allocation2 + $0x658] sm:$0xff]  ;;  %v6941_v61 = vpop.f32.mrb[74].mxu1 }
 0x18e   : > { %3463 = vst.msk [vmem:[#allocation2 + $0x228] sm:$0xff] %vm264_vm3, %v3206_v10  ;;  %v4239_v28 = vmax.f32 %v3983_v15, 0.0  ;;  %v4109_v29 = vadd.f32 %v8488_v12, %v3846_v24  ;;  %3591 = vst.msk [vmem:[#allocation2 + $0x628] sm:$0xff] %vm264_vm3, %v3334_v19  ;;  %v6412_v33 = vpack.c.bf16 %v4236_v21, %v4236_v21  ;;  %v722_v54 = vld [vmem:[#allocation2 + $0x648] sm:$0xff]  ;;  %v3212_v60 = vadd.f32 %v6813_v53, %v596_v38  ;;  %v2405_v62 = vpop.f32.mrb[75].mxu0  ;;  %v2917_v4 = vpop.f32.mrb[75].mxu1 }
 0x18f   : > { %v4367_v34 = vmax.f32 %v4111_v22, 0.0  ;;  %v4237_v35 = vmax.f32 %v3981_v23, 0.0  ;;  %5519 = vst.msk [vmem:[%s8023_s29 + $0x108] sm:$0xf] %vm5452_vm4, %v6414_v26  ;;  %v6540_v39 = vpack.c.bf16 %v4364_v27, %v4364_v27  ;;  %5647 = vst.msk [vmem:[%s8023_s29 + $0x308] sm:$0xf] %vm5452_vm4, %v6542_v32  ;;  %v3340_v2 = vadd.f32 %v6941_v61, %v724_v45 }
 0x190   : > { %v6415_v40 = vpack.c.bf16 %v4239_v28, %v4239_v28  ;;  %v4365_v41 = vmax.f32 %v4109_v29, 0.0  ;;  %5517 = vst.msk [vmem:[%s8023_s29 + $0x100] sm:$0xf] %vm5452_vm4, %v6412_v33  ;;  %v3723_v49 = vld [vmem:[#allocation2 + $0x230] sm:$0xff]  ;;  %v3210_v3 = vadd.f32 %v2405_v62, %v594_v46  ;;  %v3338_v10 = vadd.f32 %v2917_v4, %v722_v54  ;;  %v597_v24 = vld [vmem:[#allocation2 + $0x260] sm:$0xff]  ;;  %v6816_v29 = vpop.f32.mrb[76].mxu0 }
 0x191   : > { %v6543_v47 = vpack.c.bf16 %v4367_v34, %v4367_v34  ;;  %v6413_v48 = vpack.c.bf16 %v4237_v35, %v4237_v35  ;;  %5645 = vst.msk [vmem:[%s8023_s29 + $0x300] sm:$0xf] %vm5452_vm4, %v6540_v39  ;;  %v3986_v56 = vadd.f32 %v8488_v12, %v3723_v49  ;;  %v3851_v57 = vld [vmem:[#allocation2 + $0x630] sm:$0xff]  ;;  %v725_v30 = vld [vmem:[#allocation2 + $0x660] sm:$0xff]  ;;  %v600_v31 = vld [vmem:[#allocation2 + $0x278] sm:$0xff]  ;;  %v6944_v37 = vpop.f32.mrb[76].mxu1 }
 0x192   : > { %5520 = vst.msk [vmem:[%s8023_s29 + $0x10c] sm:$0xf] %vm5452_vm4, %v6415_v40  ;;  %v6541_v55 = vpack.c.bf16 %v4365_v41, %v4365_v41  ;;  %v3721_v58 = vld [vmem:[#allocation2 + $0x220] sm:$0xff]  ;;  %v4114_v36 = vadd.f32 %v8488_v12, %v3851_v57  ;;  %v599_v17 = vld [vmem:[#allocation2 + $0x270] sm:$0xff]  ;;  %v2418_v18 = vpop.f32.mrb[77].mxu0  ;;  %v728_v38 = vld [vmem:[#allocation2 + $0x678] sm:$0xff] }
 0x193   : > { %3468 = vst.msk [vmem:[#allocation2 + $0x250] sm:$0xff] %vm264_vm3, %v3211_v42  ;;  %v3984_v63 = vadd.f32 %v8488_v12, %v3721_v58  ;;  %v3849_v0 = vld [vmem:[#allocation2 + $0x620] sm:$0xff]  ;;  %3596 = vst.msk [vmem:[#allocation2 + $0x650] sm:$0xff] %vm264_vm3, %v3339_v50  ;;  %v4242_v5 = vmax.f32 %v3986_v56, 0.0  ;;  %v727_v23 = vld [vmem:[#allocation2 + $0x670] sm:$0xff]  ;;  %v3215_v35 = vadd.f32 %v6816_v29, %v599_v17  ;;  %v3213_v44 = vadd.f32 %v2418_v18, %v597_v24  ;;  %v2930_v45 = vpop.f32.mrb[77].mxu1 }
 0x194   : > { %5648 = vst.msk [vmem:[%s8023_s29 + $0x30c] sm:$0xf] %vm5452_vm4, %v6543_v47  ;;  %5518 = vst.msk [vmem:[%s8023_s29 + $0x104] sm:$0xf] %vm5452_vm4, %v6413_v48  ;;  %v3724_v1 = vld [vmem:[#allocation2 + $0x238] sm:$0xff]  ;;  %v4112_v6 = vadd.f32 %v8488_v12, %v3849_v0  ;;  %v4370_v11 = vmax.f32 %v4114_v36, 0.0  ;;  %v3343_v43 = vadd.f32 %v6944_v37, %v727_v23  ;;  %v3341_v52 = vadd.f32 %v2930_v45, %v725_v30 }
 0x195   : > { %3466 = vst.msk [vmem:[#allocation2 + $0x240] sm:$0xff] %vm264_vm3, %v3209_v51  ;;  %v3987_v7 = vadd.f32 %v8488_v12, %v3724_v1  ;;  %v3852_v8 = vld [vmem:[#allocation2 + $0x638] sm:$0xff]  ;;  %v3722_v9 = vld [vmem:[#allocation2 + $0x228] sm:$0xff]  ;;  %3594 = vst.msk [vmem:[#allocation2 + $0x640] sm:$0xff] %vm264_vm3, %v3337_v59  ;;  %v4240_v13 = vmax.f32 %v3984_v63, 0.0  ;;  %v6418_v19 = vpack.c.bf16 %v4242_v5, %v4242_v5  ;;  %v6817_v46 = vpop.f32.mrb[78].mxu0 }
 0x196   : > { %5646 = vst.msk [vmem:[%s8023_s29 + $0x304] sm:$0xf] %vm5452_vm4, %v6541_v55  ;;  %v4115_v14 = vadd.f32 %v8488_v12, %v3852_v8  ;;  %v3985_v15 = vadd.f32 %v8488_v12, %v3722_v9  ;;  %v3850_v16 = vld [vmem:[#allocation2 + $0x628] sm:$0xff]  ;;  %v4368_v20 = vmax.f32 %v4112_v6, 0.0  ;;  %v6546_v25 = vpack.c.bf16 %v4370_v11, %v4370_v11  ;;  %v6945_v54 = vpop.f32.mrb[78].mxu1  ;;  %v2421_v55 = vpop.f32.mrb[79].mxu0 }
 0x197   : > { %3469 = vst.msk [vmem:[#allocation2 + $0x258] sm:$0xff] %vm264_vm3, %v3212_v60  ;;  %3597 = vst.msk [vmem:[#allocation2 + $0x658] sm:$0xff] %vm264_vm3, %v3340_v2  ;;  %v4243_v21 = vmax.f32 %v3987_v7, 0.0  ;;  %v4113_v22 = vadd.f32 %v8488_v12, %v3850_v16  ;;  %v6416_v26 = vpack.c.bf16 %v4240_v13, %v4240_v13  ;;  %v598_v39 = vld [vmem:[#allocation2 + $0x268] sm:$0xff]  ;;  %v3216_v53 = vadd.f32 %v6817_v46, %v600_v31  ;;  %v2933_v62 = vpop.f32.mrb[79].mxu1  ;;  %v603_v9 = vld [vmem:[#allocation2 + $0x290] sm:$0xff] }
 0x198   : > { %3467 = vst.msk [vmem:[#allocation2 + $0x248] sm:$0xff] %vm264_vm3, %v3210_v3  ;;  %3595 = vst.msk [vmem:[#allocation2 + $0x648] sm:$0xff] %vm264_vm3, %v3338_v10  ;;  %v4371_v27 = vmax.f32 %v4115_v14, 0.0  ;;  %v4241_v28 = vmax.f32 %v3985_v15, 0.0  ;;  %v6544_v32 = vpack.c.bf16 %v4368_v20, %v4368_v20  ;;  %v726_v47 = vld [vmem:[#allocation2 + $0x668] sm:$0xff]  ;;  %v3344_v60 = vadd.f32 %v6945_v54, %v728_v38  ;;  %v731_v15 = vld [vmem:[#allocation2 + $0x690] sm:$0xff] }
 0x199   : > { %5523 = vst.msk [vmem:[%s8023_s29 + $0x118] sm:$0xf] %vm5452_vm4, %v6418_v19  ;;  %v6419_v33 = vpack.c.bf16 %v4243_v21, %v4243_v21  ;;  %v4369_v34 = vmax.f32 %v4113_v22, 0.0  ;;  %5651 = vst.msk [vmem:[%s8023_s29 + $0x318] sm:$0xf] %vm5452_vm4, %v6546_v25  ;;  %v3214_v61 = vadd.f32 %v2421_v55, %v598_v39  ;;  %v3342_v3 = vadd.f32 %v2933_v62, %v726_v47  ;;  %v601_v16 = vld [vmem:[#allocation2 + $0x280] sm:$0xff] }
 0x19a   : > { %5521 = vst.msk [vmem:[%s8023_s29 + $0x110] sm:$0xf] %vm5452_vm4, %v6416_v26  ;;  %v6547_v40 = vpack.c.bf16 %v4371_v27, %v4371_v27  ;;  %v6417_v41 = vpack.c.bf16 %v4241_v28, %v4241_v28  ;;  %v3727_v42 = vld [vmem:[#allocation2 + $0x250] sm:$0xff]  ;;  %5649 = vst.msk [vmem:[%s8023_s29 + $0x310] sm:$0xf] %vm5452_vm4, %v6544_v32  ;;  %v6820_v22 = vpop.f32.mrb[80].mxu0 }
 0x19b   : > { %5524 = vst.msk [vmem:[%s8023_s29 + $0x11c] sm:$0xf] %vm5452_vm4, %v6419_v33  ;;  %v6545_v48 = vpack.c.bf16 %v4369_v34, %v4369_v34  ;;  %v3990_v49 = vadd.f32 %v8488_v12, %v3727_v42  ;;  %v3855_v50 = vld [vmem:[#allocation2 + $0x650] sm:$0xff]  ;;  %v729_v23 = vld [vmem:[#allocation2 + $0x680] sm:$0xff]  ;;  %v604_v24 = vld [vmem:[#allocation2 + $0x298] sm:$0xff]  ;;  %v3219_v28 = vadd.f32 %v6820_v22, %v603_v9  ;;  %v6948_v29 = vpop.f32.mrb[80].mxu1 }
 0x19c   : > { %v3725_v51 = vld [vmem:[#allocation2 + $0x240] sm:$0xff]  ;;  %3472 = vst.msk [vmem:[#allocation2 + $0x270] sm:$0xff] %vm264_vm3, %v3215_v35  ;;  %v4118_v56 = vadd.f32 %v8488_v12, %v3855_v50  ;;  %3600 = vst.msk [vmem:[#allocation2 + $0x670] sm:$0xff] %vm264_vm3, %v3343_v43  ;;  %v2434_v30 = vpop.f32.mrb[81].mxu0  ;;  %v732_v31 = vld [vmem:[#allocation2 + $0x698] sm:$0xff]  ;;  %v3347_v37 = vadd.f32 %v6948_v29, %v731_v15  ;;  %v2946_v38 = vpop.f32.mrb[81].mxu1 }
 0x19d   : > { %5652 = vst.msk [vmem:[%s8023_s29 + $0x31c] sm:$0xf] %vm5452_vm4, %v6547_v40  ;;  %5522 = vst.msk [vmem:[%s8023_s29 + $0x114] sm:$0xf] %vm5452_vm4, %v6417_v41  ;;  %v3988_v57 = vadd.f32 %v8488_v12, %v3725_v51  ;;  %v3853_v58 = vld [vmem:[#allocation2 + $0x640] sm:$0xff]  ;;  %v4246_v36 = vmax.f32 %v3990_v49, 0.0  ;;  %v3217_v18 = vadd.f32 %v2434_v30, %v601_v16  ;;  %v3345_v45 = vadd.f32 %v2946_v38, %v729_v23 }
 0x19e   : > { %v3728_v59 = vld [vmem:[#allocation2 + $0x258] sm:$0xff]  ;;  %3470 = vst.msk [vmem:[#allocation2 + $0x260] sm:$0xff] %vm264_vm3, %v3213_v44  ;;  %v4116_v63 = vadd.f32 %v8488_v12, %v3853_v58  ;;  %3598 = vst.msk [vmem:[#allocation2 + $0x660] sm:$0xff] %vm264_vm3, %v3341_v52  ;;  %v4374_v4 = vmax.f32 %v4118_v56, 0.0  ;;  %v602_v32 = vld [vmem:[#allocation2 + $0x288] sm:$0xff]  ;;  %v6821_v39 = vpop.f32.mrb[82].mxu0 }
 0x19f   : > { %5650 = vst.msk [vmem:[%s8023_s29 + $0x314] sm:$0xf] %vm5452_vm4, %v6545_v48  ;;  %v3991_v0 = vadd.f32 %v8488_v12, %v3728_v59  ;;  %v3856_v1 = vld [vmem:[#allocation2 + $0x658] sm:$0xff]  ;;  %v3726_v2 = vld [vmem:[#allocation2 + $0x248] sm:$0xff]  ;;  %v4244_v5 = vmax.f32 %v3988_v57, 0.0  ;;  %v6422_v10 = vpack.c.bf16 %v4246_v36, %v4246_v36  ;;  %v3220_v46 = vadd.f32 %v6821_v39, %v604_v24  ;;  %v6949_v47 = vpop.f32.mrb[82].mxu1 }
 0x1a0   : > { %3473 = vst.msk [vmem:[#allocation2 + $0x278] sm:$0xff] %vm264_vm3, %v3216_v53  ;;  %v4119_v6 = vadd.f32 %v8488_v12, %v3856_v1  ;;  %v3989_v7 = vadd.f32 %v8488_v12, %v3726_v2  ;;  %v3854_v8 = vld [vmem:[#allocation2 + $0x648] sm:$0xff]  ;;  %3601 = vst.msk [vmem:[#allocation2 + $0x678] sm:$0xff] %vm264_vm3, %v3344_v60  ;;  %v4372_v11 = vmax.f32 %v4116_v63, 0.0  ;;  %v6550_v17 = vpack.c.bf16 %v4374_v4, %v4374_v4  ;;  %v2437_v48 = vpop.f32.mrb[83].mxu0  ;;  %v2949_v55 = vpop.f32.mrb[83].mxu1 }
 0x1a1   : > { %3471 = vst.msk [vmem:[#allocation2 + $0x268] sm:$0xff] %vm264_vm3, %v3214_v61  ;;  %v4247_v13 = vmax.f32 %v3991_v0, 0.0  ;;  %v4117_v14 = vadd.f32 %v8488_v12, %v3854_v8  ;;  %3599 = vst.msk [vmem:[#allocation2 + $0x668] sm:$0xff] %vm264_vm3, %v3342_v3  ;;  %v6420_v19 = vpack.c.bf16 %v4244_v5, %v4244_v5  ;;  %v730_v40 = vld [vmem:[#allocation2 + $0x688] sm:$0xff]  ;;  %v3348_v53 = vadd.f32 %v6949_v47, %v732_v31  ;;  %v607_v2 = vld [vmem:[#allocation2 + $0x2b0] sm:$0xff]  ;;  %v6952_v22 = vpop.f32.mrb[84].mxu1 }
 0x1a2   : > { %v4375_v20 = vmax.f32 %v4119_v6, 0.0  ;;  %v4245_v21 = vmax.f32 %v3989_v7, 0.0  ;;  %5527 = vst.msk [vmem:[%s8023_s29 + $0x128] sm:$0xf] %vm5452_vm4, %v6422_v10  ;;  %v6548_v25 = vpack.c.bf16 %v4372_v11, %v4372_v11  ;;  %5655 = vst.msk [vmem:[%s8023_s29 + $0x328] sm:$0xf] %vm5452_vm4, %v6550_v17  ;;  %v3218_v54 = vadd.f32 %v2437_v48, %v602_v32 }
 0x1a3   : > { %v6423_v26 = vpack.c.bf16 %v4247_v13, %v4247_v13  ;;  %v4373_v27 = vmax.f32 %v4117_v14, 0.0  ;;  %5525 = vst.msk [vmem:[%s8023_s29 + $0x120] sm:$0xf] %vm5452_vm4, %v6420_v19  ;;  %v3731_v35 = vld [vmem:[#allocation2 + $0x270] sm:$0xff]  ;;  %v3346_v61 = vadd.f32 %v2949_v55, %v730_v40  ;;  %v605_v8 = vld [vmem:[#allocation2 + $0x2a0] sm:$0xff]  ;;  %v6824_v14 = vpop.f32.mrb[84].mxu0 }
 0x1a4   : > { %v6551_v33 = vpack.c.bf16 %v4375_v20, %v4375_v20  ;;  %v6421_v34 = vpack.c.bf16 %v4245_v21, %v4245_v21  ;;  %5653 = vst.msk [vmem:[%s8023_s29 + $0x320] sm:$0xf] %vm5452_vm4, %v6548_v25  ;;  %v3994_v42 = vadd.f32 %v8488_v12, %v3731_v35  ;;  %v3859_v43 = vld [vmem:[#allocation2 + $0x670] sm:$0xff]  ;;  %v733_v15 = vld [vmem:[#allocation2 + $0x6a0] sm:$0xff]  ;;  %v608_v16 = vld [vmem:[#allocation2 + $0x2b8] sm:$0xff]  ;;  %v3223_v21 = vadd.f32 %v6824_v14, %v607_v2  ;;  %v2450_v23 = vpop.f32.mrb[85].mxu0 }
 0x1a5   : > { %5528 = vst.msk [vmem:[%s8023_s29 + $0x12c] sm:$0xf] %vm5452_vm4, %v6423_v26  ;;  %v6549_v41 = vpack.c.bf16 %v4373_v27, %v4373_v27  ;;  %v3729_v44 = vld [vmem:[#allocation2 + $0x260] sm:$0xff]  ;;  %v4122_v49 = vadd.f32 %v8488_v12, %v3859_v43  ;;  %v735_v7 = vld [vmem:[#allocation2 + $0x6b0] sm:$0xff]  ;;  %v736_v24 = vld [vmem:[#allocation2 + $0x6b8] sm:$0xff]  ;;  %v3221_v30 = vadd.f32 %v2450_v23, %v605_v8  ;;  %v2962_v31 = vpop.f32.mrb[85].mxu1 }
 0x1a6   : > { %3476 = vst.msk [vmem:[#allocation2 + $0x290] sm:$0xff] %vm264_vm3, %v3219_v28  ;;  %v3992_v50 = vadd.f32 %v8488_v12, %v3729_v44  ;;  %v3857_v51 = vld [vmem:[#allocation2 + $0x660] sm:$0xff]  ;;  %3604 = vst.msk [vmem:[#allocation2 + $0x690] sm:$0xff] %vm264_vm3, %v3347_v37  ;;  %v4250_v56 = vmax.f32 %v3994_v42, 0.0  ;;  %v606_v25 = vld [vmem:[#allocation2 + $0x2a8] sm:$0xff]  ;;  %v3351_v29 = vadd.f32 %v6952_v22, %v735_v7  ;;  %v6825_v32 = vpop.f32.mrb[86].mxu0  ;;  %v3349_v38 = vadd.f32 %v2962_v31, %v733_v15 }
 0x1a7   : > { %5656 = vst.msk [vmem:[%s8023_s29 + $0x32c] sm:$0xf] %vm5452_vm4, %v6551_v33  ;;  %5526 = vst.msk [vmem:[%s8023_s29 + $0x124] sm:$0xf] %vm5452_vm4, %v6421_v34  ;;  %v3732_v52 = vld [vmem:[#allocation2 + $0x278] sm:$0xff]  ;;  %v4120_v57 = vadd.f32 %v8488_v12, %v3857_v51  ;;  %v4378_v62 = vmax.f32 %v4122_v49, 0.0  ;;  %v3224_v39 = vadd.f32 %v6825_v32, %v608_v16 }
 0x1a8   : > { %3474 = vst.msk [vmem:[#allocation2 + $0x280] sm:$0xff] %vm264_vm3, %v3217_v18  ;;  %v3995_v58 = vadd.f32 %v8488_v12, %v3732_v52  ;;  %v3860_v59 = vld [vmem:[#allocation2 + $0x678] sm:$0xff]  ;;  %v3730_v60 = vld [vmem:[#allocation2 + $0x268] sm:$0xff]  ;;  %3602 = vst.msk [vmem:[#allocation2 + $0x680] sm:$0xff] %vm264_vm3, %v3345_v45  ;;  %v4248_v36 = vmax.f32 %v3992_v50, 0.0  ;;  %v6426_v3 = vpack.c.bf16 %v4250_v56, %v4250_v56  ;;  %v6953_v40 = vpop.f32.mrb[86].mxu1 }
 0x1a9   : > { %5654 = vst.msk [vmem:[%s8023_s29 + $0x324] sm:$0xf] %vm5452_vm4, %v6549_v41  ;;  %v4123_v63 = vadd.f32 %v8488_v12, %v3860_v59  ;;  %v3993_v0 = vadd.f32 %v8488_v12, %v3730_v60  ;;  %v3858_v1 = vld [vmem:[#allocation2 + $0x668] sm:$0xff]  ;;  %v4376_v4 = vmax.f32 %v4120_v57, 0.0  ;;  %v6554_v9 = vpack.c.bf16 %v4378_v62, %v4378_v62  ;;  %v2453_v41 = vpop.f32.mrb[87].mxu0  ;;  %v2965_v48 = vpop.f32.mrb[87].mxu1 }
 0x1aa   : > { %3477 = vst.msk [vmem:[#allocation2 + $0x298] sm:$0xff] %vm264_vm3, %v3220_v46  ;;  %3605 = vst.msk [vmem:[#allocation2 + $0x698] sm:$0xff] %vm264_vm3, %v3348_v53  ;;  %v4251_v5 = vmax.f32 %v3995_v58, 0.0  ;;  %v4121_v6 = vadd.f32 %v8488_v12, %v3858_v1  ;;  %v6424_v10 = vpack.c.bf16 %v4248_v36, %v4248_v36  ;;  %v734_v33 = vld [vmem:[#allocation2 + $0x6a8] sm:$0xff]  ;;  %v3352_v46 = vadd.f32 %v6953_v40, %v736_v24  ;;  %v611_v60 = vld [vmem:[#allocation2 + $0x2d0] sm:$0xff]  ;;  %v6956_v14 = vpop.f32.mrb[88].mxu1 }
 0x1ab   : > { %3475 = vst.msk [vmem:[#allocation2 + $0x288] sm:$0xff] %vm264_vm3, %v3218_v54  ;;  %3603 = vst.msk [vmem:[#allocation2 + $0x688] sm:$0xff] %vm264_vm3, %v3346_v61  ;;  %v4379_v11 = vmax.f32 %v4123_v63, 0.0  ;;  %v4249_v13 = vmax.f32 %v3993_v0, 0.0  ;;  %v6552_v17 = vpack.c.bf16 %v4376_v4, %v4376_v4  ;;  %v3222_v47 = vadd.f32 %v2453_v41, %v606_v25  ;;  %v739_v0 = vld [vmem:[#allocation2 + $0x6d0] sm:$0xff]  ;;  %v609_v1 = vld [vmem:[#allocation2 + $0x2c0] sm:$0xff] }
 0x1ac   : > { %5531 = vst.msk [vmem:[%s8023_s29 + $0x138] sm:$0xf] %vm5452_vm4, %v6426_v3  ;;  %v6427_v19 = vpack.c.bf16 %v4251_v5, %v4251_v5  ;;  %v4377_v20 = vmax.f32 %v4121_v6, 0.0  ;;  %5659 = vst.msk [vmem:[%s8023_s29 + $0x338] sm:$0xf] %vm5452_vm4, %v6554_v9  ;;  %v3350_v54 = vadd.f32 %v2965_v48, %v734_v33  ;;  %v6828_v6 = vpop.f32.mrb[88].mxu0  ;;  %v3355_v22 = vadd.f32 %v6956_v14, %v739_v0 }
 0x1ad   : > { %5529 = vst.msk [vmem:[%s8023_s29 + $0x130] sm:$0xf] %vm5452_vm4, %v6424_v10  ;;  %v6555_v26 = vpack.c.bf16 %v4379_v11, %v4379_v11  ;;  %v6425_v27 = vpack.c.bf16 %v4249_v13, %v4249_v13  ;;  %v3735_v28 = vld [vmem:[#allocation2 + $0x290] sm:$0xff]  ;;  %5657 = vst.msk [vmem:[%s8023_s29 + $0x330] sm:$0xf] %vm5452_vm4, %v6552_v17  ;;  %v737_v7 = vld [vmem:[#allocation2 + $0x6c0] sm:$0xff]  ;;  %v3227_v13 = vadd.f32 %v6828_v6, %v611_v60 }
 0x1ae   : > { %5532 = vst.msk [vmem:[%s8023_s29 + $0x13c] sm:$0xf] %vm5452_vm4, %v6427_v19  ;;  %v6553_v34 = vpack.c.bf16 %v4377_v20, %v4377_v20  ;;  %v3998_v35 = vadd.f32 %v8488_v12, %v3735_v28  ;;  %v3863_v37 = vld [vmem:[#allocation2 + $0x690] sm:$0xff]  ;;  %v612_v8 = vld [vmem:[#allocation2 + $0x2d8] sm:$0xff]  ;;  %v2466_v15 = vpop.f32.mrb[89].mxu0  ;;  %v610_v17 = vld [vmem:[#allocation2 + $0x2c8] sm:$0xff] }
 0x1af   : > { %v3733_v18 = vld [vmem:[#allocation2 + $0x280] sm:$0xff]  ;;  %3480 = vst.msk [vmem:[#allocation2 + $0x2b0] sm:$0xff] %vm264_vm3, %v3223_v21  ;;  %v4126_v42 = vadd.f32 %v8488_v12, %v3863_v37  ;;  %3608 = vst.msk [vmem:[#allocation2 + $0x6b0] sm:$0xff] %vm264_vm3, %v3351_v29  ;;  %v740_v16 = vld [vmem:[#allocation2 + $0x6d8] sm:$0xff]  ;;  %v3225_v23 = vadd.f32 %v2466_v15, %v609_v1  ;;  %v2978_v24 = vpop.f32.mrb[89].mxu1  ;;  %v6829_v25 = vpop.f32.mrb[90].mxu0 }
 0x1b0   : > { %5660 = vst.msk [vmem:[%s8023_s29 + $0x33c] sm:$0xf] %vm5452_vm4, %v6555_v26  ;;  %5530 = vst.msk [vmem:[%s8023_s29 + $0x134] sm:$0xf] %vm5452_vm4, %v6425_v27  ;;  %v3996_v43 = vadd.f32 %v8488_v12, %v3733_v18  ;;  %v3861_v44 = vld [vmem:[#allocation2 + $0x680] sm:$0xff]  ;;  %v4254_v49 = vmax.f32 %v3998_v35, 0.0  ;;  %v3353_v31 = vadd.f32 %v2978_v24, %v737_v7  ;;  %v3228_v32 = vadd.f32 %v6829_v25, %v612_v8 }
 0x1b1   : > { %v3736_v45 = vld [vmem:[#allocation2 + $0x298] sm:$0xff]  ;;  %3478 = vst.msk [vmem:[#allocation2 + $0x2a0] sm:$0xff] %vm264_vm3, %v3221_v30  ;;  %v4124_v50 = vadd.f32 %v8488_v12, %v3861_v44  ;;  %3606 = vst.msk [vmem:[#allocation2 + $0x6a0] sm:$0xff] %vm264_vm3, %v3349_v38  ;;  %v4382_v55 = vmax.f32 %v4126_v42, 0.0  ;;  %v738_v26 = vld [vmem:[#allocation2 + $0x6c8] sm:$0xff]  ;;  %v6957_v33 = vpop.f32.mrb[90].mxu1 }
 0x1b2   : > { %5658 = vst.msk [vmem:[%s8023_s29 + $0x334] sm:$0xf] %vm5452_vm4, %v6553_v34  ;;  %v3999_v51 = vadd.f32 %v8488_v12, %v3736_v45  ;;  %v3864_v52 = vld [vmem:[#allocation2 + $0x698] sm:$0xff]  ;;  %v3734_v53 = vld [vmem:[#allocation2 + $0x288] sm:$0xff]  ;;  %v4252_v56 = vmax.f32 %v3996_v43, 0.0  ;;  %v6430_v61 = vpack.c.bf16 %v4254_v49, %v4254_v49  ;;  %v2469_v34 = vpop.f32.mrb[91].mxu0 }
 0x1b3   : > { %3481 = vst.msk [vmem:[#allocation2 + $0x2b8] sm:$0xff] %vm264_vm3, %v3224_v39  ;;  %v4127_v57 = vadd.f32 %v8488_v12, %v3864_v52  ;;  %v3997_v58 = vadd.f32 %v8488_v12, %v3734_v53  ;;  %v3862_v59 = vld [vmem:[#allocation2 + $0x688] sm:$0xff]  ;;  %3609 = vst.msk [vmem:[#allocation2 + $0x6b8] sm:$0xff] %vm264_vm3, %v3352_v46  ;;  %v4380_v62 = vmax.f32 %v4124_v50, 0.0  ;;  %v6558_v2 = vpack.c.bf16 %v4382_v55, %v4382_v55  ;;  %v8723_v35 = vld [vmem:[%s9085_s2] ss:$0 sm:$0xff] }
 0x1b4   : > { %3479 = vst.msk [vmem:[#allocation2 + $0x2a8] sm:$0xff] %vm264_vm3, %v3222_v47  ;;  %v4255_v36 = vmax.f32 %v3999_v51, 0.0  ;;  %v4125_v63 = vadd.f32 %v8488_v12, %v3862_v59  ;;  %3607 = vst.msk [vmem:[#allocation2 + $0x6a8] sm:$0xff] %vm264_vm3, %v3350_v54  ;;  %v6428_v3 = vpack.c.bf16 %v4252_v56, %v4252_v56  ;;  %v3356_v39 = vadd.f32 %v6957_v33, %v740_v16  ;;  %v2981_v41 = vpop.f32.mrb[91].mxu1  ;;  %v615_v53 = vld [vmem:[#allocation2 + $0x2f0] sm:$0xff]  ;;  %v613_v59 = vld [vmem:[#allocation2 + $0x2e0] sm:$0xff] }
 0x1b5   : > { %v4383_v4 = vmax.f32 %v4127_v57, 0.0  ;;  %v4253_v5 = vmax.f32 %v3997_v58, 0.0  ;;  %5535 = vst.msk [vmem:[%s8023_s29 + $0x148] sm:$0xf] %vm5452_vm4, %v6430_v61  ;;  %v6556_v9 = vpack.c.bf16 %v4380_v62, %v4380_v62  ;;  %5663 = vst.msk [vmem:[%s8023_s29 + $0x348] sm:$0xf] %vm5452_vm4, %v6558_v2  ;;  %v3226_v40 = vadd.f32 %v2469_v34, %v610_v17 }
 0x1b6   : > { %v6431_v10 = vpack.c.bf16 %v4255_v36, %v4255_v36  ;;  %v4381_v11 = vmax.f32 %v4125_v63, 0.0  ;;  %5533 = vst.msk [vmem:[%s8023_s29 + $0x140] sm:$0xf] %vm5452_vm4, %v6428_v3  ;;  %v3739_v21 = vld [vmem:[#allocation2 + $0x2b0] sm:$0xff]  ;;  %v3354_v47 = vadd.f32 %v2981_v41, %v738_v26  ;;  %v6832_v63 = vpop.f32.mrb[92].mxu0  ;;  %v741_v0 = vld [vmem:[#allocation2 + $0x6e0] sm:$0xff] }
 0x1b7   : > { %v6559_v19 = vpack.c.bf16 %v4383_v4, %v4383_v4  ;;  %v6429_v20 = vpack.c.bf16 %v4253_v5, %v4253_v5  ;;  %5661 = vst.msk [vmem:[%s8023_s29 + $0x340] sm:$0xf] %vm5452_vm4, %v6556_v9  ;;  %v4002_v28 = vadd.f32 %v8488_v12, %v3739_v21  ;;  %v3867_v29 = vld [vmem:[#allocation2 + $0x6b0] sm:$0xff]  ;;  %v616_v1 = vld [vmem:[#allocation2 + $0x2f8] sm:$0xff]  ;;  %v3231_v5 = vadd.f32 %v6832_v63, %v615_v53  ;;  %v6960_v6 = vpop.f32.mrb[92].mxu1  ;;  %v2482_v7 = vpop.f32.mrb[93].mxu0 }
 0x1b8   : > { %5536 = vst.msk [vmem:[%s8023_s29 + $0x14c] sm:$0xf] %vm5452_vm4, %v6431_v10  ;;  %v6557_v27 = vpack.c.bf16 %v4381_v11, %v4381_v11  ;;  %v3737_v30 = vld [vmem:[#allocation2 + $0x2a0] sm:$0xff]  ;;  %v4130_v12 = vadd.f32 %v8723_v35, %v3867_v29  ;;  %v743_v58 = vld [vmem:[#allocation2 + $0x6f0] sm:$0xff]  ;;  %v744_v8 = vld [vmem:[#allocation2 + $0x6f8] sm:$0xff]  ;;  %v3229_v15 = vadd.f32 %v2482_v7, %v613_v59  ;;  %v2994_v16 = vpop.f32.mrb[93].mxu1 }
 0x1b9   : > { %3484 = vst.msk [vmem:[#allocation2 + $0x2d0] sm:$0xff] %vm264_vm3, %v3227_v13  ;;  %v4000_v37 = vadd.f32 %v8723_v35, %v3737_v30  ;;  %v3865_v18 = vld [vmem:[#allocation2 + $0x6a0] sm:$0xff]  ;;  %3612 = vst.msk [vmem:[#allocation2 + $0x6d0] sm:$0xff] %vm264_vm3, %v3355_v22  ;;  %v4258_v42 = vmax.f32 %v4002_v28, 0.0  ;;  %v614_v9 = vld [vmem:[#allocation2 + $0x2e8] sm:$0xff]  ;;  %v3359_v14 = vadd.f32 %v6960_v6, %v743_v58  ;;  %v6833_v17 = vpop.f32.mrb[94].mxu0  ;;  %v3357_v24 = vadd.f32 %v2994_v16, %v741_v0 }
 0x1ba   : > { %5664 = vst.msk [vmem:[%s8023_s29 + $0x34c] sm:$0xf] %vm5452_vm4, %v6559_v19  ;;  %5534 = vst.msk [vmem:[%s8023_s29 + $0x144] sm:$0xf] %vm5452_vm4, %v6429_v20  ;;  %v3740_v38 = vld [vmem:[#allocation2 + $0x2b8] sm:$0xff]  ;;  %v4128_v43 = vadd.f32 %v8723_v35, %v3865_v18  ;;  %v4386_v48 = vmax.f32 %v4130_v12, 0.0  ;;  %v3232_v25 = vadd.f32 %v6833_v17, %v616_v1 }
 0x1bb   : > { %3482 = vst.msk [vmem:[#allocation2 + $0x2c0] sm:$0xff] %vm264_vm3, %v3225_v23  ;;  %v4003_v44 = vadd.f32 %v8723_v35, %v3740_v38  ;;  %v3868_v45 = vld [vmem:[#allocation2 + $0x6b8] sm:$0xff]  ;;  %v3738_v46 = vld [vmem:[#allocation2 + $0x2a8] sm:$0xff]  ;;  %3610 = vst.msk [vmem:[#allocation2 + $0x6c0] sm:$0xff] %vm264_vm3, %v3353_v31  ;;  %v4256_v49 = vmax.f32 %v4000_v37, 0.0  ;;  %v6434_v54 = vpack.c.bf16 %v4258_v42, %v4258_v42  ;;  %v6961_v26 = vpop.f32.mrb[94].mxu1 }
 0x1bc   : > { %5662 = vst.msk [vmem:[%s8023_s29 + $0x344] sm:$0xf] %vm5452_vm4, %v6557_v27  ;;  %v4131_v50 = vadd.f32 %v8723_v35, %v3868_v45  ;;  %v4001_v51 = vadd.f32 %v8723_v35, %v3738_v46  ;;  %v3866_v52 = vld [vmem:[#allocation2 + $0x6a8] sm:$0xff]  ;;  %v4384_v55 = vmax.f32 %v4128_v43, 0.0  ;;  %v6562_v60 = vpack.c.bf16 %v4386_v48, %v4386_v48  ;;  %v2485_v27 = vpop.f32.mrb[95].mxu0  ;;  %v2997_v34 = vpop.f32.mrb[95].mxu1 }
 0x1bd   : > { %3485 = vst.msk [vmem:[#allocation2 + $0x2d8] sm:$0xff] %vm264_vm3, %v3228_v32  ;;  %3613 = vst.msk [vmem:[#allocation2 + $0x6d8] sm:$0xff] %vm264_vm3, %v3356_v39  ;;  %v4259_v56 = vmax.f32 %v4003_v44, 0.0  ;;  %v4129_v57 = vadd.f32 %v8723_v35, %v3866_v52  ;;  %v6432_v61 = vpack.c.bf16 %v4256_v49, %v4256_v49  ;;  %v742_v19 = vld [vmem:[#allocation2 + $0x6e8] sm:$0xff]  ;;  %v3360_v32 = vadd.f32 %v6961_v26, %v744_v8  ;;  %v619_v46 = vld [vmem:[#allocation2 + $0x310] sm:$0xff]  ;;  %v6964_v63 = vpop.f32.mrb[96].mxu1 }
 0x1be   : > { %3483 = vst.msk [vmem:[#allocation2 + $0x2c8] sm:$0xff] %vm264_vm3, %v3226_v40  ;;  %3611 = vst.msk [vmem:[#allocation2 + $0x6c8] sm:$0xff] %vm264_vm3, %v3354_v47  ;;  %v4387_v62 = vmax.f32 %v4131_v50, 0.0  ;;  %v4257_v36 = vmax.f32 %v4001_v51, 0.0  ;;  %v6560_v2 = vpack.c.bf16 %v4384_v55, %v4384_v55  ;;  %v3230_v33 = vadd.f32 %v2485_v27, %v614_v9  ;;  %v747_v51 = vld [vmem:[#allocation2 + $0x710] sm:$0xff]  ;;  %v617_v52 = vld [vmem:[#allocation2 + $0x300] sm:$0xff] }
 0x1bf   : > { %5539 = vst.msk [vmem:[%s8023_s29 + $0x158] sm:$0xf] %vm5452_vm4, %v6434_v54  ;;  %v6435_v3 = vpack.c.bf16 %v4259_v56, %v4259_v56  ;;  %v4385_v4 = vmax.f32 %v4129_v57, 0.0  ;;  %5667 = vst.msk [vmem:[%s8023_s29 + $0x358] sm:$0xf] %vm5452_vm4, %v6562_v60  ;;  %v3358_v40 = vadd.f32 %v2997_v34, %v742_v19  ;;  %v6836_v57 = vpop.f32.mrb[96].mxu0  ;;  %v3363_v6 = vadd.f32 %v6964_v63, %v747_v51 }
 0x1c0   : > { %5537 = vst.msk [vmem:[%s8023_s29 + $0x150] sm:$0xf] %vm5452_vm4, %v6432_v61  ;;  %v6563_v10 = vpack.c.bf16 %v4387_v62, %v4387_v62  ;;  %v6433_v11 = vpack.c.bf16 %v4257_v36, %v4257_v36  ;;  %v3743_v13 = vld [vmem:[#allocation2 + $0x2d0] sm:$0xff]  ;;  %5665 = vst.msk [vmem:[%s8023_s29 + $0x350] sm:$0xf] %vm5452_vm4, %v6560_v2  ;;  %v745_v58 = vld [vmem:[#allocation2 + $0x700] sm:$0xff]  ;;  %v3235_v36 = vadd.f32 %v6836_v57, %v619_v46 }
 0x1c1   : > { %5540 = vst.msk [vmem:[%s8023_s29 + $0x15c] sm:$0xf] %vm5452_vm4, %v6435_v3  ;;  %v6561_v20 = vpack.c.bf16 %v4385_v4, %v4385_v4  ;;  %v4006_v21 = vadd.f32 %v8723_v35, %v3743_v13  ;;  %v3871_v22 = vld [vmem:[#allocation2 + $0x6d0] sm:$0xff]  ;;  %v620_v59 = vld [vmem:[#allocation2 + $0x318] sm:$0xff]  ;;  %v2498_v0 = vpop.f32.mrb[97].mxu0  ;;  %v618_v2 = vld [vmem:[#allocation2 + $0x308] sm:$0xff] }
 0x1c2   : > { %v3741_v23 = vld [vmem:[#allocation2 + $0x2c0] sm:$0xff]  ;;  %3488 = vst.msk [vmem:[#allocation2 + $0x2f0] sm:$0xff] %vm264_vm3, %v3231_v5  ;;  %v4134_v28 = vadd.f32 %v8723_v35, %v3871_v22  ;;  %3616 = vst.msk [vmem:[#allocation2 + $0x6f0] sm:$0xff] %vm264_vm3, %v3359_v14  ;;  %v748_v1 = vld [vmem:[#allocation2 + $0x718] sm:$0xff]  ;;  %v3233_v7 = vadd.f32 %v2498_v0, %v617_v52  ;;  %v3010_v8 = vpop.f32.mrb[97].mxu1  ;;  %v6837_v9 = vpop.f32.mrb[98].mxu0 }
 0x1c3   : > { %5668 = vst.msk [vmem:[%s8023_s29 + $0x35c] sm:$0xf] %vm5452_vm4, %v6563_v10  ;;  %5538 = vst.msk [vmem:[%s8023_s29 + $0x154] sm:$0xf] %vm5452_vm4, %v6433_v11  ;;  %v4004_v29 = vadd.f32 %v8723_v35, %v3741_v23  ;;  %v3869_v30 = vld [vmem:[#allocation2 + $0x6c0] sm:$0xff]  ;;  %v4262_v12 = vmax.f32 %v4006_v21, 0.0  ;;  %v3361_v16 = vadd.f32 %v3010_v8, %v745_v58  ;;  %v3236_v17 = vadd.f32 %v6837_v9, %v620_v59 }
 0x1c4   : > { %v3744_v31 = vld [vmem:[#allocation2 + $0x2d8] sm:$0xff]  ;;  %3486 = vst.msk [vmem:[#allocation2 + $0x2e0] sm:$0xff] %vm264_vm3, %v3229_v15  ;;  %v4132_v37 = vadd.f32 %v8723_v35, %v3869_v30  ;;  %3614 = vst.msk [vmem:[#allocation2 + $0x6e0] sm:$0xff] %vm264_vm3, %v3357_v24  ;;  %v4390_v41 = vmax.f32 %v4134_v28, 0.0  ;;  %v746_v10 = vld [vmem:[#allocation2 + $0x708] sm:$0xff]  ;;  %v6965_v19 = vpop.f32.mrb[98].mxu1 }
 0x1c5   : > { %5666 = vst.msk [vmem:[%s8023_s29 + $0x354] sm:$0xf] %vm5452_vm4, %v6561_v20  ;;  %v4007_v18 = vadd.f32 %v8723_v35, %v3744_v31  ;;  %v3872_v38 = vld [vmem:[#allocation2 + $0x6d8] sm:$0xff]  ;;  %v3742_v39 = vld [vmem:[#allocation2 + $0x2c8] sm:$0xff]  ;;  %v4260_v42 = vmax.f32 %v4004_v29, 0.0  ;;  %v6438_v47 = vpack.c.bf16 %v4262_v12, %v4262_v12  ;;  %v2501_v20 = vpop.f32.mrb[99].mxu0 }
 0x1c6   : > { %3489 = vst.msk [vmem:[#allocation2 + $0x2f8] sm:$0xff] %vm264_vm3, %v3232_v25  ;;  %v4135_v43 = vadd.f32 %v8723_v35, %v3872_v38  ;;  %v4005_v44 = vadd.f32 %v8723_v35, %v3742_v39  ;;  %v3870_v45 = vld [vmem:[#allocation2 + $0x6c8] sm:$0xff]  ;;  %3617 = vst.msk [vmem:[#allocation2 + $0x6f8] sm:$0xff] %vm264_vm3, %v3360_v32  ;;  %v4388_v48 = vmax.f32 %v4132_v37, 0.0  ;;  %v6566_v53 = vpack.c.bf16 %v4390_v41, %v4390_v41  ;;  %v3013_v27 = vpop.f32.mrb[99].mxu1  ;;  %v623_v39 = vld [vmem:[#allocation2 + $0x330] sm:$0xff] }
 0x1c7   : > { %3487 = vst.msk [vmem:[#allocation2 + $0x2e8] sm:$0xff] %vm264_vm3, %v3230_v33  ;;  %v4263_v49 = vmax.f32 %v4007_v18, 0.0  ;;  %v4133_v50 = vadd.f32 %v8723_v35, %v3870_v45  ;;  %3615 = vst.msk [vmem:[#allocation2 + $0x6e8] sm:$0xff] %vm264_vm3, %v3358_v40  ;;  %v6436_v54 = vpack.c.bf16 %v4260_v42, %v4260_v42  ;;  %v3364_v25 = vadd.f32 %v6965_v19, %v748_v1  ;;  %v621_v45 = vld [vmem:[#allocation2 + $0x320] sm:$0xff]  ;;  %v624_v52 = vld [vmem:[#allocation2 + $0x338] sm:$0xff]  ;;  %v6968_v57 = vpop.f32.mrb[100].mxu1 }
 0x1c8   : > { %v4391_v55 = vmax.f32 %v4135_v43, 0.0  ;;  %v4261_v56 = vmax.f32 %v4005_v44, 0.0  ;;  %5543 = vst.msk [vmem:[%s8023_s29 + $0x168] sm:$0xf] %vm5452_vm4, %v6438_v47  ;;  %v6564_v60 = vpack.c.bf16 %v4388_v48, %v4388_v48  ;;  %5671 = vst.msk [vmem:[%s8023_s29 + $0x368] sm:$0xf] %vm5452_vm4, %v6566_v53  ;;  %v3234_v26 = vadd.f32 %v2501_v20, %v618_v2 }
 0x1c9   : > { %v6439_v61 = vpack.c.bf16 %v4263_v49, %v4263_v49  ;;  %v4389_v62 = vmax.f32 %v4133_v50, 0.0  ;;  %5541 = vst.msk [vmem:[%s8023_s29 + $0x160] sm:$0xf] %vm5452_vm4, %v6436_v54  ;;  %v3747_v5 = vld [vmem:[#allocation2 + $0x2f0] sm:$0xff]  ;;  %v3362_v33 = vadd.f32 %v3013_v27, %v746_v10  ;;  %v6840_v50 = vpop.f32.mrb[100].mxu0  ;;  %v749_v51 = vld [vmem:[#allocation2 + $0x720] sm:$0xff] }
 0x1ca   : > { %v6567_v3 = vpack.c.bf16 %v4391_v55, %v4391_v55  ;;  %v6437_v4 = vpack.c.bf16 %v4261_v56, %v4261_v56  ;;  %5669 = vst.msk [vmem:[%s8023_s29 + $0x360] sm:$0xf] %vm5452_vm4, %v6564_v60  ;;  %v4010_v13 = vadd.f32 %v8723_v35, %v3747_v5  ;;  %v3875_v14 = vld [vmem:[#allocation2 + $0x6f0] sm:$0xff]  ;;  %v3239_v56 = vadd.f32 %v6840_v50, %v623_v39  ;;  %v2514_v58 = vpop.f32.mrb[101].mxu0  ;;  %v752_v59 = vld [vmem:[#allocation2 + $0x738] sm:$0xff]  ;;  %v622_v60 = vld [vmem:[#allocation2 + $0x328] sm:$0xff] }
 0x1cb   : > { %5544 = vst.msk [vmem:[%s8023_s29 + $0x16c] sm:$0xf] %vm5452_vm4, %v6439_v61  ;;  %v6565_v11 = vpack.c.bf16 %v4389_v62, %v4389_v62  ;;  %v3745_v15 = vld [vmem:[#allocation2 + $0x2e0] sm:$0xff]  ;;  %v4138_v21 = vadd.f32 %v8723_v35, %v3875_v14  ;;  %v751_v44 = vld [vmem:[#allocation2 + $0x730] sm:$0xff]  ;;  %v3237_v0 = vadd.f32 %v2514_v58, %v621_v45  ;;  %v3026_v1 = vpop.f32.mrb[101].mxu1  ;;  %v6841_v2 = vpop.f32.mrb[102].mxu0 }
 0x1cc   : > { %3492 = vst.msk [vmem:[#allocation2 + $0x310] sm:$0xff] %vm264_vm3, %v3235_v36  ;;  %v4008_v22 = vadd.f32 %v8723_v35, %v3745_v15  ;;  %v3873_v23 = vld [vmem:[#allocation2 + $0x6e0] sm:$0xff]  ;;  %3620 = vst.msk [vmem:[#allocation2 + $0x710] sm:$0xff] %vm264_vm3, %v3363_v6  ;;  %v4266_v28 = vmax.f32 %v4010_v13, 0.0  ;;  %v3367_v63 = vadd.f32 %v6968_v57, %v751_v44  ;;  %v3365_v8 = vadd.f32 %v3026_v1, %v749_v51  ;;  %v6969_v10 = vpop.f32.mrb[102].mxu1  ;;  %v628_v45 = vld [vmem:[#allocation2 + $0x358] sm:$0xff] }
 0x1cd   : > { %5672 = vst.msk [vmem:[%s8023_s29 + $0x36c] sm:$0xf] %vm5452_vm4, %v6567_v3  ;;  %5542 = vst.msk [vmem:[%s8023_s29 + $0x164] sm:$0xf] %vm5452_vm4, %v6437_v4  ;;  %v3748_v24 = vld [vmem:[#allocation2 + $0x2f8] sm:$0xff]  ;;  %v4136_v29 = vadd.f32 %v8723_v35, %v3873_v23  ;;  %v4394_v34 = vmax.f32 %v4138_v21, 0.0  ;;  %v3240_v9 = vadd.f32 %v6841_v2, %v624_v52 }
 0x1ce   : > { %3490 = vst.msk [vmem:[#allocation2 + $0x300] sm:$0xff] %vm264_vm3, %v3233_v7  ;;  %v4011_v30 = vadd.f32 %v8723_v35, %v3748_v24  ;;  %v3876_v31 = vld [vmem:[#allocation2 + $0x6f8] sm:$0xff]  ;;  %v3746_v32 = vld [vmem:[#allocation2 + $0x2e8] sm:$0xff]  ;;  %3618 = vst.msk [vmem:[#allocation2 + $0x700] sm:$0xff] %vm264_vm3, %v3361_v16  ;;  %v4264_v12 = vmax.f32 %v4008_v22, 0.0  ;;  %v6442_v40 = vpack.c.bf16 %v4266_v28, %v4266_v28  ;;  %v3029_v20 = vpop.f32.mrb[103].mxu1 }
 0x1cf   : > { %5670 = vst.msk [vmem:[%s8023_s29 + $0x364] sm:$0xf] %vm5452_vm4, %v6565_v11  ;;  %v4139_v37 = vadd.f32 %v8723_v35, %v3876_v31  ;;  %v4009_v18 = vadd.f32 %v8723_v35, %v3746_v32  ;;  %v3874_v38 = vld [vmem:[#allocation2 + $0x6e8] sm:$0xff]  ;;  %v4392_v41 = vmax.f32 %v4136_v29, 0.0  ;;  %v6570_v46 = vpack.c.bf16 %v4394_v34, %v4394_v34  ;;  %v2517_v11 = vpop.f32.mrb[103].mxu0  ;;  %v627_v32 = vld [vmem:[#allocation2 + $0x350] sm:$0xff] }
 0x1d0   : > { %3493 = vst.msk [vmem:[#allocation2 + $0x318] sm:$0xff] %vm264_vm3, %v3236_v17  ;;  %3621 = vst.msk [vmem:[#allocation2 + $0x718] sm:$0xff] %vm264_vm3, %v3364_v25  ;;  %v4267_v42 = vmax.f32 %v4011_v30, 0.0  ;;  %v4137_v43 = vadd.f32 %v8723_v35, %v3874_v38  ;;  %v6440_v47 = vpack.c.bf16 %v4264_v12, %v4264_v12  ;;  %v750_v3 = vld [vmem:[#allocation2 + $0x728] sm:$0xff]  ;;  %v3368_v17 = vadd.f32 %v6969_v10, %v752_v59  ;;  %v625_v38 = vld [vmem:[#allocation2 + $0x340] sm:$0xff]  ;;  %v6972_v50 = vpop.f32.mrb[104].mxu1 }
 0x1d1   : > { %3491 = vst.msk [vmem:[#allocation2 + $0x308] sm:$0xff] %vm264_vm3, %v3234_v26  ;;  %3619 = vst.msk [vmem:[#allocation2 + $0x708] sm:$0xff] %vm264_vm3, %v3362_v33  ;;  %v4395_v48 = vmax.f32 %v4139_v37, 0.0  ;;  %v4265_v49 = vmax.f32 %v4009_v18, 0.0  ;;  %v6568_v53 = vpack.c.bf16 %v4392_v41, %v4392_v41  ;;  %v3238_v19 = vadd.f32 %v2517_v11, %v622_v60  ;;  %v755_v18 = vld [vmem:[#allocation2 + $0x750] sm:$0xff]  ;;  %v753_v44 = vld [vmem:[#allocation2 + $0x740] sm:$0xff] }
 0x1d2   : > { %5547 = vst.msk [vmem:[%s8023_s29 + $0x178] sm:$0xf] %vm5452_vm4, %v6442_v40  ;;  %v6443_v54 = vpack.c.bf16 %v4267_v42, %v4267_v42  ;;  %v4393_v55 = vmax.f32 %v4137_v43, 0.0  ;;  %5675 = vst.msk [vmem:[%s8023_s29 + $0x378] sm:$0xf] %vm5452_vm4, %v6570_v46  ;;  %v3366_v26 = vadd.f32 %v3029_v20, %v750_v3  ;;  %v6844_v43 = vpop.f32.mrb[104].mxu0  ;;  %v3371_v57 = vadd.f32 %v6972_v50, %v755_v18 }
 0x1d3   : > { %5545 = vst.msk [vmem:[%s8023_s29 + $0x170] sm:$0xf] %vm5452_vm4, %v6440_v47  ;;  %v6571_v61 = vpack.c.bf16 %v4395_v48, %v4395_v48  ;;  %v6441_v62 = vpack.c.bf16 %v4265_v49, %v4265_v49  ;;  %v3751_v36 = vld [vmem:[#allocation2 + $0x310] sm:$0xff]  ;;  %5673 = vst.msk [vmem:[%s8023_s29 + $0x370] sm:$0xf] %vm5452_vm4, %v6568_v53  ;;  %v3243_v49 = vadd.f32 %v6844_v43, %v627_v32  ;;  %v2530_v51 = vpop.f32.mrb[105].mxu0 }
 0x1d4   : > { %5548 = vst.msk [vmem:[%s8023_s29 + $0x17c] sm:$0xf] %vm5452_vm4, %v6443_v54  ;;  %v6569_v4 = vpack.c.bf16 %v4393_v55, %v4393_v55  ;;  %v4014_v5 = vadd.f32 %v8723_v35, %v3751_v36  ;;  %v3879_v6 = vld [vmem:[#allocation2 + $0x710] sm:$0xff]  ;;  %v756_v52 = vld [vmem:[#allocation2 + $0x758] sm:$0xff]  ;;  %v626_v53 = vld [vmem:[#allocation2 + $0x348] sm:$0xff]  ;;  %v3241_v58 = vadd.f32 %v2530_v51, %v625_v38  ;;  %v3042_v59 = vpop.f32.mrb[105].mxu1 }
 0x1d5   : > { %v3749_v7 = vld [vmem:[#allocation2 + $0x300] sm:$0xff]  ;;  %3496 = vst.msk [vmem:[#allocation2 + $0x330] sm:$0xff] %vm264_vm3, %v3239_v56  ;;  %v4142_v13 = vadd.f32 %v8723_v35, %v3879_v6  ;;  %3624 = vst.msk [vmem:[#allocation2 + $0x730] sm:$0xff] %vm264_vm3, %v3367_v63  ;;  %v6845_v60 = vpop.f32.mrb[106].mxu0  ;;  %v3369_v1 = vadd.f32 %v3042_v59, %v753_v44  ;;  %v6973_v3 = vpop.f32.mrb[106].mxu1  ;;  %v632_v38 = vld [vmem:[#allocation2 + $0x378] sm:$0xff] }
 0x1d6   : > { %5676 = vst.msk [vmem:[%s8023_s29 + $0x37c] sm:$0xf] %vm5452_vm4, %v6571_v61  ;;  %5546 = vst.msk [vmem:[%s8023_s29 + $0x174] sm:$0xf] %vm5452_vm4, %v6441_v62  ;;  %v4012_v14 = vadd.f32 %v8723_v35, %v3749_v7  ;;  %v3877_v15 = vld [vmem:[#allocation2 + $0x700] sm:$0xff]  ;;  %v4270_v21 = vmax.f32 %v4014_v5, 0.0  ;;  %v3244_v2 = vadd.f32 %v6845_v60, %v628_v45 }
 0x1d7   : > { %v3752_v16 = vld [vmem:[#allocation2 + $0x318] sm:$0xff]  ;;  %3494 = vst.msk [vmem:[#allocation2 + $0x320] sm:$0xff] %vm264_vm3, %v3237_v0  ;;  %v4140_v22 = vadd.f32 %v8723_v35, %v3877_v15  ;;  %3622 = vst.msk [vmem:[#allocation2 + $0x720] sm:$0xff] %vm264_vm3, %v3365_v8  ;;  %v4398_v27 = vmax.f32 %v4142_v13, 0.0  ;;  %v754_v61 = vld [vmem:[#allocation2 + $0x748] sm:$0xff]  ;;  %v3045_v11 = vpop.f32.mrb[107].mxu1 }
 0x1d8   : > { %5674 = vst.msk [vmem:[%s8023_s29 + $0x374] sm:$0xf] %vm5452_vm4, %v6569_v4  ;;  %v4015_v23 = vadd.f32 %v8723_v35, %v3752_v16  ;;  %v3880_v24 = vld [vmem:[#allocation2 + $0x718] sm:$0xff]  ;;  %v3750_v25 = vld [vmem:[#allocation2 + $0x308] sm:$0xff]  ;;  %v4268_v28 = vmax.f32 %v4012_v14, 0.0  ;;  %v6446_v33 = vpack.c.bf16 %v4270_v21, %v4270_v21  ;;  %v2533_v4 = vpop.f32.mrb[107].mxu0 }
 0x1d9   : > { %3497 = vst.msk [vmem:[#allocation2 + $0x338] sm:$0xff] %vm264_vm3, %v3240_v9  ;;  %v4143_v29 = vadd.f32 %v8723_v35, %v3880_v24  ;;  %v4013_v30 = vadd.f32 %v8723_v35, %v3750_v25  ;;  %v3878_v31 = vld [vmem:[#allocation2 + $0x708] sm:$0xff]  ;;  %3625 = vst.msk [vmem:[#allocation2 + $0x738] sm:$0xff] %vm264_vm3, %v3368_v17  ;;  %v4396_v34 = vmax.f32 %v4140_v22, 0.0  ;;  %v6574_v39 = vpack.c.bf16 %v4398_v27, %v4398_v27  ;;  %v631_v25 = vld [vmem:[#allocation2 + $0x370] sm:$0xff]  ;;  %v6976_v43 = vpop.f32.mrb[108].mxu1 }
 0x1da   : > { %3495 = vst.msk [vmem:[#allocation2 + $0x328] sm:$0xff] %vm264_vm3, %v3238_v19  ;;  %v4271_v12 = vmax.f32 %v4015_v23, 0.0  ;;  %v4141_v37 = vadd.f32 %v8723_v35, %v3878_v31  ;;  %3623 = vst.msk [vmem:[#allocation2 + $0x728] sm:$0xff] %vm264_vm3, %v3366_v26  ;;  %v6444_v40 = vpack.c.bf16 %v4268_v28, %v4268_v28  ;;  %v3372_v9 = vadd.f32 %v6973_v3, %v756_v52  ;;  %v629_v31 = vld [vmem:[#allocation2 + $0x360] sm:$0xff]  ;;  %v760_v45 = vld [vmem:[#allocation2 + $0x778] sm:$0xff]  ;;  %v3058_v52 = vpop.f32.mrb[109].mxu1 }
 0x1db   : > { %v4399_v41 = vmax.f32 %v4143_v29, 0.0  ;;  %v4269_v42 = vmax.f32 %v4013_v30, 0.0  ;;  %5551 = vst.msk [vmem:[%s8023_s29 + $0x188] sm:$0xf] %vm5452_vm4, %v6446_v33  ;;  %v6572_v46 = vpack.c.bf16 %v4396_v34, %v4396_v34  ;;  %5679 = vst.msk [vmem:[%s8023_s29 + $0x388] sm:$0xf] %vm5452_vm4, %v6574_v39  ;;  %v3242_v10 = vadd.f32 %v2533_v4, %v626_v53 }
 0x1dc   : > { %v6447_v47 = vpack.c.bf16 %v4271_v12, %v4271_v12  ;;  %v4397_v48 = vmax.f32 %v4141_v37, 0.0  ;;  %5549 = vst.msk [vmem:[%s8023_s29 + $0x180] sm:$0xf] %vm5452_vm4, %v6444_v40  ;;  %v3755_v56 = vld [vmem:[#allocation2 + $0x330] sm:$0xff]  ;;  %v3370_v19 = vadd.f32 %v3045_v11, %v754_v61  ;;  %v6848_v37 = vpop.f32.mrb[108].mxu0  ;;  %v757_v18 = vld [vmem:[#allocation2 + $0x760] sm:$0xff] }
 0x1dd   : > { %v6575_v54 = vpack.c.bf16 %v4399_v41, %v4399_v41  ;;  %v6445_v55 = vpack.c.bf16 %v4269_v42, %v4269_v42  ;;  %5677 = vst.msk [vmem:[%s8023_s29 + $0x380] sm:$0xf] %vm5452_vm4, %v6572_v46  ;;  %v4018_v36 = vadd.f32 %v8723_v35, %v3755_v56  ;;  %v3883_v63 = vld [vmem:[#allocation2 + $0x730] sm:$0xff]  ;;  %v3247_v42 = vadd.f32 %v6848_v37, %v631_v25  ;;  %v2546_v44 = vpop.f32.mrb[109].mxu0  ;;  %v630_v46 = vld [vmem:[#allocation2 + $0x368] sm:$0xff]  ;;  %v6977_v61 = vpop.f32.mrb[110].mxu1 }
 0x1de   : > { %5552 = vst.msk [vmem:[%s8023_s29 + $0x18c] sm:$0xf] %vm5452_vm4, %v6447_v47  ;;  %v6573_v62 = vpack.c.bf16 %v4397_v48, %v4397_v48  ;;  %v3753_v0 = vld [vmem:[#allocation2 + $0x320] sm:$0xff]  ;;  %v4146_v5 = vadd.f32 %v8723_v35, %v3883_v63  ;;  %v759_v30 = vld [vmem:[#allocation2 + $0x770] sm:$0xff]  ;;  %v3245_v51 = vadd.f32 %v2546_v44, %v629_v31  ;;  %v6849_v53 = vpop.f32.mrb[110].mxu0  ;;  %v3373_v59 = vadd.f32 %v3058_v52, %v757_v18  ;;  %v3061_v4 = vpop.f32.mrb[111].mxu1 }
 0x1df   : > { %3500 = vst.msk [vmem:[#allocation2 + $0x350] sm:$0xff] %vm264_vm3, %v3243_v49  ;;  %v4016_v6 = vadd.f32 %v8723_v35, %v3753_v0  ;;  %v3881_v7 = vld [vmem:[#allocation2 + $0x720] sm:$0xff]  ;;  %3628 = vst.msk [vmem:[#allocation2 + $0x750] sm:$0xff] %vm264_vm3, %v3371_v57  ;;  %v4274_v13 = vmax.f32 %v4018_v36, 0.0  ;;  %v3375_v50 = vadd.f32 %v6976_v43, %v759_v30  ;;  %v3248_v60 = vadd.f32 %v6849_v53, %v632_v38  ;;  %v636_v31 = vld [vmem:[#allocation2 + $0x398] sm:$0xff]  ;;  %v6980_v37 = vpop.f32.mrb[112].mxu1 }
 0x1e0   : > { %5680 = vst.msk [vmem:[%s8023_s29 + $0x38c] sm:$0xf] %vm5452_vm4, %v6575_v54  ;;  %5550 = vst.msk [vmem:[%s8023_s29 + $0x184] sm:$0xf] %vm5452_vm4, %v6445_v55  ;;  %v3756_v8 = vld [vmem:[#allocation2 + $0x338] sm:$0xff]  ;;  %v4144_v14 = vadd.f32 %v8723_v35, %v3881_v7  ;;  %v4402_v20 = vmax.f32 %v4146_v5, 0.0 }
 0x1e1   : > { %3498 = vst.msk [vmem:[#allocation2 + $0x340] sm:$0xff] %vm264_vm3, %v3241_v58  ;;  %v4019_v15 = vadd.f32 %v8723_v35, %v3756_v8  ;;  %v3884_v16 = vld [vmem:[#allocation2 + $0x738] sm:$0xff]  ;;  %v3754_v17 = vld [vmem:[#allocation2 + $0x328] sm:$0xff]  ;;  %3626 = vst.msk [vmem:[#allocation2 + $0x740] sm:$0xff] %vm264_vm3, %v3369_v1  ;;  %v4272_v21 = vmax.f32 %v4016_v6, 0.0  ;;  %v6450_v26 = vpack.c.bf16 %v4274_v13, %v4274_v13 }
 0x1e2   : > { %5678 = vst.msk [vmem:[%s8023_s29 + $0x384] sm:$0xf] %vm5452_vm4, %v6573_v62  ;;  %v4147_v22 = vadd.f32 %v8723_v35, %v3884_v16  ;;  %v4017_v23 = vadd.f32 %v8723_v35, %v3754_v17  ;;  %v3882_v24 = vld [vmem:[#allocation2 + $0x728] sm:$0xff]  ;;  %v4400_v27 = vmax.f32 %v4144_v14, 0.0  ;;  %v6578_v32 = vpack.c.bf16 %v4402_v20, %v4402_v20  ;;  %v2549_v62 = vpop.f32.mrb[111].mxu0  ;;  %v635_v17 = vld [vmem:[#allocation2 + $0x390] sm:$0xff] }
 0x1e3   : > { %3501 = vst.msk [vmem:[#allocation2 + $0x358] sm:$0xff] %vm264_vm3, %v3244_v2  ;;  %3629 = vst.msk [vmem:[#allocation2 + $0x758] sm:$0xff] %vm264_vm3, %v3372_v9  ;;  %v4275_v28 = vmax.f32 %v4019_v15, 0.0  ;;  %v4145_v29 = vadd.f32 %v8723_v35, %v3882_v24  ;;  %v6448_v33 = vpack.c.bf16 %v4272_v21, %v4272_v21  ;;  %v758_v54 = vld [vmem:[#allocation2 + $0x768] sm:$0xff]  ;;  %v3376_v2 = vadd.f32 %v6977_v61, %v760_v45  ;;  %v633_v24 = vld [vmem:[#allocation2 + $0x380] sm:$0xff]  ;;  %v3074_v45 = vpop.f32.mrb[113].mxu1 }
 0x1e4   : > { %3499 = vst.msk [vmem:[#allocation2 + $0x348] sm:$0xff] %vm264_vm3, %v3242_v10  ;;  %3627 = vst.msk [vmem:[#allocation2 + $0x748] sm:$0xff] %vm264_vm3, %v3370_v19  ;;  %v4403_v34 = vmax.f32 %v4147_v22, 0.0  ;;  %v4273_v12 = vmax.f32 %v4017_v23, 0.0  ;;  %v6576_v39 = vpack.c.bf16 %v4400_v27, %v4400_v27  ;;  %v3246_v3 = vadd.f32 %v2549_v62, %v630_v46  ;;  %v763_v23 = vld [vmem:[#allocation2 + $0x790] sm:$0xff]  ;;  %v761_v30 = vld [vmem:[#allocation2 + $0x780] sm:$0xff] }
 0x1e5   : > { %5555 = vst.msk [vmem:[%s8023_s29 + $0x198] sm:$0xf] %vm5452_vm4, %v6450_v26  ;;  %v6451_v40 = vpack.c.bf16 %v4275_v28, %v4275_v28  ;;  %v4401_v41 = vmax.f32 %v4145_v29, 0.0  ;;  %5683 = vst.msk [vmem:[%s8023_s29 + $0x398] sm:$0xf] %vm5452_vm4, %v6578_v32  ;;  %v3374_v10 = vadd.f32 %v3061_v4, %v758_v54  ;;  %v6852_v29 = vpop.f32.mrb[112].mxu0  ;;  %v3379_v43 = vadd.f32 %v6980_v37, %v763_v23 }
 0x1e6   : > { %5553 = vst.msk [vmem:[%s8023_s29 + $0x190] sm:$0xf] %vm5452_vm4, %v6448_v33  ;;  %v6579_v47 = vpack.c.bf16 %v4403_v34, %v4403_v34  ;;  %v6449_v48 = vpack.c.bf16 %v4273_v12, %v4273_v12  ;;  %v3759_v49 = vld [vmem:[#allocation2 + $0x350] sm:$0xff]  ;;  %5681 = vst.msk [vmem:[%s8023_s29 + $0x390] sm:$0xf] %vm5452_vm4, %v6576_v39  ;;  %v3251_v12 = vadd.f32 %v6852_v29, %v635_v17  ;;  %v2562_v18 = vpop.f32.mrb[113].mxu0 }
 0x1e7   : > { %5556 = vst.msk [vmem:[%s8023_s29 + $0x19c] sm:$0xf] %vm5452_vm4, %v6451_v40  ;;  %v6577_v55 = vpack.c.bf16 %v4401_v41, %v4401_v41  ;;  %v4022_v56 = vadd.f32 %v8723_v35, %v3759_v49  ;;  %v3887_v57 = vld [vmem:[#allocation2 + $0x750] sm:$0xff]  ;;  %v764_v38 = vld [vmem:[#allocation2 + $0x798] sm:$0xff]  ;;  %v634_v39 = vld [vmem:[#allocation2 + $0x388] sm:$0xff]  ;;  %v3249_v44 = vadd.f32 %v2562_v18, %v633_v24  ;;  %v6853_v46 = vpop.f32.mrb[114].mxu0  ;;  %v3377_v52 = vadd.f32 %v3074_v45, %v761_v30 }
 0x1e8   : > { %v3757_v58 = vld [vmem:[#allocation2 + $0x340] sm:$0xff]  ;;  %3504 = vst.msk [vmem:[#allocation2 + $0x370] sm:$0xff] %vm264_vm3, %v3247_v42  ;;  %v4150_v36 = vadd.f32 %v8723_v35, %v3887_v57  ;;  %3632 = vst.msk [vmem:[#allocation2 + $0x770] sm:$0xff] %vm264_vm3, %v3375_v50  ;;  %v3252_v53 = vadd.f32 %v6853_v46, %v636_v31  ;;  %v6981_v54 = vpop.f32.mrb[114].mxu1  ;;  %v640_v24 = vld [vmem:[#allocation2 + $0x3b8] sm:$0xff] }
 0x1e9   : > { %5684 = vst.msk [vmem:[%s8023_s29 + $0x39c] sm:$0xf] %vm5452_vm4, %v6579_v47  ;;  %5554 = vst.msk [vmem:[%s8023_s29 + $0x194] sm:$0xf] %vm5452_vm4, %v6449_v48  ;;  %v4020_v63 = vadd.f32 %v8723_v35, %v3757_v58  ;;  %v3885_v0 = vld [vmem:[#allocation2 + $0x740] sm:$0xff]  ;;  %v4278_v5 = vmax.f32 %v4022_v56, 0.0 }
 0x1ea   : > { %v3760_v1 = vld [vmem:[#allocation2 + $0x358] sm:$0xff]  ;;  %3502 = vst.msk [vmem:[#allocation2 + $0x360] sm:$0xff] %vm264_vm3, %v3245_v51  ;;  %v4148_v6 = vadd.f32 %v8723_v35, %v3885_v0  ;;  %3630 = vst.msk [vmem:[#allocation2 + $0x760] sm:$0xff] %vm264_vm3, %v3373_v59  ;;  %v4406_v11 = vmax.f32 %v4150_v36, 0.0  ;;  %v762_v47 = vld [vmem:[#allocation2 + $0x788] sm:$0xff]  ;;  %v3077_v62 = vpop.f32.mrb[115].mxu1 }
 0x1eb   : > { %5682 = vst.msk [vmem:[%s8023_s29 + $0x394] sm:$0xf] %vm5452_vm4, %v6577_v55  ;;  %v4023_v7 = vadd.f32 %v8723_v35, %v3760_v1  ;;  %v3888_v8 = vld [vmem:[#allocation2 + $0x758] sm:$0xff]  ;;  %v3758_v9 = vld [vmem:[#allocation2 + $0x348] sm:$0xff]  ;;  %v4276_v13 = vmax.f32 %v4020_v63, 0.0  ;;  %v6454_v19 = vpack.c.bf16 %v4278_v5, %v4278_v5  ;;  %v2565_v55 = vpop.f32.mrb[115].mxu0 }
 0x1ec   : > { %3505 = vst.msk [vmem:[#allocation2 + $0x378] sm:$0xff] %vm264_vm3, %v3248_v60  ;;  %v4151_v14 = vadd.f32 %v8723_v35, %v3888_v8  ;;  %v4021_v15 = vadd.f32 %v8723_v35, %v3758_v9  ;;  %v3886_v16 = vld [vmem:[#allocation2 + $0x748] sm:$0xff]  ;;  %3633 = vst.msk [vmem:[#allocation2 + $0x778] sm:$0xff] %vm264_vm3, %v3376_v2  ;;  %v4404_v20 = vmax.f32 %v4148_v6, 0.0  ;;  %v6582_v25 = vpack.c.bf16 %v4406_v11, %v4406_v11  ;;  %v639_v9 = vld [vmem:[#allocation2 + $0x3b0] sm:$0xff]  ;;  %v6984_v29 = vpop.f32.mrb[116].mxu1 }
 0x1ed   : > { %3503 = vst.msk [vmem:[#allocation2 + $0x368] sm:$0xff] %vm264_vm3, %v3246_v3  ;;  %v4279_v21 = vmax.f32 %v4023_v7, 0.0  ;;  %v4149_v22 = vadd.f32 %v8723_v35, %v3886_v16  ;;  %3631 = vst.msk [vmem:[#allocation2 + $0x768] sm:$0xff] %vm264_vm3, %v3374_v10  ;;  %v6452_v26 = vpack.c.bf16 %v4276_v13, %v4276_v13  ;;  %v3380_v60 = vadd.f32 %v6981_v54, %v764_v38  ;;  %v637_v16 = vld [vmem:[#allocation2 + $0x3a0] sm:$0xff]  ;;  %v768_v31 = vld [vmem:[#allocation2 + $0x7b8] sm:$0xff]  ;;  %v3090_v38 = vpop.f32.mrb[117].mxu1 }
 0x1ee   : > { %v4407_v27 = vmax.f32 %v4151_v14, 0.0  ;;  %v4277_v28 = vmax.f32 %v4021_v15, 0.0  ;;  %5559 = vst.msk [vmem:[%s8023_s29 + $0x1a8] sm:$0xf] %vm5452_vm4, %v6454_v19  ;;  %v6580_v32 = vpack.c.bf16 %v4404_v20, %v4404_v20  ;;  %5687 = vst.msk [vmem:[%s8023_s29 + $0x3a8] sm:$0xf] %vm5452_vm4, %v6582_v25  ;;  %v3250_v61 = vadd.f32 %v2565_v55, %v634_v39 }
 0x1ef   : > { %v6455_v33 = vpack.c.bf16 %v4279_v21, %v4279_v21  ;;  %v4405_v34 = vmax.f32 %v4149_v22, 0.0  ;;  %5557 = vst.msk [vmem:[%s8023_s29 + $0x1a0] sm:$0xf] %vm5452_vm4, %v6452_v26  ;;  %v3763_v42 = vld [vmem:[#allocation2 + $0x370] sm:$0xff]  ;;  %v3378_v3 = vadd.f32 %v3077_v62, %v762_v47  ;;  %v6856_v22 = vpop.f32.mrb[116].mxu0  ;;  %v765_v23 = vld [vmem:[#allocation2 + $0x7a0] sm:$0xff] }
 0x1f0   : > { %v6583_v40 = vpack.c.bf16 %v4407_v27, %v4407_v27  ;;  %v6453_v41 = vpack.c.bf16 %v4277_v28, %v4277_v28  ;;  %5685 = vst.msk [vmem:[%s8023_s29 + $0x3a0] sm:$0xf] %vm5452_vm4, %v6580_v32  ;;  %v4026_v49 = vadd.f32 %v8723_v35, %v3763_v42  ;;  %v3891_v50 = vld [vmem:[#allocation2 + $0x770] sm:$0xff]  ;;  %v3255_v28 = vadd.f32 %v6856_v22, %v639_v9  ;;  %v2578_v30 = vpop.f32.mrb[117].mxu0  ;;  %v638_v32 = vld [vmem:[#allocation2 + $0x3a8] sm:$0xff]  ;;  %v6985_v47 = vpop.f32.mrb[118].mxu1 }
 0x1f1   : > { %5560 = vst.msk [vmem:[%s8023_s29 + $0x1ac] sm:$0xf] %vm5452_vm4, %v6455_v33  ;;  %v6581_v48 = vpack.c.bf16 %v4405_v34, %v4405_v34  ;;  %v3761_v51 = vld [vmem:[#allocation2 + $0x360] sm:$0xff]  ;;  %v4154_v56 = vadd.f32 %v8723_v35, %v3891_v50  ;;  %v767_v15 = vld [vmem:[#allocation2 + $0x7b0] sm:$0xff]  ;;  %v3253_v18 = vadd.f32 %v2578_v30, %v637_v16  ;;  %v6857_v39 = vpop.f32.mrb[118].mxu0  ;;  %v3381_v45 = vadd.f32 %v3090_v38, %v765_v23  ;;  %v3093_v55 = vpop.f32.mrb[119].mxu1 }
 0x1f2   : > { %3508 = vst.msk [vmem:[#allocation2 + $0x390] sm:$0xff] %vm264_vm3, %v3251_v12  ;;  %v4024_v57 = vadd.f32 %v8723_v35, %v3761_v51  ;;  %v3889_v58 = vld [vmem:[#allocation2 + $0x760] sm:$0xff]  ;;  %3636 = vst.msk [vmem:[#allocation2 + $0x790] sm:$0xff] %vm264_vm3, %v3379_v43  ;;  %v4282_v36 = vmax.f32 %v4026_v49, 0.0  ;;  %v3383_v37 = vadd.f32 %v6984_v29, %v767_v15  ;;  %v3256_v46 = vadd.f32 %v6857_v39, %v640_v24  ;;  %v644_v16 = vld [vmem:[#allocation2 + $0x3d8] sm:$0xff]  ;;  %v6988_v22 = vpop.f32.mrb[120].mxu1 }
 0x1f3   : > { %5688 = vst.msk [vmem:[%s8023_s29 + $0x3ac] sm:$0xf] %vm5452_vm4, %v6583_v40  ;;  %5558 = vst.msk [vmem:[%s8023_s29 + $0x1a4] sm:$0xf] %vm5452_vm4, %v6453_v41  ;;  %v3764_v59 = vld [vmem:[#allocation2 + $0x378] sm:$0xff]  ;;  %v4152_v63 = vadd.f32 %v8723_v35, %v3889_v58  ;;  %v4410_v4 = vmax.f32 %v4154_v56, 0.0 }
 0x1f4   : > { %3506 = vst.msk [vmem:[#allocation2 + $0x380] sm:$0xff] %vm264_vm3, %v3249_v44  ;;  %v4027_v0 = vadd.f32 %v8723_v35, %v3764_v59  ;;  %v3892_v1 = vld [vmem:[#allocation2 + $0x778] sm:$0xff]  ;;  %v3762_v2 = vld [vmem:[#allocation2 + $0x368] sm:$0xff]  ;;  %3634 = vst.msk [vmem:[#allocation2 + $0x780] sm:$0xff] %vm264_vm3, %v3377_v52  ;;  %v4280_v5 = vmax.f32 %v4024_v57, 0.0  ;;  %v6458_v10 = vpack.c.bf16 %v4282_v36, %v4282_v36 }
 0x1f5   : > { %5686 = vst.msk [vmem:[%s8023_s29 + $0x3a4] sm:$0xf] %vm5452_vm4, %v6581_v48  ;;  %v4155_v6 = vadd.f32 %v8723_v35, %v3892_v1  ;;  %v4025_v7 = vadd.f32 %v8723_v35, %v3762_v2  ;;  %v3890_v8 = vld [vmem:[#allocation2 + $0x768] sm:$0xff]  ;;  %v4408_v11 = vmax.f32 %v4152_v63, 0.0  ;;  %v6586_v17 = vpack.c.bf16 %v4410_v4, %v4410_v4  ;;  %v2581_v48 = vpop.f32.mrb[119].mxu0  ;;  %v643_v2 = vld [vmem:[#allocation2 + $0x3d0] sm:$0xff] }
 0x1f6   : > { %3509 = vst.msk [vmem:[#allocation2 + $0x398] sm:$0xff] %vm264_vm3, %v3252_v53  ;;  %3637 = vst.msk [vmem:[#allocation2 + $0x798] sm:$0xff] %vm264_vm3, %v3380_v60  ;;  %v4283_v13 = vmax.f32 %v4027_v0, 0.0  ;;  %v4153_v14 = vadd.f32 %v8723_v35, %v3890_v8  ;;  %v6456_v19 = vpack.c.bf16 %v4280_v5, %v4280_v5  ;;  %v766_v40 = vld [vmem:[#allocation2 + $0x7a8] sm:$0xff]  ;;  %v3384_v53 = vadd.f32 %v6985_v47, %v768_v31  ;;  %v8958_v57 = vld [vmem:[%s9085_s2] ss:$0 sm:$0xff] }
 0x1f7   : > { %3507 = vst.msk [vmem:[#allocation2 + $0x388] sm:$0xff] %vm264_vm3, %v3250_v61  ;;  %3635 = vst.msk [vmem:[#allocation2 + $0x788] sm:$0xff] %vm264_vm3, %v3378_v3  ;;  %v4411_v20 = vmax.f32 %v4155_v6, 0.0  ;;  %v4281_v21 = vmax.f32 %v4025_v7, 0.0  ;;  %v6584_v25 = vpack.c.bf16 %v4408_v11, %v4408_v11  ;;  %v3254_v54 = vadd.f32 %v2581_v48, %v638_v32  ;;  %v771_v7 = vld [vmem:[#allocation2 + $0x7d0] sm:$0xff]  ;;  %v641_v8 = vld [vmem:[#allocation2 + $0x3c0] sm:$0xff] }
 0x1f8   : > { %5563 = vst.msk [vmem:[%s8023_s29 + $0x1b8] sm:$0xf] %vm5452_vm4, %v6458_v10  ;;  %v6459_v26 = vpack.c.bf16 %v4283_v13, %v4283_v13  ;;  %v4409_v27 = vmax.f32 %v4153_v14, 0.0  ;;  %5691 = vst.msk [vmem:[%s8023_s29 + $0x3b8] sm:$0xf] %vm5452_vm4, %v6586_v17  ;;  %v3382_v61 = vadd.f32 %v3093_v55, %v766_v40  ;;  %v6860_v14 = vpop.f32.mrb[120].mxu0  ;;  %v3387_v29 = vadd.f32 %v6988_v22, %v771_v7 }
 0x1f9   : > { %5561 = vst.msk [vmem:[%s8023_s29 + $0x1b0] sm:$0xf] %vm5452_vm4, %v6456_v19  ;;  %v6587_v33 = vpack.c.bf16 %v4411_v20, %v4411_v20  ;;  %v6457_v34 = vpack.c.bf16 %v4281_v21, %v4281_v21  ;;  %v3767_v12 = vld [vmem:[#allocation2 + $0x390] sm:$0xff]  ;;  %5689 = vst.msk [vmem:[%s8023_s29 + $0x3b0] sm:$0xf] %vm5452_vm4, %v6584_v25  ;;  %v769_v15 = vld [vmem:[#allocation2 + $0x7c0] sm:$0xff]  ;;  %v3259_v21 = vadd.f32 %v6860_v14, %v643_v2 }
 0x1fa   : > { %5564 = vst.msk [vmem:[%s8023_s29 + $0x1bc] sm:$0xf] %vm5452_vm4, %v6459_v26  ;;  %v6585_v41 = vpack.c.bf16 %v4409_v27, %v4409_v27  ;;  %v4030_v42 = vadd.f32 %v8723_v35, %v3767_v12  ;;  %v3895_v43 = vld [vmem:[#allocation2 + $0x790] sm:$0xff]  ;;  %v2594_v23 = vpop.f32.mrb[121].mxu0  ;;  %v772_v24 = vld [vmem:[#allocation2 + $0x7d8] sm:$0xff]  ;;  %v642_v25 = vld [vmem:[#allocation2 + $0x3c8] sm:$0xff] }
 0x1fb   : > { %v3765_v44 = vld [vmem:[#allocation2 + $0x380] sm:$0xff]  ;;  %3512 = vst.msk [vmem:[#allocation2 + $0x3b0] sm:$0xff] %vm264_vm3, %v3255_v28  ;;  %v4158_v49 = vadd.f32 %v8723_v35, %v3895_v43  ;;  %3640 = vst.msk [vmem:[#allocation2 + $0x7b0] sm:$0xff] %vm264_vm3, %v3383_v37  ;;  %v3257_v30 = vadd.f32 %v2594_v23, %v641_v8  ;;  %v3106_v31 = vpop.f32.mrb[121].mxu1  ;;  %v6861_v32 = vpop.f32.mrb[122].mxu0  ;;  %v648_v8 = vld [vmem:[#allocation2 + $0x3f8] sm:$0xff] }
 0x1fc   : > { %5692 = vst.msk [vmem:[%s8023_s29 + $0x3bc] sm:$0xf] %vm5452_vm4, %v6587_v33  ;;  %5562 = vst.msk [vmem:[%s8023_s29 + $0x1b4] sm:$0xf] %vm5452_vm4, %v6457_v34  ;;  %v4028_v50 = vadd.f32 %v8723_v35, %v3765_v44  ;;  %v3893_v51 = vld [vmem:[#allocation2 + $0x780] sm:$0xff]  ;;  %v4286_v56 = vmax.f32 %v4030_v42, 0.0  ;;  %v3385_v38 = vadd.f32 %v3106_v31, %v769_v15  ;;  %v3260_v39 = vadd.f32 %v6861_v32, %v644_v16 }
 0x1fd   : > { %v3768_v52 = vld [vmem:[#allocation2 + $0x398] sm:$0xff]  ;;  %3510 = vst.msk [vmem:[#allocation2 + $0x3a0] sm:$0xff] %vm264_vm3, %v3253_v18  ;;  %v4156_v58 = vadd.f32 %v8958_v57, %v3893_v51  ;;  %3638 = vst.msk [vmem:[#allocation2 + $0x7a0] sm:$0xff] %vm264_vm3, %v3381_v45  ;;  %v4414_v62 = vmax.f32 %v4158_v49, 0.0  ;;  %v770_v33 = vld [vmem:[#allocation2 + $0x7c8] sm:$0xff]  ;;  %v6989_v40 = vpop.f32.mrb[122].mxu1 }
 0x1fe   : > { %5690 = vst.msk [vmem:[%s8023_s29 + $0x3b4] sm:$0xf] %vm5452_vm4, %v6585_v41  ;;  %v4031_v35 = vadd.f32 %v8958_v57, %v3768_v52  ;;  %v3896_v59 = vld [vmem:[#allocation2 + $0x798] sm:$0xff]  ;;  %v3766_v60 = vld [vmem:[#allocation2 + $0x388] sm:$0xff]  ;;  %v4284_v36 = vmax.f32 %v4028_v50, 0.0  ;;  %v6462_v3 = vpack.c.bf16 %v4286_v56, %v4286_v56  ;;  %v2597_v41 = vpop.f32.mrb[123].mxu0 }
 0x1ff   : > { %3513 = vst.msk [vmem:[#allocation2 + $0x3b8] sm:$0xff] %vm264_vm3, %v3256_v46  ;;  %v4159_v63 = vadd.f32 %v8958_v57, %v3896_v59  ;;  %v4029_v0 = vadd.f32 %v8958_v57, %v3766_v60  ;;  %v3894_v1 = vld [vmem:[#allocation2 + $0x788] sm:$0xff]  ;;  %3641 = vst.msk [vmem:[#allocation2 + $0x7b8] sm:$0xff] %vm264_vm3, %v3384_v53  ;;  %v4412_v4 = vmax.f32 %v4156_v58, 0.0  ;;  %v6590_v9 = vpack.c.bf16 %v4414_v62, %v4414_v62  ;;  %v3109_v48 = vpop.f32.mrb[123].mxu1  ;;  %v647_v60 = vld [vmem:[#allocation2 + $0x3f0] sm:$0xff] }
 0x200   : > { %3511 = vst.msk [vmem:[#allocation2 + $0x3a8] sm:$0xff] %vm264_vm3, %v3254_v54  ;;  %v4287_v5 = vmax.f32 %v4031_v35, 0.0  ;;  %v4157_v6 = vadd.f32 %v8958_v57, %v3894_v1  ;;  %3639 = vst.msk [vmem:[#allocation2 + $0x7a8] sm:$0xff] %vm264_vm3, %v3382_v61  ;;  %v6460_v10 = vpack.c.bf16 %v4284_v36, %v4284_v36  ;;  %v3388_v46 = vadd.f32 %v6989_v40, %v772_v24  ;;  %v645_v1 = vld [vmem:[#allocation2 + $0x3e0] sm:$0xff]  ;;  %v6992_v14 = vpop.f32.mrb[124].mxu1  ;;  %v776_v16 = vld [vmem:[#allocation2 + $0x7f8] sm:$0xff] }
 0x201   : > { %v4415_v11 = vmax.f32 %v4159_v63, 0.0  ;;  %v4285_v13 = vmax.f32 %v4029_v0, 0.0  ;;  %5567 = vst.msk [vmem:[%s8023_s29 + $0x1c8] sm:$0xf] %vm5452_vm4, %v6462_v3  ;;  %v6588_v17 = vpack.c.bf16 %v4412_v4, %v4412_v4  ;;  %5695 = vst.msk [vmem:[%s8023_s29 + $0x3c8] sm:$0xf] %vm5452_vm4, %v6590_v9  ;;  %v3258_v47 = vadd.f32 %v2597_v41, %v642_v25 }
 0x202   : > { %v6463_v19 = vpack.c.bf16 %v4287_v5, %v4287_v5  ;;  %v4413_v20 = vmax.f32 %v4157_v6, 0.0  ;;  %5565 = vst.msk [vmem:[%s8023_s29 + $0x1c0] sm:$0xf] %vm5452_vm4, %v6460_v10  ;;  %v3771_v28 = vld [vmem:[#allocation2 + $0x3b0] sm:$0xff]  ;;  %v3386_v54 = vadd.f32 %v3109_v48, %v770_v33  ;;  %v6864_v6 = vpop.f32.mrb[124].mxu0  ;;  %v773_v7 = vld [vmem:[#allocation2 + $0x7e0] sm:$0xff] }
 0x203   : > { %v6591_v26 = vpack.c.bf16 %v4415_v11, %v4415_v11  ;;  %v6461_v27 = vpack.c.bf16 %v4285_v13, %v4285_v13  ;;  %5693 = vst.msk [vmem:[%s8023_s29 + $0x3c0] sm:$0xf] %vm5452_vm4, %v6588_v17  ;;  %v4034_v12 = vadd.f32 %v8958_v57, %v3771_v28  ;;  %v3899_v37 = vld [vmem:[#allocation2 + $0x7b0] sm:$0xff]  ;;  %v3263_v13 = vadd.f32 %v6864_v6, %v647_v60  ;;  %v2610_v15 = vpop.f32.mrb[125].mxu0  ;;  %v646_v17 = vld [vmem:[#allocation2 + $0x3e8] sm:$0xff]  ;;  %v3122_v24 = vpop.f32.mrb[125].mxu1 }
 0x204   : > { %5568 = vst.msk [vmem:[%s8023_s29 + $0x1cc] sm:$0xf] %vm5452_vm4, %v6463_v19  ;;  %v6589_v34 = vpack.c.bf16 %v4413_v20, %v4413_v20  ;;  %v3769_v18 = vld [vmem:[#allocation2 + $0x3a0] sm:$0xff]  ;;  %v4162_v42 = vadd.f32 %v8958_v57, %v3899_v37  ;;  %v775_v0 = vld [vmem:[#allocation2 + $0x7f0] sm:$0xff]  ;;  %v3261_v23 = vadd.f32 %v2610_v15, %v645_v1  ;;  %v6865_v25 = vpop.f32.mrb[126].mxu0  ;;  %v3389_v31 = vadd.f32 %v3122_v24, %v773_v7  ;;  %v6993_v33 = vpop.f32.mrb[126].mxu1 }
 0x205   : > { %3516 = vst.msk [vmem:[#allocation2 + $0x3d0] sm:$0xff] %vm264_vm3, %v3259_v21  ;;  %v4032_v43 = vadd.f32 %v8958_v57, %v3769_v18  ;;  %v3897_v44 = vld [vmem:[#allocation2 + $0x7a0] sm:$0xff]  ;;  %3644 = vst.msk [vmem:[#allocation2 + $0x7d0] sm:$0xff] %vm264_vm3, %v3387_v29  ;;  %v4290_v49 = vmax.f32 %v4034_v12, 0.0  ;;  %v3391_v22 = vadd.f32 %v6992_v14, %v775_v0  ;;  %v3264_v32 = vadd.f32 %v6865_v25, %v648_v8  ;;  %v3125_v41 = vpop.f32.mrb[127].mxu1 }
 0x206   : > { %5696 = vst.msk [vmem:[%s8023_s29 + $0x3cc] sm:$0xf] %vm5452_vm4, %v6591_v26  ;;  %5566 = vst.msk [vmem:[%s8023_s29 + $0x1c4] sm:$0xf] %vm5452_vm4, %v6461_v27  ;;  %v3772_v45 = vld [vmem:[#allocation2 + $0x3b8] sm:$0xff]  ;;  %v4160_v50 = vadd.f32 %v8958_v57, %v3897_v44  ;;  %v4418_v55 = vmax.f32 %v4162_v42, 0.0 }
 0x207   : > { %3514 = vst.msk [vmem:[#allocation2 + $0x3c0] sm:$0xff] %vm264_vm3, %v3257_v30  ;;  %v4035_v51 = vadd.f32 %v8958_v57, %v3772_v45  ;;  %v3900_v52 = vld [vmem:[#allocation2 + $0x7b8] sm:$0xff]  ;;  %v3770_v53 = vld [vmem:[#allocation2 + $0x3a8] sm:$0xff]  ;;  %3642 = vst.msk [vmem:[#allocation2 + $0x7c0] sm:$0xff] %vm264_vm3, %v3385_v38  ;;  %v4288_v56 = vmax.f32 %v4032_v43, 0.0  ;;  %v6466_v61 = vpack.c.bf16 %v4290_v49, %v4290_v49 }
 0x208   : > { %5694 = vst.msk [vmem:[%s8023_s29 + $0x3c4] sm:$0xf] %vm5452_vm4, %v6589_v34  ;;  %v4163_v58 = vadd.f32 %v8958_v57, %v3900_v52  ;;  %v4033_v35 = vadd.f32 %v8958_v57, %v3770_v53  ;;  %v3898_v59 = vld [vmem:[#allocation2 + $0x7a8] sm:$0xff]  ;;  %v4416_v62 = vmax.f32 %v4160_v50, 0.0  ;;  %v6594_v2 = vpack.c.bf16 %v4418_v55, %v4418_v55  ;;  %v2613_v34 = vpop.f32.mrb[127].mxu0 }
 0x209   : > { %3517 = vst.msk [vmem:[#allocation2 + $0x3d8] sm:$0xff] %vm264_vm3, %v3260_v39  ;;  %3645 = vst.msk [vmem:[#allocation2 + $0x7d8] sm:$0xff] %vm264_vm3, %v3388_v46  ;;  %v4291_v36 = vmax.f32 %v4035_v51, 0.0  ;;  %v4161_v63 = vadd.f32 %v8958_v57, %v3898_v59  ;;  %v6464_v3 = vpack.c.bf16 %v4288_v56, %v4288_v56  ;;  %v774_v26 = vld [vmem:[#allocation2 + $0x7e8] sm:$0xff]  ;;  %v3392_v39 = vadd.f32 %v6993_v33, %v776_v16 }
 0x20a   : > { %3515 = vst.msk [vmem:[#allocation2 + $0x3c8] sm:$0xff] %vm264_vm3, %v3258_v47  ;;  %3643 = vst.msk [vmem:[#allocation2 + $0x7c8] sm:$0xff] %vm264_vm3, %v3386_v54  ;;  %v4419_v4 = vmax.f32 %v4163_v58, 0.0  ;;  %v4289_v5 = vmax.f32 %v4033_v35, 0.0  ;;  %v6592_v9 = vpack.c.bf16 %v4416_v62, %v4416_v62  ;;  %v3262_v40 = vadd.f32 %v2613_v34, %v646_v17 }
 0x20b   : > { %5571 = vst.msk [vmem:[%s8023_s29 + $0x1d8] sm:$0xf] %vm5452_vm4, %v6466_v61  ;;  %v6467_v10 = vpack.c.bf16 %v4291_v36, %v4291_v36  ;;  %v4417_v11 = vmax.f32 %v4161_v63, 0.0  ;;  %5699 = vst.msk [vmem:[%s8023_s29 + $0x3d8] sm:$0xf] %vm5452_vm4, %v6594_v2  ;;  %v3390_v47 = vadd.f32 %v3125_v41, %v774_v26 }
 0x20c   : > { %5569 = vst.msk [vmem:[%s8023_s29 + $0x1d0] sm:$0xf] %vm5452_vm4, %v6464_v3  ;;  %v6595_v19 = vpack.c.bf16 %v4419_v4, %v4419_v4  ;;  %v6465_v20 = vpack.c.bf16 %v4289_v5, %v4289_v5  ;;  %v3775_v21 = vld [vmem:[#allocation2 + $0x3d0] sm:$0xff]  ;;  %5697 = vst.msk [vmem:[%s8023_s29 + $0x3d0] sm:$0xf] %vm5452_vm4, %v6592_v9 }
 0x20d   : > { %5572 = vst.msk [vmem:[%s8023_s29 + $0x1dc] sm:$0xf] %vm5452_vm4, %v6467_v10  ;;  %v6593_v27 = vpack.c.bf16 %v4417_v11, %v4417_v11  ;;  %v4038_v28 = vadd.f32 %v8958_v57, %v3775_v21  ;;  %v3903_v29 = vld [vmem:[#allocation2 + $0x7d0] sm:$0xff] }
 0x20e   : > { %v3773_v30 = vld [vmem:[#allocation2 + $0x3c0] sm:$0xff]  ;;  %3520 = vst.msk [vmem:[#allocation2 + $0x3f0] sm:$0xff] %vm264_vm3, %v3263_v13  ;;  %v4166_v12 = vadd.f32 %v8958_v57, %v3903_v29  ;;  %3648 = vst.msk [vmem:[#allocation2 + $0x7f0] sm:$0xff] %vm264_vm3, %v3391_v22 }
 0x20f   : > { %5700 = vst.msk [vmem:[%s8023_s29 + $0x3dc] sm:$0xf] %vm5452_vm4, %v6595_v19  ;;  %5570 = vst.msk [vmem:[%s8023_s29 + $0x1d4] sm:$0xf] %vm5452_vm4, %v6465_v20  ;;  %v4036_v37 = vadd.f32 %v8958_v57, %v3773_v30  ;;  %v3901_v18 = vld [vmem:[#allocation2 + $0x7c0] sm:$0xff]  ;;  %v4294_v42 = vmax.f32 %v4038_v28, 0.0 }
 0x210   : > { %v3776_v38 = vld [vmem:[#allocation2 + $0x3d8] sm:$0xff]  ;;  %3518 = vst.msk [vmem:[#allocation2 + $0x3e0] sm:$0xff] %vm264_vm3, %v3261_v23  ;;  %v4164_v43 = vadd.f32 %v8958_v57, %v3901_v18  ;;  %3646 = vst.msk [vmem:[#allocation2 + $0x7e0] sm:$0xff] %vm264_vm3, %v3389_v31  ;;  %v4422_v48 = vmax.f32 %v4166_v12, 0.0 }
 0x211   : > { %5698 = vst.msk [vmem:[%s8023_s29 + $0x3d4] sm:$0xf] %vm5452_vm4, %v6593_v27  ;;  %v4039_v44 = vadd.f32 %v8958_v57, %v3776_v38  ;;  %v3904_v45 = vld [vmem:[#allocation2 + $0x7d8] sm:$0xff]  ;;  %v3774_v46 = vld [vmem:[#allocation2 + $0x3c8] sm:$0xff]  ;;  %v4292_v49 = vmax.f32 %v4036_v37, 0.0  ;;  %v6470_v53 = vpack.c.bf16 %v4294_v42, %v4294_v42 }
 0x212   : > { %3521 = vst.msk [vmem:[#allocation2 + $0x3f8] sm:$0xff] %vm264_vm3, %v3264_v32  ;;  %v4167_v50 = vadd.f32 %v8958_v57, %v3904_v45  ;;  %v4037_v51 = vadd.f32 %v8958_v57, %v3774_v46  ;;  %v3902_v52 = vld [vmem:[#allocation2 + $0x7c8] sm:$0xff]  ;;  %3649 = vst.msk [vmem:[#allocation2 + $0x7f8] sm:$0xff] %vm264_vm3, %v3392_v39  ;;  %v4420_v54 = vmax.f32 %v4164_v43, 0.0  ;;  %v6598_v58 = vpack.c.bf16 %v4422_v48, %v4422_v48 }
 0x213   : > { %3519 = vst.msk [vmem:[#allocation2 + $0x3e8] sm:$0xff] %vm264_vm3, %v3262_v40  ;;  %v4295_v55 = vmax.f32 %v4039_v44, 0.0  ;;  %v4165_v56 = vadd.f32 %v8958_v57, %v3902_v52  ;;  %3647 = vst.msk [vmem:[#allocation2 + $0x7e8] sm:$0xff] %vm264_vm3, %v3390_v47  ;;  %v6468_v35 = vpack.c.bf16 %v4292_v49, %v4292_v49 }
 0x214   : > { %v4423_v59 = vmax.f32 %v4167_v50, 0.0  ;;  %v4293_v60 = vmax.f32 %v4037_v51, 0.0  ;;  %5575 = vst.msk [vmem:[%s8023_s29 + $0x1e8] sm:$0xf] %vm5452_vm4, %v6470_v53  ;;  %v6596_v61 = vpack.c.bf16 %v4420_v54, %v4420_v54  ;;  %5703 = vst.msk [vmem:[%s8023_s29 + $0x3e8] sm:$0xf] %vm5452_vm4, %v6598_v58 }
 0x215   : > { %v6471_v62 = vpack.c.bf16 %v4295_v55, %v4295_v55  ;;  %v4421_v36 = vmax.f32 %v4165_v56, 0.0  ;;  %5573 = vst.msk [vmem:[%s8023_s29 + $0x1e0] sm:$0xf] %vm5452_vm4, %v6468_v35  ;;  %v3779_v1 = vld [vmem:[#allocation2 + $0x3f0] sm:$0xff] }
 0x216   : > { %v6599_v63 = vpack.c.bf16 %v4423_v59, %v4423_v59  ;;  %v6469_v0 = vpack.c.bf16 %v4293_v60, %v4293_v60  ;;  %5701 = vst.msk [vmem:[%s8023_s29 + $0x3e0] sm:$0xf] %vm5452_vm4, %v6596_v61  ;;  %v4042_v3 = vadd.f32 %v8958_v57, %v3779_v1  ;;  %v3907_v4 = vld [vmem:[#allocation2 + $0x7f0] sm:$0xff] }
 0x217   : > { %5576 = vst.msk [vmem:[%s8023_s29 + $0x1ec] sm:$0xf] %vm5452_vm4, %v6471_v62  ;;  %v6597_v2 = vpack.c.bf16 %v4421_v36, %v4421_v36  ;;  %v3777_v5 = vld [vmem:[#allocation2 + $0x3e0] sm:$0xff]  ;;  %v4170_v6 = vadd.f32 %v8958_v57, %v3907_v4 }
 0x218   : > { %5704 = vst.msk [vmem:[%s8023_s29 + $0x3ec] sm:$0xf] %vm5452_vm4, %v6599_v63  ;;  %5574 = vst.msk [vmem:[%s8023_s29 + $0x1e4] sm:$0xf] %vm5452_vm4, %v6469_v0  ;;  %v4040_v7 = vadd.f32 %v8958_v57, %v3777_v5  ;;  %v3905_v8 = vld [vmem:[#allocation2 + $0x7e0] sm:$0xff]  ;;  %v4298_v10 = vmax.f32 %v4042_v3, 0.0 }
 0x219   : > { %v3780_v9 = vld [vmem:[#allocation2 + $0x3f8] sm:$0xff]  ;;  %5702 = vst.msk [vmem:[%s8023_s29 + $0x3e4] sm:$0xf] %vm5452_vm4, %v6597_v2  ;;  %v4168_v11 = vadd.f32 %v8958_v57, %v3905_v8  ;;  %v4426_v16 = vmax.f32 %v4170_v6, 0.0 }
 0x21a   : > { %v4043_v13 = vadd.f32 %v8958_v57, %v3780_v9  ;;  %v3908_v14 = vld [vmem:[#allocation2 + $0x7f8] sm:$0xff]  ;;  %v3778_v15 = vld [vmem:[#allocation2 + $0x3e8] sm:$0xff]  ;;  %v4296_v17 = vmax.f32 %v4040_v7, 0.0  ;;  %v6474_v22 = vpack.c.bf16 %v4298_v10, %v4298_v10 }
 0x21b   : > { %v4171_v19 = vadd.f32 %v8958_v57, %v3908_v14  ;;  %v4041_v20 = vadd.f32 %v8958_v57, %v3778_v15  ;;  %v3906_v21 = vld [vmem:[#allocation2 + $0x7e8] sm:$0xff]  ;;  %v4424_v23 = vmax.f32 %v4168_v11, 0.0  ;;  %v6602_v26 = vpack.c.bf16 %v4426_v16, %v4426_v16 }
 0x21c   : > { %v4299_v24 = vmax.f32 %v4043_v13, 0.0  ;;  %v4169_v25 = vadd.f32 %v8958_v57, %v3906_v21  ;;  %v6472_v27 = vpack.c.bf16 %v4296_v17, %v4296_v17  ;;  %5579 = vst.msk [vmem:[%s8023_s29 + $0x1f8] sm:$0xf] %vm5452_vm4, %v6474_v22 }
 0x21d   : > { %v4427_v28 = vmax.f32 %v4171_v19, 0.0  ;;  %v4297_v29 = vmax.f32 %v4041_v20, 0.0  ;;  %v6600_v30 = vpack.c.bf16 %v4424_v23, %v4424_v23  ;;  %5707 = vst.msk [vmem:[%s8023_s29 + $0x3f8] sm:$0xf] %vm5452_vm4, %v6602_v26 }
 0x21e   : > { %v6475_v31 = vpack.c.bf16 %v4299_v24, %v4299_v24  ;;  %v4425_v32 = vmax.f32 %v4169_v25, 0.0  ;;  %5577 = vst.msk [vmem:[%s8023_s29 + $0x1f0] sm:$0xf] %vm5452_vm4, %v6472_v27 }
 0x21f   : > { %v6603_v33 = vpack.c.bf16 %v4427_v28, %v4427_v28  ;;  %v6473_v34 = vpack.c.bf16 %v4297_v29, %v4297_v29  ;;  %5705 = vst.msk [vmem:[%s8023_s29 + $0x3f0] sm:$0xf] %vm5452_vm4, %v6600_v30 }
 0x220   : > { %5580 = vst.msk [vmem:[%s8023_s29 + $0x1fc] sm:$0xf] %vm5452_vm4, %v6475_v31  ;;  %v6601_v57 = vpack.c.bf16 %v4425_v32, %v4425_v32 }
 0x221   : > { %5708 = vst.msk [vmem:[%s8023_s29 + $0x3fc] sm:$0xf] %vm5452_vm4, %v6603_v33  ;;  %5578 = vst.msk [vmem:[%s8023_s29 + $0x1f4] sm:$0xf] %vm5452_vm4, %v6473_v34 }
 0x222   : > { %5706 = vst.msk [vmem:[%s8023_s29 + $0x3f4] sm:$0xf] %vm5452_vm4, %v6601_v57 }
 0x223 PF: > { %s13_s14 = sadd.s32 1, %s7180_s14   ;;  %s9087_s12 = smov %s7176_s13 }
 0x224   : > { %p10_p5 = scmp.ge.s32.totalorder %s13_s14, 4   ;;  %s9088_s13 = smov %s9090_s15 }
 0x226   :  { %12 = sbr.rel (!%p10_p5) target bundleno = 2 (0x2), region = 76 }

</bundles_post_ra>
